<compile_context>
chip_gen: v5e
topology: v5e:2x2
jax: 0.10.0
libtpu: 0.0.40
codegen_flags: <defaults>
</compile_context>

<pallas_src>
import jax
import jax.numpy as jnp
from jax.experimental import pallas as pl
from jax.experimental.pallas import tpu as pltpu

# ---- small, forward-consistent shapes -------------------------------------
B = 2                            # batch
CIN = 3                          # RGB input channels (backbone expects 3)
HW = 16                          # spatial size
STEM_C = 24                      # tf_efficientnetv2_s stem width
N_FEAT = 1280                    # backbone.classifier.in_features
HID = 512                        # regressor hidden width
POUT = (HW // 2) * (HW // 2)     # 8*8 = 64 positions after stride-2 stem
PATCH = 3 * 3 * CIN              # 27 im2col patch length
NC = 640                         # feature-chunk width streamed per grid step
NSTEPS = N_FEAT // NC            # 2 reduction steps


def _bone_age_kernel(patches_ref, stem_w_ref, stem_b_ref,
                     head_w_ref, head_b_ref,
                     fc1_w_ref, fc1_b_ref,
                     fc2_w_ref, fc2_b_ref,
                     out_ref,
                     h_ref, acc_ref):
    j = pl.program_id(0)

    # --- step 0: stem conv (im2col matmul) + SiLU, init accumulator --------
    @pl.when(j == 0)
    def _():
        p = patches_ref[...]                                       # (B*P, 27)
        h = jnp.dot(p, stem_w_ref[...],
                    preferred_element_type=jnp.float32) + stem_b_ref[...]
        h = h * jax.nn.sigmoid(h)                                  # SiLU (f32)
        h_ref[...] = h.astype(jnp.bfloat16)                        # MXU operand
        acc_ref[...] = jnp.zeros_like(acc_ref)

    # --- streamed head chunk: 1x1 conv to NC features + SiLU ---------------
    f = jnp.dot(h_ref[...], head_w_ref[...],
                preferred_element_type=jnp.float32) + head_b_ref[...]
    f = f * jax.nn.sigmoid(f)                                      # (B*P, NC) f32

    # --- spatial sum pool (sublane/XLU reduce); 1/POUT folded to finalize --
    pooled_sum = jnp.sum(f.reshape(B, POUT, NC), axis=1)           # (B, NC)

    # --- partial Linear(1280, 512): accumulate this feature chunk ----------
    acc_ref[...] += jnp.dot(pooled_sum.astype(jnp.bfloat16), fc1_w_ref[...],
                            preferred_element_type=jnp.float32)    # (B, HID)

    # --- last step: scale -> +bias -> ReLU -> Dropout(id) -> Linear(512,1) -
    @pl.when(j == pl.num_programs(0) - 1)
    def _():
        r = jnp.maximum(acc_ref[...] * (1.0 / POUT) + fc1_b_ref[...], 0.0)
        # N=1 matmul replaced by VPU multiply + lane reduce
        o = jnp.sum(r * fc2_w_ref[...], axis=-1, keepdims=True)    # (B, 1)
        out_ref[...] = o + fc2_b_ref[...]


def _extract_patches(x_nchw):
    """Channel-last im2col for 3x3 / stride 2 / TF-'same' pad (H=W=16 -> pad (0,1))."""
    x = x_nchw.astype(jnp.float32).transpose(0, 2, 3, 1)           # NHWC (B,16,16,C)
    xp = jnp.pad(x, ((0, 0), (0, 1), (0, 1), (0, 0)))
    taps = [xp[:, di:di + HW:2, dj:dj + HW:2, :]                   # (B, 8, 8, C) each
            for di in range(3) for dj in range(3)]
    pat = jnp.concatenate(taps, axis=-1)                           # (B, 8, 8, 9*C)
    return pat.reshape(B * POUT, PATCH)                            # tap-major, ch-minor


def bone_age_regressor(x_nchw, params):
    patches = _extract_patches(x_nchw)                             # (B*64, 27) f32

    out = pl.pallas_call(
        _bone_age_kernel,
        out_shape=jax.ShapeDtypeStruct((B, 1), jnp.float32),
        grid_spec=pltpu.PrefetchScalarGridSpec(
            num_scalar_prefetch=0,
            grid=(NSTEPS,),
            in_specs=[
                pl.BlockSpec((B * POUT, PATCH), lambda j: (0, 0)),  # patches (resident)
                pl.BlockSpec((PATCH, STEM_C), lambda j: (0, 0)),    # stem_w  (resident)
                pl.BlockSpec((1, STEM_C), lambda j: (0, 0)),        # stem_b  (resident)
                pl.BlockSpec((STEM_C, NC), lambda j: (0, j)),       # head_w  (streamed)
                pl.BlockSpec((1, NC), lambda j: (0, j)),            # head_b  (streamed)
                pl.BlockSpec((NC, HID), lambda j: (j, 0)),          # fc1_w   (streamed)
                pl.BlockSpec((1, HID), lambda j: (0, 0)),           # fc1_b   (resident)
                pl.BlockSpec((1, HID), lambda j: (0, 0)),           # fc2_w   (resident)
                pl.BlockSpec((1, 1), lambda j: (0, 0)),             # fc2_b   (resident)
            ],
            out_specs=pl.BlockSpec((B, 1), lambda j: (0, 0)),
            scratch_shapes=[
                pltpu.VMEM((B * POUT, STEM_C), jnp.bfloat16),       # stem activation
                pltpu.VMEM((B, HID), jnp.float32),                  # fc1 accumulator
            ],
        ),
        compiler_params=pltpu.CompilerParams(
            dimension_semantics=("arbitrary",)),
    )(patches,
      params["stem_w"], params["stem_b"],
      params["head_w"], params["head_b"],
      params["fc1_w"], params["fc1_b"],
      params["fc2_w"], params["fc2_b"])
    return out[:, 0]                                               # squeeze(1) -> (B,)


def init_params(key):
    ks = jax.random.split(key, 8)
    return {
        "stem_w": jax.random.normal(ks[0], (PATCH, STEM_C), jnp.float32) * 0.10,
        "stem_b": jax.random.normal(ks[1], (1, STEM_C), jnp.float32) * 0.01,
        # large weights stored bf16: MXU-native, halves dominant HBM traffic
        "head_w": (jax.random.normal(ks[2], (STEM_C, N_FEAT), jnp.float32)
                   * 0.10).astype(jnp.bfloat16),
        "head_b": jax.random.normal(ks[3], (1, N_FEAT), jnp.float32) * 0.01,
        "fc1_w":  (jax.random.normal(ks[4], (N_FEAT, HID), jnp.float32)
                   * 0.02).astype(jnp.bfloat16),
        "fc1_b":  jax.random.normal(ks[5], (1, HID), jnp.float32) * 0.01,
        "fc2_w":  jax.random.normal(ks[6], (1, HID), jnp.float32) * 0.02,  # row form
        "fc2_b":  jax.random.normal(ks[7], (1, 1), jnp.float32) * 0.01,
    }


if __name__ == "__main__":
    key = jax.random.PRNGKey(0)
    pkey, xkey = jax.random.split(key)
    params = init_params(pkey)
    x = jax.random.normal(xkey, (B, CIN, HW, HW), jnp.float32)     # NCHW like PyTorch

    y = jax.jit(lambda xx: bone_age_regressor(xx, params))(x)
    y = jax.block_until_ready(y)

    assert y.shape == (B,), y.shape
    assert jnp.all(jnp.isfinite(y))
    print("KERNEL_OK")
</pallas_src>

<mosaic_0001>
module attributes {stable_mosaic.version = 11 : i64} {
  func.func @_bone_age_kernel(%arg0: i32, %arg1: memref<128x27xf32, #tpu.memory_space<vmem>>, %arg2: memref<27x24xf32, #tpu.memory_space<vmem>>, %arg3: memref<1x24xf32, #tpu.memory_space<vmem>>, %arg4: memref<24x640xbf16, #tpu.memory_space<vmem>>, %arg5: memref<1x640xf32, #tpu.memory_space<vmem>>, %arg6: memref<640x512xbf16, #tpu.memory_space<vmem>>, %arg7: memref<1x512xf32, #tpu.memory_space<vmem>>, %arg8: memref<1x512xf32, #tpu.memory_space<vmem>>, %arg9: memref<1x1xf32, #tpu.memory_space<vmem>>, %arg10: memref<2x1xf32, #tpu.memory_space<vmem>>, %arg11: memref<128x24xbf16, #tpu.memory_space<vmem>>, %arg12: memref<2x512xf32, #tpu.memory_space<vmem>>) attributes {dimension_semantics = [#tpu.dimension_semantics<arbitrary>], iteration_bounds = array<i64: 2>, scalar_prefetch = 0 : i64, scratch_operands = 2 : i64, tpu.core_type = #tpu.core_type<tc>, window_params = [{pipeline_mode = #tpu.pipeline_mode<synchronous>, transform_indices = @transform_0, window_bounds = array<i64: 128, 27>}, {pipeline_mode = #tpu.pipeline_mode<synchronous>, transform_indices = @transform_1, window_bounds = array<i64: 27, 24>}, {pipeline_mode = #tpu.pipeline_mode<synchronous>, transform_indices = @transform_2, window_bounds = array<i64: 1, 24>}, {transform_indices = @transform_3, window_bounds = array<i64: 24, 640>}, {transform_indices = @transform_4, window_bounds = array<i64: 1, 640>}, {transform_indices = @transform_5, window_bounds = array<i64: 640, 512>}, {pipeline_mode = #tpu.pipeline_mode<synchronous>, transform_indices = @transform_6, window_bounds = array<i64: 1, 512>}, {pipeline_mode = #tpu.pipeline_mode<synchronous>, transform_indices = @transform_7, window_bounds = array<i64: 1, 512>}, {pipeline_mode = #tpu.pipeline_mode<synchronous>, transform_indices = @transform_8, window_bounds = array<i64: 1, 1>}, {pipeline_mode = #tpu.pipeline_mode<synchronous>, transform_indices = @transform_9, window_bounds = array<i64: 2, 1>}]} {
    %c0_i32 = arith.constant 0 : i32
    %0 = arith.cmpi eq, %arg0, %c0_i32 : i32
    %1 = arith.extui %0 : i1 to i32
    %c0_i32_0 = arith.constant 0 : i32
    %2 = arith.cmpi ne, %1, %c0_i32_0 : i32
    scf.if %2 {
      %c0_16 = arith.constant 0 : index
      %c0_17 = arith.constant 0 : index
      %26 = vector.load %arg1[%c0_16, %c0_17] : memref<128x27xf32, #tpu.memory_space<vmem>>, vector<128x27xf32>
      %c0_18 = arith.constant 0 : index
      %c0_19 = arith.constant 0 : index
      %27 = vector.load %arg2[%c0_18, %c0_19] : memref<27x24xf32, #tpu.memory_space<vmem>>, vector<27x24xf32>
      %cst_20 = arith.constant dense<0.000000e+00> : vector<128x24xf32>
      %28 = tpu.matmul %26, %27, %cst_20 {dimension_numbers = #tpu.dot_dimension_numbers<[1], [0], [0], [1], [0, 0, 1, 1], [], []>} : vector<128x27xf32>, vector<27x24xf32>, vector<128x24xf32> -> vector<128x24xf32>
      %c0_21 = arith.constant 0 : index
      %c0_22 = arith.constant 0 : index
      %29 = vector.load %arg3[%c0_21, %c0_22] : memref<1x24xf32, #tpu.memory_space<vmem>>, vector<1x24xf32>
      %30 = vector.broadcast %29 : vector<1x24xf32> to vector<128x24xf32>
      %31 = arith.addf %28, %30 : vector<128x24xf32>
      %32 = arith.negf %31 : vector<128x24xf32>
      %33 = math.exp %32 : vector<128x24xf32>
      %cst_23 = arith.constant 1.000000e+00 : f32
      %34 = vector.broadcast %cst_23 : f32 to vector<128x24xf32>
      %35 = arith.addf %34, %33 : vector<128x24xf32>
      %36 = arith.divf %34, %35 : vector<128x24xf32>
      %37 = arith.mulf %31, %36 : vector<128x24xf32>
      %38 = arith.truncf %37 : vector<128x24xf32> to vector<128x24xbf16>
      %c0_24 = arith.constant 0 : index
      %c0_25 = arith.constant 0 : index
      %39 = vector.load %arg11[%c0_24, %c0_25] : memref<128x24xbf16, #tpu.memory_space<vmem>>, vector<128x24xbf16>
      tpu.vector_store %arg11[%c0_24, %c0_25], %38 {strides = array<i32>} : memref<128x24xbf16, #tpu.memory_space<vmem>>, vector<128x24xbf16>,
      %cst_26 = arith.constant 0.000000e+00 : f32
      %40 = vector.broadcast %cst_26 : f32 to vector<2x512xf32>
      %c0_27 = arith.constant 0 : index
      %c0_28 = arith.constant 0 : index
      %41 = vector.load %arg12[%c0_27, %c0_28] : memref<2x512xf32, #tpu.memory_space<vmem>>, vector<2x512xf32>
      tpu.vector_store %arg12[%c0_27, %c0_28], %40 {strides = array<i32>} : memref<2x512xf32, #tpu.memory_space<vmem>>, vector<2x512xf32>,
    } else {
    }
    %c0 = arith.constant 0 : index
    %c0_1 = arith.constant 0 : index
    %3 = vector.load %arg11[%c0, %c0_1] : memref<128x24xbf16, #tpu.memory_space<vmem>>, vector<128x24xbf16>
    %c0_2 = arith.constant 0 : index
    %c0_3 = arith.constant 0 : index
    %4 = vector.load %arg4[%c0_2, %c0_3] : memref<24x640xbf16, #tpu.memory_space<vmem>>, vector<24x640xbf16>
    %cst = arith.constant dense<0.000000e+00> : vector<128x640xf32>
    %5 = tpu.matmul %3, %4, %cst {dimension_numbers = #tpu.dot_dimension_numbers<[1], [0], [0], [1], [0, 0, 1, 1], [], []>} : vector<128x24xbf16>, vector<24x640xbf16>, vector<128x640xf32> -> vector<128x640xf32>
    %c0_4 = arith.constant 0 : index
    %c0_5 = arith.constant 0 : index
    %6 = vector.load %arg5[%c0_4, %c0_5] : memref<1x640xf32, #tpu.memory_space<vmem>>, vector<1x640xf32>
    %7 = vector.broadcast %6 : vector<1x640xf32> to vector<128x640xf32>
    %8 = arith.addf %5, %7 : vector<128x640xf32>
    %9 = arith.negf %8 : vector<128x640xf32>
    %10 = math.exp %9 : vector<128x640xf32>
    %cst_6 = arith.constant 1.000000e+00 : f32
    %11 = vector.broadcast %cst_6 : f32 to vector<128x640xf32>
    %12 = arith.addf %11, %10 : vector<128x640xf32>
    %13 = arith.divf %11, %12 : vector<128x640xf32>
    %14 = arith.mulf %8, %13 : vector<128x640xf32>
    %15 = vector.shape_cast %14 : vector<128x640xf32> to vector<2x64x640xf32>
    %cst_7 = arith.constant dense<0.000000e+00> : vector<2x640xf32>
    %16 = vector.multi_reduction <add>, %15, %cst_7 [1] : vector<2x64x640xf32> to vector<2x640xf32>
    %c0_8 = arith.constant 0 : index
    %c0_9 = arith.constant 0 : index
    %17 = vector.load %arg12[%c0_8, %c0_9] : memref<2x512xf32, #tpu.memory_space<vmem>>, vector<2x512xf32>
    %18 = arith.truncf %16 : vector<2x640xf32> to vector<2x640xbf16>
    %c0_10 = arith.constant 0 : index
    %c0_11 = arith.constant 0 : index
    %19 = vector.load %arg6[%c0_10, %c0_11] : memref<640x512xbf16, #tpu.memory_space<vmem>>, vector<640x512xbf16>
    %cst_12 = arith.constant dense<0.000000e+00> : vector<2x512xf32>
    %20 = tpu.matmul %18, %19, %cst_12 {dimension_numbers = #tpu.dot_dimension_numbers<[1], [0], [0], [1], [0, 0, 1, 1], [], []>} : vector<2x640xbf16>, vector<640x512xbf16>, vector<2x512xf32> -> vector<2x512xf32>
    %21 = arith.addf %17, %20 : vector<2x512xf32>
    %c0_13 = arith.constant 0 : index
    %c0_14 = arith.constant 0 : index
    %22 = vector.load %arg12[%c0_13, %c0_14] : memref<2x512xf32, #tpu.memory_space<vmem>>, vector<2x512xf32>
    tpu.vector_store %arg12[%c0_13, %c0_14], %21 {strides = array<i32>} : memref<2x512xf32, #tpu.memory_space<vmem>>, vector<2x512xf32>,
    %c1_i32 = arith.constant 1 : i32
    %23 = arith.cmpi eq, %arg0, %c1_i32 : i32
    %24 = arith.extui %23 : i1 to i32
    %c0_i32_15 = arith.constant 0 : i32
    %25 = arith.cmpi ne, %24, %c0_i32_15 : i32
    scf.if %25 {
      %c0_16 = arith.constant 0 : index
      %c0_17 = arith.constant 0 : index
      %26 = vector.load %arg12[%c0_16, %c0_17] : memref<2x512xf32, #tpu.memory_space<vmem>>, vector<2x512xf32>
      %cst_18 = arith.constant 1.562500e-02 : f32
      %27 = vector.broadcast %cst_18 : f32 to vector<2x512xf32>
      %28 = arith.mulf %26, %27 : vector<2x512xf32>
      %c0_19 = arith.constant 0 : index
      %c0_20 = arith.constant 0 : index
      %29 = vector.load %arg7[%c0_19, %c0_20] : memref<1x512xf32, #tpu.memory_space<vmem>>, vector<1x512xf32>
      %30 = vector.broadcast %29 : vector<1x512xf32> to vector<2x512xf32>
      %31 = arith.addf %28, %30 : vector<2x512xf32>
      %cst_21 = arith.constant 0.000000e+00 : f32
      %32 = vector.broadcast %cst_21 : f32 to vector<2x512xf32>
      %33 = arith.maximumf %31, %32 : vector<2x512xf32>
      %c0_22 = arith.constant 0 : index
      %c0_23 = arith.constant 0 : index
      %34 = vector.load %arg8[%c0_22, %c0_23] : memref<1x512xf32, #tpu.memory_space<vmem>>, vector<1x512xf32>
      %35 = vector.broadcast %34 : vector<1x512xf32> to vector<2x512xf32>
      %36 = arith.mulf %33, %35 : vector<2x512xf32>
      %cst_24 = arith.constant dense<0.000000e+00> : vector<2xf32>
      %37 = vector.multi_reduction <add>, %36, %cst_24 [1] : vector<2x512xf32> to vector<2xf32>
      %38 = vector.shape_cast %37 : vector<2xf32> to vector<2x1xf32>
      %c0_25 = arith.constant 0 : index
      %c0_26 = arith.constant 0 : index
      %39 = vector.load %arg9[%c0_25, %c0_26] : memref<1x1xf32, #tpu.memory_space<vmem>>, vector<1x1xf32>
      %40 = vector.broadcast %39 : vector<1x1xf32> to vector<2x1xf32>
      %41 = arith.addf %38, %40 : vector<2x1xf32>
      %c0_27 = arith.constant 0 : index
      %c0_28 = arith.constant 0 : index
      %42 = vector.load %arg10[%c0_27, %c0_28] : memref<2x1xf32, #tpu.memory_space<vmem>>, vector<2x1xf32>
      tpu.vector_store %arg10[%c0_27, %c0_28], %41 {strides = array<i32>} : memref<2x1xf32, #tpu.memory_space<vmem>>, vector<2x1xf32>,
    } else {
    }
    return
  }
  func.func @transform_0(%arg0: i32) -> (i32, i32) {
    %c0_i32 = arith.constant 0 : i32
    %c0_i32_0 = arith.constant 0 : i32
    %c0_i32_1 = arith.constant 0 : i32
    return %c0_i32, %c0_i32_0 : i32, i32
  }
  func.func @transform_1(%arg0: i32) -> (i32, i32) {
    %c0_i32 = arith.constant 0 : i32
    %c0_i32_0 = arith.constant 0 : i32
    %c0_i32_1 = arith.constant 0 : i32
    return %c0_i32, %c0_i32_0 : i32, i32
  }
  func.func @transform_2(%arg0: i32) -> (i32, i32) {
    %c0_i32 = arith.constant 0 : i32
    %c0_i32_0 = arith.constant 0 : i32
    %c0_i32_1 = arith.constant 0 : i32
    return %c0_i32, %c0_i32_0 : i32, i32
  }
  func.func @transform_3(%arg0: i32) -> (i32, i32) {
    %c0_i32 = arith.constant 0 : i32
    %c0_i32_0 = arith.constant 0 : i32
    return %c0_i32, %arg0 : i32, i32
  }
  func.func @transform_4(%arg0: i32) -> (i32, i32) {
    %c0_i32 = arith.constant 0 : i32
    %c0_i32_0 = arith.constant 0 : i32
    return %c0_i32, %arg0 : i32, i32
  }
  func.func @transform_5(%arg0: i32) -> (i32, i32) {
    %c0_i32 = arith.constant 0 : i32
    %c0_i32_0 = arith.constant 0 : i32
    return %arg0, %c0_i32 : i32, i32
  }
  func.func @transform_6(%arg0: i32) -> (i32, i32) {
    %c0_i32 = arith.constant 0 : i32
    %c0_i32_0 = arith.constant 0 : i32
    %c0_i32_1 = arith.constant 0 : i32
    return %c0_i32, %c0_i32_0 : i32, i32
  }
  func.func @transform_7(%arg0: i32) -> (i32, i32) {
    %c0_i32 = arith.constant 0 : i32
    %c0_i32_0 = arith.constant 0 : i32
    %c0_i32_1 = arith.constant 0 : i32
    return %c0_i32, %c0_i32_0 : i32, i32
  }
  func.func @transform_8(%arg0: i32) -> (i32, i32) {
    %c0_i32 = arith.constant 0 : i32
    %c0_i32_0 = arith.constant 0 : i32
    %c0_i32_1 = arith.constant 0 : i32
    return %c0_i32, %c0_i32_0 : i32, i32
  }
  func.func @transform_9(%arg0: i32) -> (i32, i32) {
    %c0_i32 = arith.constant 0 : i32
    %c0_i32_0 = arith.constant 0 : i32
    %c0_i32_1 = arith.constant 0 : i32
    return %c0_i32, %c0_i32_0 : i32, i32
  }
}

</mosaic_0001>

<bundles_post_ra>
// kernel: _lambda_.1
= control target key start
LH: loop header
LB: loop body
LE: loop exit
PB: predicated region body
PF: predicated region fallthrough
CT: control target
= control target key end

     0   :  { %s9461_s0 = inlined_call_operand.vmem [shape: f32[128,27], index: 0, kind: input, shape index: {}]   ;;  %s9462_s1 = inlined_call_operand.vmem [shape: f32[27,24], index: 1, kind: input, shape index: {}]   ;;  %s9463_s2 = inlined_call_operand.vmem [shape: f32[1,24], index: 2, kind: input, shape index: {}]   ;;  %s9464_s3 = inlined_call_operand.vmem [shape: bf16[24,1280], index: 3, kind: input, shape index: {}]   ;;  %s9465_s4 = inlined_call_operand.vmem [shape: f32[1,1280], index: 4, kind: input, shape index: {}]   ;;  %s9466_s5 = inlined_call_operand.vmem [shape: bf16[1280,512], index: 5, kind: input, shape index: {}]   ;;  %s9467_s6 = inlined_call_operand.vmem [shape: f32[1,512], index: 6, kind: input, shape index: {}]   ;;  %s9468_s7 = inlined_call_operand.vmem [shape: f32[1,512], index: 7, kind: input, shape index: {}]   ;;  %s9469_s8 = inlined_call_operand.<no memory space> [shape: f32[1,1], index: 8, kind: input, shape index: {}]   ;;  %s9470_s9 = inlined_call_operand.vmem [shape: f32[2,1], index: 9, kind: output, shape index: {}]  }
   0x1   :  { %v14_v0 = vstv %s9469_s8 }
   0x2   :  { %15 = vst [vmem:[#allocation4] sm:$0x1] %v14_v0 }
   0x3   :  { %s5988_s11 = smov 0   ;;  %s5990_s12 = smov 0  }
   0x4   :  { %s5992_s13 = smov 0  }
   0x5 LB: > { %s6004_s8 = sadd.s32 4294967295, %s5932_s13   ;;  %s6007_s14 = sadd.s32 1, %s5932_s13   ;;  %s5932_s13 = sphi %s5992_s13, %s9759_s13   ;;  %s5928_s12 = sphi %s5990_s12, %s9758_s12   ;;  %s5924_s11 = sphi %s5988_s11, %s9757_s11  }
   0x6   : > { %s88_s15 = ssub.s32 %s5932_s13, %s6007_s14  ;;  %s91_s16 = sadd.s32 1, %s5928_s12 }
   0x7   : > { %p89_p0 = scmp.eq.s32.totalorder %s88_s15, 0  ;;  %p98_p1 = scmp.ne.s32.totalorder %s5928_s12, %s5924_s11 }
   0x8   : > { %p99_p2 = scmp.eq.s32.totalorder %s5932_s13, 0  ;;  %p4448_p4 = scmp.ge.s32.totalorder %s5932_s13, 2 }
   0x9   : > { %s6016_s17 = scalar_select %p89_p0, %s5928_s12, %s91_s16  }
   0xa   : > { %p100_p3 = por %p99_p2, %p98_p1  ;;  %278 = sbr.rel (%p4448_p4) target bundleno = 29 (0x1d), region = 40 }
   0xf   : > { %281 = sbr.rel (!%p100_p3) target bundleno = 29 (0x1d), region = 44  ;;  %s283_s18 = sand.u32 (%p100_p3), 1, %s5928_s12  }
  0x10   : > { %s5308_s19 = smul.u32 (%p100_p3), 20, %s5932_s13 }
  0x11   : > { %s5495_s20 = smul.u32 (%p100_p3), 60, %s283_s18 }
  0x12   : > { %s288_s23 = scalar_lea.vmem (%p100_p3), %s9464_s3, %s5308_s19 }
  0x13   : > { %v303_v1 = vld [vmem:[%s288_s23] sm:$0xff] (%p100_p3)  ;;  %v305_v2 = vld [vmem:[%s288_s23 + $0x8] sm:$0xff] (%p100_p3)  ;;  %s285_s24 = scalar_lea.vmem (%p100_p3), [#allocation5], %s5495_s20  ;;  %v309_v4 = vld [vmem:[%s288_s23 + $0x30] sm:$0xff] (%p100_p3) }
  0x14   : > { %v307_v3 = vld [vmem:[%s288_s23 + $0x28] sm:$0xff]  ;;  %304 = vst [vmem:[%s285_s24] sm:$0xff] %v303_v1  ;;  %v311_v5 = vld [vmem:[%s288_s23 + $0x50] sm:$0xff]  ;;  %v313_v6 = vld [vmem:[%s288_s23 + $0x58] sm:$0xff] }
  0x15   : > { %306 = vst [vmem:[%s285_s24 + $0x8] sm:$0xff] %v305_v2  ;;  %v4450_v7 = vld [vmem:[%s288_s23 + $0x10] sm:$0xf]  ;;  %v4452_v8 = vld [vmem:[%s288_s23 + $0x38] sm:$0xf] }
  0x16   : > { %308 = vst [vmem:[%s285_s24 + $0x14] sm:$0xff] %v307_v3  ;;  %v4454_v9 = vld [vmem:[%s288_s23 + $0x60] sm:$0xf] }
  0x17   : > { %310 = vst [vmem:[%s285_s24 + $0x1c] sm:$0xff] %v309_v4 }
  0x18   : > { %312 = vst [vmem:[%s285_s24 + $0x28] sm:$0xff] %v311_v5 }
  0x19   : > { %314 = vst [vmem:[%s285_s24 + $0x30] sm:$0xff] %v313_v6 }
  0x1a   : > { %4451 = vst [vmem:[%s285_s24 + $0x10] sm:$0xf] %v4450_v7 }
  0x1b   : > { %4453 = vst [vmem:[%s285_s24 + $0x24] sm:$0xf] %v4452_v8 }
  0x1c   : > { %4455 = vst [vmem:[%s285_s24 + $0x38] sm:$0xf] %v4454_v9 }
  0x1d PF: > { %p4456_p5 = scmp.ge.s32.totalorder %s5932_s13, 1  ;;  %p351_p6 = scmp.lt.s32.totalorder %s5932_s13, 3 }
  0x1f   : > { %p352_p7 = pnand %p4456_p5, %p351_p6 }
  0x20   : > { %s358_s25 = sand.u32 (!%p352_p7), 1, %s5924_s11   ;;  %s399_s26 = smul.u32 (!%p352_p7), 5, %s6004_s8 }
  0x21   : > { %355 = sbr.rel (%p352_p7) target bundleno = 1293 (0x50d), region = 78  ;;  %p4459_p10 = scmp.ne.s32.totalorder (!%p352_p7), %s6004_s8, 0 }
  0x22   : > { %s5496_s27 = smul.u32 (!%p352_p7), 60, %s358_s25  ;;  %p400_p8 = scmp.lt.s32.totalorder (!%p352_p7), %s399_s26, 9 }
  0x23   : > { %s404_s28 = smul.u32 (!%p352_p7), 80, %s6004_s8 }
  0x24   : > { %s6039_s19 = scalar_lea.vmem (!%p352_p7), [#allocation5], %s5496_s27 }
  0x25   : > { %p405_p9 = scmp.lt.s32.totalorder (!%p352_p7), %s404_s28, 159 }
  0x26   : > { %s9761_s26 = smov (!%p400_p8, %s399_s26), 9  ;;  %415 = sbr.rel (%p4459_p10) target bundleno = 274 (0x112), region = 86 }
  0x27   : > { %s6032_s10 = scalar_lea.vmem %s9465_s4, %s9761_s26  ;;  %s9763_s28 = smov (!%p405_p9, %s404_s28), 159 }
  0x28   : > { %s5309_s15 = sshll.u32 %s9763_s28, 4 }
  0x29   : > { %s6037_s18 = scalar_lea.vmem %s9466_s5, %s5309_s15 }
  0x2b   : > { %v435_v10 = vld [vmem:[%s9462_s1 + $0x18] sm:$0x7]  ;;  %vm489_vm0 = vcmask 1042432   ;;  %v434_v11 = vld [vmem:[%s9462_s1 + $0x10] sm:$0xff]  ;;  %v433_v12 = vld [vmem:[%s9462_s1 + $0x8] sm:$0xff]  ;;  %vm440_vm1 = vcmask 220160  }
  0x2c   : > { %4460 = vmatpush.msk.msra.mxu0 %vm489_vm0, %v435_v10  ;;  %5483 = vmatpush.msk.msra.mxu1 %vm489_vm0, %v435_v10  ;;  %v432_v13 = vld [vmem:[%s9462_s1] sm:$0xff]  ;;  %v417_v18 = vld [vmem:[%s9461_s0 + $0x8] sm:$0xff]  ;;  %v418_v22 = vld [vmem:[%s9461_s0 + $0x10] sm:$0xff]  ;;  %vm894_vm7 = vcmask 191488  }
  0x2d   : > { %5484 = vmatpush.msk.msra.mxu2 %vm489_vm0, %v435_v10  ;;  %5485 = vmatpush.msk.msra.mxu3 %vm489_vm0, %v435_v10  ;;  %v416_v14 = vld [vmem:[%s9461_s0] sm:$0xff]  ;;  %v421_v19 = vld [vmem:[%s9461_s0 + $0x28] sm:$0xff]  ;;  %v422_v23 = vld [vmem:[%s9461_s0 + $0x30] sm:$0xff] }
  0x2e   : > { %506 = vmatpush.msra.mxu0 %v434_v11  ;;  %5486 = vmatpush.msra.mxu1 %v434_v11  ;;  %v420_v15 = vld [vmem:[%s9461_s0 + $0x20] sm:$0xff]  ;;  %v425_v20 = vld [vmem:[%s9461_s0 + $0x48] sm:$0xff]  ;;  %v426_v24 = vld [vmem:[%s9461_s0 + $0x50] sm:$0xff] }
  0x2f   : > { %5487 = vmatpush.msra.mxu2 %v434_v11  ;;  %5488 = vmatpush.msra.mxu3 %v434_v11  ;;  %v424_v16 = vld [vmem:[%s9461_s0 + $0x40] sm:$0xff]  ;;  %v429_v21 = vld [vmem:[%s9461_s0 + $0x68] sm:$0xff]  ;;  %v430_v25 = vld [vmem:[%s9461_s0 + $0x70] sm:$0xff] }
  0x30   : > { %507 = vmatpush.msra.mxu0 %v433_v12  ;;  %5489 = vmatpush.msra.mxu1 %v433_v12  ;;  %v428_v17 = vld [vmem:[%s9461_s0 + $0x60] sm:$0xff]  ;;  %v419_v26 = vld [vmem:[%s9461_s0 + $0x18] sm:$0xff] }
  0x31   : > { %5490 = vmatpush.msra.mxu2 %v433_v12  ;;  %5491 = vmatpush.msra.mxu3 %v433_v12  ;;  %v423_v27 = vld [vmem:[%s9461_s0 + $0x38] sm:$0xff]  ;;  %v6121_v30 = vld [vmem:[%s9463_s2] ss:$0 sm:$0xff] }
  0x32   : > { %508 = vmatpush.msra.mxu0 %v432_v13  ;;  %5492 = vmatpush.msra.mxu1 %v432_v13  ;;  %v427_v28 = vld [vmem:[%s9461_s0 + $0x58] sm:$0xff] }
  0x33   : > { %5493 = vmatpush.msra.mxu2 %v432_v13  ;;  %5494 = vmatpush.msra.mxu3 %v432_v13  ;;  %v431_v29 = vld [vmem:[%s9461_s0 + $0x78] sm:$0xff] }
  0x34   : > { %4461 = vmatmul.msk.f32.vlgmr.msra.gmra.mxu0 %vm440_vm1, %v416_v14  ;;  %4465 = vmatmul.msk.f32.vlgmr.msra.gmra.mxu1 %vm440_vm1, %v420_v15 }
  0x35   : > { %4469 = vmatmul.msk.f32.vlgmr.msra.gmra.mxu2 %vm440_vm1, %v424_v16  ;;  %4473 = vmatmul.msk.f32.vlgmr.msra.gmra.mxu3 %vm440_vm1, %v428_v17 }
  0x3c   : > { %4462 = vmatmul.msk.f32.gmra.mxu0 %vm440_vm1, %v417_v18  ;;  %4466 = vmatmul.msk.f32.gmra.mxu1 %vm440_vm1, %v421_v19 }
  0x3d   : > { %4470 = vmatmul.msk.f32.gmra.mxu2 %vm440_vm1, %v425_v20  ;;  %4474 = vmatmul.msk.f32.gmra.mxu3 %vm440_vm1, %v429_v21 }
  0x44   : > { %4463 = vmatmul.msk.f32.gmra.mxu0 %vm440_vm1, %v418_v22  ;;  %4467 = vmatmul.msk.f32.gmra.mxu1 %vm440_vm1, %v422_v23 }
  0x45   : > { %4471 = vmatmul.msk.f32.gmra.mxu2 %vm440_vm1, %v426_v24  ;;  %4475 = vmatmul.msk.f32.gmra.mxu3 %vm440_vm1, %v430_v25 }
  0x4c   : > { %4464 = vmatmul.msk.f32.gmra.mxu0 %vm440_vm1, %v419_v26  ;;  %4468 = vmatmul.msk.f32.gmra.mxu1 %vm440_vm1, %v423_v27 }
  0x4d   : > { %4472 = vmatmul.msk.f32.gmra.mxu2 %vm440_vm1, %v427_v28  ;;  %4476 = vmatmul.msk.f32.gmra.mxu3 %vm440_vm1, %v431_v29 }
  0xb1   : > { %v510_v31 = vpop.f32.mrf.mxu0  ;;  %v522_v32 = vpop.f32.mrf.mxu1 }
  0xb2   : > { %v6124_v33 = vadd.f32 %v6121_v30, %v510_v31  ;;  %v6127_v34 = vadd.f32 %v6121_v30, %v522_v32 }
  0xb4   : > { %v4477_v35 = vmul.f32 -1.442695, %v6124_v33  ;;  %v4481_v36 = vmul.f32 -1.442695, %v6127_v34 }
  0xb6   : > { %5523 = vpow2.f32 %v4477_v35 }
  0xb7   : > { %5525 = vpow2.f32 %v4481_v36 }
  0xb8   : > { %v534_v37 = vpop.f32.mrf.mxu2  ;;  %v546_v38 = vpop.f32.mrf.mxu3 }
  0xb9   : > { %v6132_v39 = vadd.f32 %v6121_v30, %v534_v37  ;;  %v6135_v40 = vadd.f32 %v6121_v30, %v546_v38  ;;  %v513_v41 = vpop.f32.mrf.mxu0  ;;  %v525_v42 = vpop.f32.mrf.mxu1 }
  0xba   : > { %v6138_v43 = vadd.f32 %v6121_v30, %v513_v41  ;;  %v6141_v44 = vadd.f32 %v6121_v30, %v525_v42 }
  0xbb   : > { %v4485_v45 = vmul.f32 -1.442695, %v6132_v39  ;;  %v4489_v46 = vmul.f32 -1.442695, %v6135_v40 }
  0xbc   : > { %v5524_v47 = vpop.eup %5523  ;;  %v4478_v50 = vmul.f32 -1.442695, %v6138_v43  ;;  %v4482_v52 = vmul.f32 -1.442695, %v6141_v44 }
  0xbd   : > { %v5526_v48 = vpop.eup %5525  ;;  %v6145_v49 = vadd.f32 1.0, %v5524_v47  ;;  %5527 = vpow2.f32 %v4485_v45 }
  0xbe   : > { %v6148_v51 = vadd.f32 1.0, %v5526_v48  ;;  %5529 = vpow2.f32 %v4489_v46 }
  0xbf   : > { %5531 = vrcp.f32 %v6145_v49  ;;  %v631_v57 = vand.u32 2147483647, %v6145_v49  ;;  %v633_v58 = vand.u32 2147483648, %v6145_v49  ;;  %vm627_vm2 = vweird.f32 %v6145_v49 }
  0xc0   : > { %5533 = vrcp.f32 %v6148_v51  ;;  %v537_v53 = vpop.f32.mrf.mxu2  ;;  %v549_v54 = vpop.f32.mrf.mxu3  ;;  %v691_v60 = vand.u32 2147483647, %v6148_v51  ;;  %v693_v61 = vand.u32 2147483648, %v6148_v51  ;;  %vm687_vm3 = vweird.f32 %v6148_v51 }
  0xc1   : > { %5535 = vpow2.f32 %v4478_v50  ;;  %v6154_v55 = vadd.f32 %v6121_v30, %v537_v53  ;;  %v516_v56 = vpop.f32.mrf.mxu0  ;;  %v6162_v63 = vadd.f32 %v6121_v30, %v549_v54  ;;  %v528_v5 = vpop.f32.mrf.mxu1  ;;  %vm6174_vm4 = vcmp.eq.f32.partialorder %v631_v57, 8.507059e+37 }
  0xc2   : > { %5537 = vpow2.f32 %v4482_v52  ;;  %v6167_v2 = vadd.f32 %v6121_v30, %v516_v56  ;;  %v634_v9 = vor.u32 1.1754944e-38, %v633_v58  ;;  %vm6180_vm5 = vcmp.eq.f32.partialorder %v691_v60, 8.507059e+37 }
  0xc3   : > { %v5528_v59 = vpop.eup %5527  ;;  %v4486_v62 = vmul.f32 -1.442695, %v6154_v55  ;;  %v694_v13 = vor.u32 1.1754944e-38, %v693_v61  ;;  %v4490_v14 = vmul.f32 -1.442695, %v6162_v63  ;;  %v6190_v18 = vadd.f32 %v6121_v30, %v528_v5 }
  0xc4   : > { %v5530_v0 = vpop.eup %5529  ;;  %v6164_v1 = vadd.f32 1.0, %v5528_v59  ;;  %v6187_v17 = vmul.f32 -1.442695, %v6167_v2 }
  0xc5   : > { %v5532_v3 = vpop.eup %5531  ;;  %v6171_v4 = vadd.f32 1.0, %v5530_v0  ;;  %v6203_v32 = vmul.f32 -1.442695, %v6190_v18 }
  0xc6   : > { %v5534_v6 = vpop.eup %5533  ;;  %v623_v7 = vmul.f32 %v5532_v3, %v6145_v49  ;;  %5539 = vrcp.f32 %v6164_v1  ;;  %vm628_vm6 = vweird.f32 %v5532_v3  ;;  %v751_v20 = vand.u32 2147483647, %v6164_v1 }
  0xc7   : > { %v5536_v10 = vpop.eup %5535  ;;  %v683_v11 = vmul.f32 %v5534_v6, %v6148_v51  ;;  %5541 = vpow2.f32 %v4486_v62  ;;  %v753_v21 = vand.u32 2147483648, %v6164_v1  ;;  %v813_v23 = vand.u32 2147483648, %v6171_v4  ;;  %vm629_vm10 = vmor %vm627_vm2, %vm628_vm6 }
  0xc8   : > { %v5538_v15 = vpop.eup %5537  ;;  %v624_v16 = vsub.f32 1.0, %v623_v7  ;;  %5543 = vrcp.f32 %v6171_v4  ;;  %v6195_v24 = vadd.f32 1.0, %v5536_v10  ;;  %vm688_vm8 = vweird.f32 %v5534_v6  ;;  %v540_v28 = vpop.f32.mrf.mxu2 }
  0xc9   : > { %v684_v19 = vsub.f32 1.0, %v683_v11  ;;  %v6197_v25 = vadd.f32 1.0, %v5538_v15  ;;  %v811_v27 = vand.u32 2147483647, %v6171_v4  ;;  %5545 = vpow2.f32 %v4490_v14  ;;  %vm689_vm13 = vmor %vm687_vm3, %vm688_vm8 }
  0xca   : > { %v625_v22 = vmul.f32 %v5532_v3, %v624_v16  ;;  %vm747_vm9 = vweird.f32 %v6164_v1  ;;  %5547 = vrcp.f32 %v6195_v24  ;;  %vm6209_vm11 = vcmp.eq.f32.partialorder %v751_v20, 8.507059e+37 }
  0xcb   : > { %v685_v26 = vmul.f32 %v5534_v6, %v684_v19  ;;  %v754_v41 = vor.u32 1.1754944e-38, %v753_v21  ;;  %vm807_vm12 = vweird.f32 %v6171_v4  ;;  %v814_v46 = vor.u32 1.1754944e-38, %v813_v23 }
  0xcc   : > { %v5540_v29 = vpop.eup %5539  ;;  %v626_v31 = vadd.f32 %v5532_v3, %v625_v22  ;;  %5549 = vrcp.f32 %v6197_v25  ;;  %v6219_v47 = vadd.f32 %v6121_v30, %v540_v28  ;;  %vm6224_vm14 = vcmp.eq.f32.partialorder %v811_v27, 8.507059e+37 }
  0xcd   : > { %v5542_v35 = vpop.eup %5541  ;;  %v686_v36 = vadd.f32 %v5534_v6, %v685_v26  ;;  %v743_v37 = vmul.f32 %v5540_v29, %v6164_v1  ;;  %vm642_vm15 = vweird.f32 %v6195_v24  ;;  %v646_v56 = vand.u32 2147483647, %v6195_v24 }
  0xce   : > { %v5544_v42 = vpop.eup %5543  ;;  %v630_v45 = vsel %vm629_vm10, %v5532_v3, %v626_v31  ;;  %vm748_vm0 = vweird.f32 %v5540_v29  ;;  %v648_v0 = vand.u32 2147483648, %v6195_v24  ;;  %v6235_v3 = vadd.f32 1.0, %v5542_v35 }
  0xcf   : > { %v635_v48 = vsel %vm6174_vm4, %v634_v9, %v630_v45  ;;  %v690_v49 = vsel %vm689_vm13, %v5534_v6, %v686_v36  ;;  %v744_v50 = vsub.f32 1.0, %v743_v37  ;;  %v803_v52 = vmul.f32 %v5544_v42, %v6171_v4  ;;  %v5546_v57 = vpop.eup %5545  ;;  %vm749_vm2 = vmor %vm747_vm9, %vm748_vm0 }
  0xd0   : > { %v862_v51 = vmul.f32 %v635_v48, %v6124_v33  ;;  %v695_v54 = vsel %vm6180_vm5, %v694_v13, %v690_v49  ;;  %v5548_v61 = vpop.eup %5547  ;;  %vm808_vm1 = vweird.f32 %v5544_v42  ;;  %vm6241_vm3 = vcmp.eq.f32.partialorder %v646_v56, 8.507059e+37 }
  0xd1   : > { %v866_v58 = vmul.f32 %v695_v54, %v6127_v34  ;;  %v745_v59 = vmul.f32 %v5540_v29, %v744_v50  ;;  %v804_v60 = vsub.f32 1.0, %v803_v52  ;;  %v638_v7 = vmul.f32 %v5548_v61, %v6195_v24  ;;  %vm809_vm5 = vmor %vm807_vm12, %vm808_vm1  ;;  %v519_v50 = vpop.f32.mrf.mxu0  ;;  %v531_v54 = vpop.f32.mrf.mxu1 }
  0xd2   : > { %v878_v62 = vpack.c.bf16 %v862_v51, %v862_v51  ;;  %v5550_v8 = vpop.eup %5549  ;;  %vm702_vm4 = vweird.f32 %v6197_v25  ;;  %5551 = vrcp.f32 %v6235_v3  ;;  %v6247_v9 = vadd.f32 1.0, %v5546_v57 }
  0xd3   : > { %v882_v33 = vpack.c.bf16 %v866_v58, %v866_v58  ;;  %v746_v5 = vadd.f32 %v5540_v29, %v745_v59  ;;  %v805_v6 = vmul.f32 %v5544_v42, %v804_v60  ;;  %v639_v12 = vsub.f32 1.0, %v638_v7 }
  0xd4   : > { %895 = vst.msk [vmem:[#allocation2] sm:$0xf] %vm894_vm7, %v878_v62  ;;  %v698_v13 = vmul.f32 %v5550_v8, %v6197_v25  ;;  %vm643_vm6 = vweird.f32 %v5548_v61  ;;  %v706_v14 = vand.u32 2147483647, %v6197_v25  ;;  %v708_v15 = vand.u32 2147483648, %v6197_v25 }
  0xd5   : > { %899 = vst.msk [vmem:[#allocation2 + $0x10] sm:$0xf] %vm894_vm7, %v882_v33  ;;  %v750_v10 = vsel %vm749_vm2, %v5540_v29, %v746_v5  ;;  %v806_v11 = vadd.f32 %v5544_v42, %v805_v6  ;;  %v640_v20 = vmul.f32 %v5548_v61, %v639_v12  ;;  %vm703_vm8 = vweird.f32 %v5550_v8  ;;  %vm644_vm9 = vmor %vm642_vm15, %vm643_vm6 }
  0xd6   : > { %v755_v1 = vsel %vm6209_vm11, %v754_v41, %v750_v10  ;;  %v699_v21 = vsub.f32 1.0, %v698_v13  ;;  %v766_v23 = vand.u32 2147483647, %v6235_v3  ;;  %5553 = vrcp.f32 %v6247_v9  ;;  %v552_v41 = vpop.f32.mrf.mxu3  ;;  %vm704_vm12 = vmor %vm702_vm4, %vm703_vm8  ;;  %v543_v10 = vpop.f32.mrf.mxu2 }
  0xd7   : > { %v870_v16 = vmul.f32 %v755_v1, %v6132_v39  ;;  %v810_v19 = vsel %vm809_vm5, %v5544_v42, %v806_v11  ;;  %v641_v27 = vadd.f32 %v5548_v61, %v640_v20  ;;  %v649_v39 = vor.u32 1.1754944e-38, %v648_v0 }
  0xd8   : > { %v815_v22 = vsel %vm6224_vm14, %v814_v46, %v810_v19  ;;  %v700_v28 = vmul.f32 %v5550_v8, %v699_v21  ;;  %v5552_v29 = vpop.eup %5551  ;;  %vm6267_vm10 = vcmp.eq.f32.partialorder %v706_v14, 8.507059e+37  ;;  %v709_v35 = vor.u32 1.1754944e-38, %v708_v15 }
  0xd9   : > { %v886_v4 = vpack.c.bf16 %v870_v16, %v870_v16  ;;  %v874_v26 = vmul.f32 %v815_v22, %v6135_v40  ;;  %vm762_vm11 = vweird.f32 %v6235_v3  ;;  %v645_v37 = vsel %vm644_vm9, %v5548_v61, %v641_v27 }
  0xda   : > { %v701_v40 = vadd.f32 %v5550_v8, %v700_v28  ;;  %v758_v38 = vmul.f32 %v5552_v29, %v6235_v3  ;;  %v650_v24 = vsel %vm6241_vm3, %v649_v39, %v645_v37  ;;  %vm763_vm13 = vweird.f32 %v5552_v29 }
  0xdb   : > { %903 = vst.msk [vmem:[#allocation2 + $0x20] sm:$0xf] %vm894_vm7, %v886_v4  ;;  %v890_v36 = vpack.c.bf16 %v874_v26, %v874_v26  ;;  %vm6279_vm14 = vcmp.eq.f32.partialorder %v766_v23, 8.507059e+37  ;;  %v768_v45 = vand.u32 2147483648, %v6235_v3  ;;  %v863_v46 = vmul.f32 %v650_v24, %v6138_v43  ;;  %vm764_vm15 = vmor %vm762_vm11, %vm763_vm13 }
  0xdc   : > { %v705_v48 = vsel %vm704_vm12, %v5550_v8, %v701_v40  ;;  %v759_v49 = vsub.f32 1.0, %v758_v38  ;;  %5555 = vpow2.f32 %v6187_v17  ;;  %v5554_v52 = vpop.eup %5553  ;;  %v4487_v53 = vmul.f32 -1.442695, %v6219_v47 }
  0xdd   : > { %907 = vst.msk [vmem:[#allocation2 + $0x30] sm:$0xf] %vm894_vm7, %v890_v36  ;;  %v710_v25 = vsel %vm6267_vm10, %v709_v35, %v705_v48  ;;  %5557 = vpow2.f32 %v6203_v32  ;;  %v6292_v51 = vadd.f32 %v6121_v30, %v552_v41  ;;  %v879_v56 = vpack.c.bf16 %v863_v46, %v863_v46 }
  0xde   : > { %v867_v43 = vmul.f32 %v710_v25, %v6141_v44  ;;  %v760_v57 = vmul.f32 %v5552_v29, %v759_v49  ;;  %v818_v58 = vmul.f32 %v5554_v52, %v6247_v9  ;;  %v769_v17 = vor.u32 1.1754944e-38, %v768_v45  ;;  %v555_v15 = vpop.f32.mrf.mxu3 }
  0xdf   : > { %5559 = vpow2.f32 %v4487_v53  ;;  %v4491_v59 = vmul.f32 -1.442695, %v6292_v51  ;;  %v6298_v60 = vadd.f32 %v6121_v30, %v519_v50  ;;  %896 = vst.msk [vmem:[#allocation2 + $0x4] sm:$0xf] %vm894_vm7, %v879_v56  ;;  %v6302_v0 = vadd.f32 %v6121_v30, %v531_v54 }
  0xe0   : > { %v883_v32 = vpack.c.bf16 %v867_v43, %v867_v43  ;;  %v761_v61 = vadd.f32 %v5552_v29, %v760_v57  ;;  %v819_v62 = vsub.f32 1.0, %v818_v58  ;;  %v826_v44 = vand.u32 2147483647, %v6247_v9 }
  0xe1   : > { %v828_v33 = vand.u32 2147483648, %v6247_v9  ;;  %5561 = vpow2.f32 %v4491_v59  ;;  %v4480_v5 = vmul.f32 -1.442695, %v6298_v60  ;;  %vm823_vm0 = vweird.f32 %v5554_v52 }
  0xe2   : > { %v5556_v6 = vpop.eup %5555  ;;  %900 = vst.msk [vmem:[#allocation2 + $0x14] sm:$0xf] %vm894_vm7, %v883_v32  ;;  %v765_v7 = vsel %vm764_vm15, %v5552_v29, %v761_v61  ;;  %v820_v8 = vmul.f32 %v5554_v52, %v819_v62  ;;  %v4484_v34 = vmul.f32 -1.442695, %v6302_v0  ;;  %vm822_vm1 = vweird.f32 %v6247_v9 }
  0xe3   : > { %v5558_v11 = vpop.eup %5557  ;;  %v770_v3 = vsel %vm6279_vm14, %v769_v17, %v765_v7  ;;  %v6315_v12 = vadd.f32 1.0, %v5556_v6  ;;  %5563 = vpow2.f32 %v4480_v5  ;;  %vm824_vm2 = vmor %vm822_vm1, %vm823_vm0  ;;  %v829_v19 = vor.u32 1.1754944e-38, %v828_v33 }
  0xe4   : > { %v871_v13 = vmul.f32 %v770_v3, %v6154_v55  ;;  %v821_v1 = vadd.f32 %v5554_v52, %v820_v8  ;;  %v6318_v14 = vadd.f32 1.0, %v5558_v11  ;;  %5565 = vpow2.f32 %v4484_v34 }
  0xe5   : > { %v5560_v16 = vpop.eup %5559  ;;  %5567 = vrcp.f32 %v6315_v12  ;;  %v6322_v20 = vadd.f32 %v6121_v30, %v543_v10  ;;  %vm827_vm3 = vcmp.eq.f32.partialorder %v826_v44, 8.507059e+37  ;;  %v661_v23 = vand.u32 2147483647, %v6315_v12 }
  0xe6   : > { %v887_v21 = vpack.c.bf16 %v871_v13, %v871_v13  ;;  %v825_v9 = vsel %vm824_vm2, %v5554_v52, %v821_v1  ;;  %5569 = vrcp.f32 %v6318_v14  ;;  %v6327_v4 = vadd.f32 %v6121_v30, %v555_v15 }
  0xe7   : > { %v5562_v22 = vpop.eup %5561  ;;  %v830_v55 = vsel %vm827_vm3, %v829_v19, %v825_v9  ;;  %v663_v27 = vand.u32 2147483648, %v6315_v12  ;;  %v6332_v28 = vadd.f32 1.0, %v5560_v16  ;;  %v721_v31 = vand.u32 2147483647, %v6318_v14 }
  0xe8   : > { %904 = vst.msk [vmem:[#allocation2 + $0x24] sm:$0xf] %vm894_vm7, %v887_v21  ;;  %v875_v26 = vmul.f32 %v830_v55, %v6162_v63  ;;  %v6334_v29 = vadd.f32 1.0, %v5562_v22  ;;  %v723_v35 = vand.u32 2147483648, %v6318_v14  ;;  %v4488_v36 = vmul.f32 -1.442695, %v6322_v20 }
  0xe9   : > { %v5564_v39 = vpop.eup %5563  ;;  %5571 = vrcp.f32 %v6332_v28  ;;  %vm657_vm4 = vweird.f32 %v6315_v12  ;;  %v4492_v63 = vmul.f32 -1.442695, %v6327_v4  ;;  %vm6345_vm5 = vcmp.eq.f32.partialorder %v661_v23, 8.507059e+37 }
  0xea   : > { %v5566_v37 = vpop.eup %5565  ;;  %v891_v30 = vpack.c.bf16 %v875_v26, %v875_v26  ;;  %5573 = vrcp.f32 %v6334_v29  ;;  %v664_v42 = vor.u32 1.1754944e-38, %v663_v27  ;;  %vm717_vm6 = vweird.f32 %v6318_v14 }
  0xeb   : > { %v5568_v40 = vpop.eup %5567  ;;  %vm6351_vm8 = vcmp.eq.f32.partialorder %v721_v31, 8.507059e+37  ;;  %v724_v48 = vor.u32 1.1754944e-38, %v723_v35  ;;  %5575 = vpow2.f32 %v4488_v36  ;;  %v781_v50 = vand.u32 2147483647, %v6332_v28 }
  0xec   : > { %v5570_v38 = vpop.eup %5569  ;;  %908 = vst.msk [vmem:[#allocation2 + $0x34] sm:$0xf] %vm894_vm7, %v891_v30  ;;  %v653_v41 = vmul.f32 %v5568_v40, %v6315_v12  ;;  %v783_v52 = vand.u32 2147483648, %v6332_v28  ;;  %v6357_v25 = vadd.f32 1.0, %v5564_v39  ;;  %vm777_vm9 = vweird.f32 %v6332_v28 }
  0xed   : > { %v713_v45 = vmul.f32 %v5570_v38, %v6318_v14  ;;  %v841_v54 = vand.u32 2147483647, %v6334_v29  ;;  %v6361_v56 = vadd.f32 1.0, %v5566_v37  ;;  %5577 = vpow2.f32 %v4492_v63 }
  0xee   : > { %v654_v49 = vsub.f32 1.0, %v653_v41  ;;  %vm658_vm10 = vweird.f32 %v5568_v40  ;;  %v843_v58 = vand.u32 2147483648, %v6334_v29  ;;  %5579 = vrcp.f32 %v6357_v25 }
  0xef   : > { %v714_v53 = vsub.f32 1.0, %v713_v45  ;;  %v5572_v43 = vpop.eup %5571  ;;  %vm718_vm11 = vweird.f32 %v5570_v38  ;;  %vm837_vm12 = vweird.f32 %v6334_v29  ;;  %vm6367_vm13 = vcmp.eq.f32.partialorder %v781_v50, 8.507059e+37  ;;  %vm659_vm14 = vmor %vm657_vm4, %vm658_vm10 }
  0xf0   : > { %v655_v57 = vmul.f32 %v5568_v40, %v654_v49  ;;  %v5574_v17 = vpop.eup %5573  ;;  %v773_v32 = vmul.f32 %v5572_v43, %v6332_v28  ;;  %v784_v44 = vor.u32 1.1754944e-38, %v783_v52  ;;  %vm6374_vm15 = vcmp.eq.f32.partialorder %v841_v54, 8.507059e+37  ;;  %vm719_vm0 = vmor %vm717_vm6, %vm718_vm11 }
  0xf1   : > { %v715_v59 = vmul.f32 %v5570_v38, %v714_v53  ;;  %v833_v33 = vmul.f32 %v5574_v17, %v6334_v29  ;;  %v5576_v5 = vpop.eup %5575  ;;  %5581 = vrcp.f32 %v6361_v56  ;;  %v844_v11 = vor.u32 1.1754944e-38, %v843_v58 }
  0xf2   : > { %v656_v61 = vadd.f32 %v5568_v40, %v655_v57  ;;  %v774_v7 = vsub.f32 1.0, %v773_v32  ;;  %vm672_vm1 = vweird.f32 %v6357_v25  ;;  %vm778_vm2 = vweird.f32 %v5572_v43 }
  0xf3   : > { %v716_v6 = vadd.f32 %v5570_v38, %v715_v59  ;;  %v834_v10 = vsub.f32 1.0, %v833_v33  ;;  %v5578_v3 = vpop.eup %5577  ;;  %vm838_vm3 = vweird.f32 %v5574_v17  ;;  %v676_v55 = vand.u32 2147483647, %v6357_v25  ;;  %vm779_vm4 = vmor %vm777_vm9, %vm778_vm2 }
  0xf4   : > { %v660_v34 = vsel %vm659_vm14, %v5568_v40, %v656_v61  ;;  %v775_v1 = vmul.f32 %v5572_v43, %v774_v7  ;;  %v5580_v15 = vpop.eup %5579  ;;  %v678_v27 = vand.u32 2147483648, %v6357_v25  ;;  %v6397_v36 = vadd.f32 1.0, %v5578_v3 }
  0xf5   : > { %v665_v12 = vsel %vm6345_vm5, %v664_v42, %v660_v34  ;;  %v720_v13 = vsel %vm719_vm0, %v5570_v38, %v716_v6  ;;  %v835_v21 = vmul.f32 %v5574_v17, %v834_v10  ;;  %v668_v22 = vmul.f32 %v5580_v15, %v6357_v25  ;;  %vm839_vm5 = vmor %vm837_vm12, %vm838_vm3 }
  0xf6   : > { %v864_v16 = vmul.f32 %v665_v12, %v6167_v2  ;;  %v725_v19 = vsel %vm6351_vm8, %v724_v48, %v720_v13  ;;  %v776_v9 = vadd.f32 %v5572_v43, %v775_v1  ;;  %v6393_v2 = vadd.f32 1.0, %v5576_v5 }
  0xf7   : > { %v868_v14 = vmul.f32 %v725_v19, %v6190_v18  ;;  %v836_v26 = vadd.f32 %v5574_v17, %v835_v21  ;;  %v5582_v39 = vpop.eup %5581  ;;  %v669_v18 = vsub.f32 1.0, %v668_v22  ;;  %vm673_vm6 = vweird.f32 %v5580_v15 }
  0xf8   : > { %v880_v23 = vpack.c.bf16 %v864_v16, %v864_v16  ;;  %v780_v35 = vsel %vm779_vm4, %v5572_v43, %v776_v9  ;;  %v728_v30 = vmul.f32 %v5582_v39, %v6361_v56  ;;  %5583 = vrcp.f32 %v6393_v2  ;;  %vm674_vm9 = vmor %vm672_vm1, %vm673_vm6 }
  0xf9   : > { %v884_v31 = vpack.c.bf16 %v868_v14, %v868_v14  ;;  %v785_v28 = vsel %vm6367_vm13, %v784_v44, %v780_v35  ;;  %v840_v37 = vsel %vm839_vm5, %v5574_v17, %v836_v26  ;;  %v670_v63 = vmul.f32 %v5580_v15, %v669_v18 }
  0xfa   : > { %897 = vst.msk [vmem:[#allocation2 + $0x8] sm:$0xf] %vm894_vm7, %v880_v23  ;;  %v872_v40 = vmul.f32 %v785_v28, %v6219_v47  ;;  %v845_v29 = vsel %vm6374_vm15, %v844_v11, %v840_v37  ;;  %v679_v41 = vor.u32 1.1754944e-38, %v678_v27  ;;  %v729_v24 = vsub.f32 1.0, %v728_v30 }
  0xfb   : > { %901 = vst.msk [vmem:[#allocation2 + $0x18] sm:$0xf] %vm894_vm7, %v884_v31  ;;  %v876_v38 = vmul.f32 %v845_v29, %v6292_v51  ;;  %vm732_vm8 = vweird.f32 %v6361_v56  ;;  %v671_v45 = vadd.f32 %v5580_v15, %v670_v63  ;;  %v738_v46 = vand.u32 2147483648, %v6361_v56 }
  0xfc   : > { %v888_v42 = vpack.c.bf16 %v872_v40, %v872_v40  ;;  %5585 = vrcp.f32 %v6397_v36  ;;  %v730_v47 = vmul.f32 %v5582_v39, %v729_v24  ;;  %vm733_vm10 = vweird.f32 %v5582_v39 }
  0xfd   : > { %v892_v48 = vpack.c.bf16 %v876_v38, %v876_v38  ;;  %v736_v49 = vand.u32 2147483647, %v6361_v56  ;;  %v675_v51 = vsel %vm674_vm9, %v5580_v15, %v671_v45  ;;  %vm677_vm11 = vcmp.eq.f32.partialorder %v676_v55, 8.507059e+37  ;;  %vm734_vm12 = vmor %vm732_vm8, %vm733_vm10 }
  0xfe   : > { %905 = vst.msk [vmem:[#allocation2 + $0x28] sm:$0xf] %vm894_vm7, %v888_v42  ;;  %v680_v50 = vsel %vm677_vm11, %v679_v41, %v675_v51  ;;  %v731_v52 = vadd.f32 %v5582_v39, %v730_v47  ;;  %v5584_v53 = vpop.eup %5583  ;;  %v739_v25 = vor.u32 1.1754944e-38, %v738_v46  ;;  %v5934_v43 = vmov 0.0  }
  0xff   : > { %909 = vst.msk [vmem:[#allocation2 + $0x38] sm:$0xf] %vm894_vm7, %v892_v48  ;;  %v865_v54 = vmul.f32 %v680_v50, %v6298_v60  ;;  %vm737_vm13 = vcmp.eq.f32.partialorder %v736_v49, 8.507059e+37  ;;  %v788_v58 = vmul.f32 %v5584_v53, %v6393_v2  ;;  %v796_v60 = vand.u32 2147483647, %v6393_v2 }
 0x100   : > { %911 = vst [vmem:[#allocation3] sm:$0xff] %v5934_v43  ;;  %v735_v57 = vsel %vm734_vm12, %v5582_v39, %v731_v52  ;;  %v798_v56 = vand.u32 2147483648, %v6393_v2  ;;  %vm793_vm14 = vweird.f32 %v5584_v53  ;;  %vm792_vm15 = vweird.f32 %v6393_v2 }
 0x101   : > { %v881_v59 = vpack.c.bf16 %v865_v54, %v865_v54  ;;  %v740_v32 = vsel %vm737_vm13, %v739_v25, %v735_v57  ;;  %v789_v62 = vsub.f32 1.0, %v788_v58  ;;  %v858_v7 = vand.u32 2147483648, %v6397_v36  ;;  %vm794_vm1 = vmor %vm792_vm15, %vm793_vm14 }
 0x102   : > { %v5586_v17 = vpop.eup %5585  ;;  %v869_v61 = vmul.f32 %v740_v32, %v6302_v0  ;;  %v856_v34 = vand.u32 2147483647, %v6397_v36  ;;  %v799_v10 = vor.u32 1.1754944e-38, %v798_v56  ;;  %vm797_vm2 = vcmp.eq.f32.partialorder %v796_v60, 8.507059e+37 }
 0x103   : > { %v848_v44 = vmul.f32 %v5586_v17, %v6397_v36  ;;  %898 = vst.msk [vmem:[#allocation2 + $0xc] sm:$0xf] %vm894_vm7, %v881_v59  ;;  %v790_v5 = vmul.f32 %v5584_v53, %v789_v62  ;;  %vm853_vm0 = vweird.f32 %v5586_v17  ;;  %vm852_vm3 = vweird.f32 %v6397_v36 }
 0x104   : > { %v885_v33 = vpack.c.bf16 %v869_v61, %v869_v61  ;;  %vm854_vm4 = vmor %vm852_vm3, %vm853_vm0  ;;  %v859_v13 = vor.u32 1.1754944e-38, %v858_v7  ;;  %vm857_vm5 = vcmp.eq.f32.partialorder %v856_v34, 8.507059e+37 }
 0x105   : > { %v849_v6 = vsub.f32 1.0, %v848_v44  ;;  %v791_v0 = vadd.f32 %v5584_v53, %v790_v5 }
 0x106   : > { %902 = vst.msk [vmem:[#allocation2 + $0x1c] sm:$0xf] %vm894_vm7, %v885_v33 }
 0x107   : > { %v850_v8 = vmul.f32 %v5586_v17, %v849_v6  ;;  %v795_v11 = vsel %vm794_vm1, %v5584_v53, %v791_v0 }
 0x108   : > { %v800_v12 = vsel %vm797_vm2, %v799_v10, %v795_v11 }
 0x109   : > { %v851_v3 = vadd.f32 %v5586_v17, %v850_v8  ;;  %v873_v1 = vmul.f32 %v800_v12, %v6322_v20 }
 0x10b   : > { %v855_v15 = vsel %vm854_vm4, %v5586_v17, %v851_v3  ;;  %v889_v19 = vpack.c.bf16 %v873_v1, %v873_v1 }
 0x10c   : > { %v860_v16 = vsel %vm857_vm5, %v859_v13, %v855_v15 }
 0x10d   : > { %v877_v21 = vmul.f32 %v860_v16, %v6327_v4  ;;  %906 = vst.msk [vmem:[#allocation2 + $0x2c] sm:$0xf] %vm894_vm7, %v889_v19 }
 0x10f   : > { %v893_v14 = vpack.c.bf16 %v877_v21, %v877_v21 }
 0x111   : > { %910 = vst.msk [vmem:[#allocation2 + $0x3c] sm:$0xf] %vm894_vm7, %v893_v14 }
 0x112 PF: > { %v934_v20 = vld [vmem:[%s6039_s19 + $0x28] sm:$0xff]  ;;  %vm1053_vm6 = vcmask 1043456   ;;  %v935_v9 = vld [vmem:[%s6039_s19 + $0x30] sm:$0xff]  ;;  %v4527_v26 = vld [vmem:[%s6039_s19] sm:$0xf]  ;;  %vm1028_vm7 = vcmask 195584  }
 0x113   : > { %v1008_v4 = vunpack.c.l.b16 %v934_v20  ;;  %v1009_v22 = vunpack.c.h.b16 %v934_v20  ;;  %v1010_v55 = vunpack.c.l.b16 %v935_v9  ;;  %v1011_v23 = vunpack.c.h.b16 %v935_v9  ;;  %v5320_v27 = vld [vmem:[%s6039_s19 + $0x10] sm:$0xf0]  ;;  %v5318_v2 = vld [vmem:[%s6039_s19 + $0x4] sm:$0xf]  ;;  %v4529_v36 = vld [vmem:[%s6039_s19 + $0x14] sm:$0xf0] }
 0x114   : > { %v4535_v28 = vld [vmem:[%s6039_s19 + $0x8] sm:$0xf]  ;;  %v5321_v37 = vld [vmem:[%s6039_s19 + $0x18] sm:$0xf0]  ;;  %v5319_v30 = vld [vmem:[%s6039_s19 + $0xc] sm:$0xf]  ;;  %v4528_v42 = vor.u32 %v5320_v27, %v4527_v26  ;;  %v4532_v45 = vor.u32 %v5318_v2, %v4529_v36 }
 0x115   : > { %v1018_v39 = vpack.c.b16 %v1008_v4, %v1008_v4  ;;  %v1019_v31 = vpack.c.b16 %v1009_v22, %v1009_v22  ;;  %v1020_v35 = vpack.c.b16 %v1010_v55, %v1010_v55  ;;  %v1021_v18 = vpack.c.b16 %v1011_v23, %v1011_v23  ;;  %v4537_v40 = vld [vmem:[%s6039_s19 + $0x1c] sm:$0xf0]  ;;  %v936_v29 = vld [vmem:[%s6039_s19 + $0x38] sm:$0xf]  ;;  %v6466_v53 = vld [vmem:[#allocation2 + $0x10] sm:$0xff]  ;;  %p5305_p11 = scmp.ne.s32.totalorder %s6004_s8, 1 }
 0x116   : > { %v1012_v46 = vunpack.c.l.b16 %v936_v29  ;;  %v4536_v48 = vor.u32 %v5321_v37, %v4535_v28  ;;  %v4540_v47 = vor.u32 %v5319_v30, %v4537_v40  ;;  %v5310_v51 = vld [vmem:[#allocation2] sm:$0xff]  ;;  %v6456_v52 = vld [vmem:[#allocation2 + $0x8] sm:$0xff]  ;;  %v6476_v54 = vld [vmem:[#allocation2 + $0x18] sm:$0xff] }
 0x117   : > { %v1055_v63 = vsel %vm1053_vm6, %v1018_v39, 0  ;;  %v1058_v38 = vsel %vm1053_vm6, %v1019_v31, 0  ;;  %v1061_v41 = vsel %vm1053_vm6, %v1020_v35, 0  ;;  %v1064_v24 = vsel %vm1053_vm6, %v1021_v18, 0  ;;  %v4543_v25 = vld [vmem:[%s6039_s19 + $0x10] sm:$0xf] }
 0x118   : > { %1075 = vmatpush.bf16.msra.mxu0 %v1055_v63  ;;  %1124 = vmatpush.bf16.msra.mxu1 %v1058_v38  ;;  %v1022_v49 = vpack.c.b16 %v1012_v46, %v1012_v46  ;;  %v5322_v43 = vld [vmem:[%s6039_s19 + $0x20] sm:$0xf0]  ;;  %v6488_v58 = vld [vmem:[#allocation2 + $0x20] sm:$0xff]  ;;  %v5317_v32 = vld [vmem:[#allocation2 + $0x38] sm:$0xff] }
 0x119   : > { %1173 = vmatpush.bf16.msra.mxu2 %v1061_v41  ;;  %1222 = vmatpush.bf16.msra.mxu3 %v1064_v24  ;;  %v4544_v57 = vor.u32 %v5322_v43, %v4543_v25  ;;  %v6498_v17 = vld [vmem:[#allocation2 + $0x28] sm:$0xff]  ;;  %v6508_v59 = vld [vmem:[#allocation2 + $0x30] sm:$0xff]  ;;  %v937_v61 = vld [vmem:[%s6032_s10] sm:$0x1f] }
 0x11a   : > { %v1067_v50 = vsel %vm1053_vm6, %v1022_v49, 0  ;;  %v6523_v62 = vperm.slane %v937_v61, 0  ;;  %v6525_v44 = vperm.slane %v937_v61, 1  ;;  %v6536_v0 = vperm.slane %v937_v61, 2 }
 0x11b   : > { %v6538_v8 = vperm.slane %v937_v61, 3 }
 0x11c   : > { %1076 = vmatpush.bf16.msra.mxu0 %v4528_v42  ;;  %1125 = vmatpush.bf16.msra.mxu1 %v4532_v45 }
 0x11d   : > { %1174 = vmatpush.bf16.msra.mxu2 %v4536_v48  ;;  %1223 = vmatpush.bf16.msra.mxu3 %v4540_v47 }
 0x11f   : > { %4545 = vmatmul.msk.bf16.vlgmr.msra.gmra.mxu0 %vm1028_vm7, %v5310_v51  ;;  %4553 = vmatmul.msk.bf16.vlgmr.msra.gmra.mxu1 %vm1028_vm7, %v5310_v51 }
 0x120   : > { %1271 = vmatpush.bf16.msrb.mxu0 %v1067_v50  ;;  %4561 = vmatmul.msk.bf16.vlgmr.msra.gmra.mxu2 %vm1028_vm7, %v5310_v51 }
 0x121   : > { %4569 = vmatmul.msk.bf16.vlgmr.msra.gmra.mxu3 %vm1028_vm7, %v5310_v51 }
 0x124   : > { %1272 = vmatpush.bf16.msrb.mxu0 %v4544_v57 }
 0x12f   : > { %4546 = vmatmul.msk.bf16.gmra.mxu0 %vm1028_vm7, %v6456_v52  ;;  %4554 = vmatmul.msk.bf16.gmra.mxu1 %vm1028_vm7, %v6456_v52 }
 0x130   : > { %4562 = vmatmul.msk.bf16.gmra.mxu2 %vm1028_vm7, %v6456_v52 }
 0x131   : > { %4570 = vmatmul.msk.bf16.gmra.mxu3 %vm1028_vm7, %v6456_v52 }
 0x13f   : > { %4547 = vmatmul.msk.bf16.gmra.mxu0 %vm1028_vm7, %v6466_v53  ;;  %4555 = vmatmul.msk.bf16.gmra.mxu1 %vm1028_vm7, %v6466_v53 }
 0x140   : > { %4563 = vmatmul.msk.bf16.gmra.mxu2 %vm1028_vm7, %v6466_v53 }
 0x141   : > { %4571 = vmatmul.msk.bf16.gmra.mxu3 %vm1028_vm7, %v6466_v53 }
 0x14f   : > { %4548 = vmatmul.msk.bf16.gmra.mxu0 %vm1028_vm7, %v6476_v54  ;;  %4556 = vmatmul.msk.bf16.gmra.mxu1 %vm1028_vm7, %v6476_v54 }
 0x150   : > { %4564 = vmatmul.msk.bf16.gmra.mxu2 %vm1028_vm7, %v6476_v54 }
 0x151   : > { %4572 = vmatmul.msk.bf16.gmra.mxu3 %vm1028_vm7, %v6476_v54 }
 0x15f   : > { %4549 = vmatmul.msk.bf16.gmra.mxu0 %vm1028_vm7, %v6488_v58  ;;  %4557 = vmatmul.msk.bf16.gmra.mxu1 %vm1028_vm7, %v6488_v58 }
 0x160   : > { %4565 = vmatmul.msk.bf16.gmra.mxu2 %vm1028_vm7, %v6488_v58 }
 0x161   : > { %4573 = vmatmul.msk.bf16.gmra.mxu3 %vm1028_vm7, %v6488_v58 }
 0x16f   : > { %4550 = vmatmul.msk.bf16.gmra.mxu0 %vm1028_vm7, %v6498_v17  ;;  %4558 = vmatmul.msk.bf16.gmra.mxu1 %vm1028_vm7, %v6498_v17 }
 0x170   : > { %4566 = vmatmul.msk.bf16.gmra.mxu2 %vm1028_vm7, %v6498_v17 }
 0x171   : > { %4574 = vmatmul.msk.bf16.gmra.mxu3 %vm1028_vm7, %v6498_v17 }
 0x17f   : > { %4551 = vmatmul.msk.bf16.gmra.mxu0 %vm1028_vm7, %v6508_v59  ;;  %4559 = vmatmul.msk.bf16.gmra.mxu1 %vm1028_vm7, %v6508_v59 }
 0x180   : > { %4567 = vmatmul.msk.bf16.gmra.mxu2 %vm1028_vm7, %v6508_v59 }
 0x181   : > { %4575 = vmatmul.msk.bf16.gmra.mxu3 %vm1028_vm7, %v6508_v59 }
 0x18f   : > { %4552 = vmatmul.msk.bf16.gmra.mxu0 %vm1028_vm7, %v5317_v32  ;;  %4560 = vmatmul.msk.bf16.gmra.mxu1 %vm1028_vm7, %v5317_v32 }
 0x190   : > { %4568 = vmatmul.msk.bf16.gmra.mxu2 %vm1028_vm7, %v5317_v32 }
 0x191   : > { %4576 = vmatmul.msk.bf16.gmra.mxu3 %vm1028_vm7, %v5317_v32 }
 0x19c   : > { %v1078_v60 = vpop.f32.mrf.mxu0  ;;  %v1127_v56 = vpop.f32.mrf.mxu1 }
 0x19d   : > { %v6528_v33 = vadd.f32 %v1078_v60, %v6523_v62  ;;  %v6531_v5 = vadd.f32 %v1127_v56, %v6525_v44 }
 0x19f   : > { %v4585_v6 = vmul.f32 -1.442695, %v6528_v33  ;;  %v4586_v7 = vmul.f32 -1.442695, %v6531_v5  ;;  %4577 = vmatmul.msk.bf16.vlgmr.msrb.gmra.mxu0 %vm1028_vm7, %v5310_v51 }
 0x1a1   : > { %5587 = vpow2.f32 %v4585_v6 }
 0x1a2   : > { %5589 = vpow2.f32 %v4586_v7 }
 0x1a3   : > { %v1176_v34 = vpop.f32.mrf.mxu2 }
 0x1a4   : > { %v1225_v10 = vpop.f32.mrf.mxu3  ;;  %v6541_v11 = vadd.f32 %v1176_v34, %v6536_v0  ;;  %v1080_v12 = vpop.f32.mrf.mxu0 }
 0x1a5   : > { %v6544_v3 = vadd.f32 %v1225_v10, %v6538_v8  ;;  %v6547_v13 = vadd.f32 %v1080_v12, %v6523_v62  ;;  %v1129_v9 = vpop.f32.mrf.mxu1 }
 0x1a6   : > { %v4587_v1 = vmul.f32 -1.442695, %v6541_v11  ;;  %v6553_v4 = vadd.f32 %v1129_v9, %v6525_v44 }
 0x1a7   : > { %v4588_v15 = vmul.f32 -1.442695, %v6544_v3  ;;  %v5588_v16 = vpop.eup %5587  ;;  %v4590_v14 = vmul.f32 -1.442695, %v6547_v13 }
 0x1a8   : > { %v5590_v19 = vpop.eup %5589  ;;  %v1554_v21 = vadd.f32 1.0, %v5588_v16  ;;  %5591 = vpow2.f32 %v4587_v1  ;;  %v4591_v23 = vmul.f32 -1.442695, %v6553_v4 }
 0x1a9   : > { %v1555_v20 = vadd.f32 1.0, %v5590_v19  ;;  %5593 = vpow2.f32 %v4588_v15 }
 0x1aa   : > { %5595 = vrcp.f32 %v1554_v21  ;;  %v1643_v2 = vand.u32 2147483647, %v1554_v21  ;;  %v1645_v35 = vand.u32 2147483648, %v1554_v21  ;;  %vm1639_vm8 = vweird.f32 %v1554_v21 }
 0x1ab   : > { %5597 = vrcp.f32 %v1555_v20  ;;  %v1658_v18 = vand.u32 2147483647, %v1555_v20  ;;  %v1178_v28 = vpop.f32.mrf.mxu2  ;;  %vm1654_vm9 = vweird.f32 %v1555_v20  ;;  %v1660_v24 = vand.u32 2147483648, %v1555_v20 }
 0x1ac   : > { %5599 = vpow2.f32 %v4590_v14  ;;  %v1083_v22 = vpop.f32.mrf.mxu0  ;;  %v6572_v40 = vadd.f32 %v1178_v28, %v6536_v0  ;;  %vm6577_vm10 = vcmp.eq.f32.partialorder %v1643_v2, 8.507059e+37  ;;  %v1646_v45 = vor.u32 1.1754944e-38, %v1645_v35  ;;  %v1227_v34 = vpop.f32.mrf.mxu3 }
 0x1ad   : > { %v6557_v26 = vadd.f32 %v1083_v22, %v6523_v62  ;;  %5601 = vpow2.f32 %v4591_v23  ;;  %vm6581_vm11 = vcmp.eq.f32.partialorder %v1658_v18, 8.507059e+37  ;;  %v1661_v6 = vor.u32 1.1754944e-38, %v1660_v24 }
 0x1ae   : > { %v5592_v55 = vpop.eup %5591  ;;  %v4592_v51 = vmul.f32 -1.442695, %v6572_v40  ;;  %v6621_v16 = vadd.f32 %v1227_v34, %v6538_v8  ;;  %v1132_v34 = vpop.f32.mrf.mxu1 }
 0x1af   : > { %v5594_v27 = vpop.eup %5593  ;;  %v6559_v39 = vadd.f32 1.0, %v5592_v55  ;;  %4578 = vmatmul.msk.bf16.gmra.mxu0 %vm1028_vm7, %v6456_v52  ;;  %v4595_v38 = vmul.f32 -1.442695, %v6557_v26 }
 0x1b0   : > { %v6563_v31 = vpop.eup %5595  ;;  %v6565_v36 = vadd.f32 1.0, %v5594_v27 }
 0x1b1   : > { %v6567_v37 = vpop.eup %5597  ;;  %v1635_v30 = vmul.f32 %v6563_v31, %v1554_v21  ;;  %5603 = vrcp.f32 %v6559_v39  ;;  %vm1640_vm12 = vweird.f32 %v6563_v31  ;;  %v1673_v25 = vand.u32 2147483647, %v6559_v39 }
 0x1b2   : > { %v5600_v29 = vpop.eup %5599  ;;  %v1650_v63 = vmul.f32 %v6567_v37, %v1555_v20  ;;  %5605 = vrcp.f32 %v6565_v36  ;;  %vm1655_vm13 = vweird.f32 %v6567_v37  ;;  %v1675_v32 = vand.u32 2147483648, %v6559_v39  ;;  %vm6600_vm14 = vmor %vm1639_vm8, %vm1640_vm12 }
 0x1b3   : > { %v1636_v41 = vsub.f32 1.0, %v1635_v30  ;;  %v6587_v49 = vadd.f32 1.0, %v5600_v29  ;;  %v5602_v50 = vpop.eup %5601  ;;  %5607 = vpow2.f32 %v4595_v38  ;;  %v1690_v61 = vand.u32 2147483648, %v6565_v36  ;;  %vm6613_vm0 = vmor %vm1654_vm9, %vm1655_vm13 }
 0x1b4   : > { %v1651_v46 = vsub.f32 1.0, %v1650_v63  ;;  %vm1669_vm15 = vweird.f32 %v6559_v39  ;;  %v1688_v1 = vand.u32 2147483647, %v6565_v36  ;;  %v6618_v15 = vadd.f32 1.0, %v5602_v50  ;;  %v6629_v20 = vpop.f32.mrf.mxu0 }
 0x1b5   : > { %v1637_v47 = vmul.f32 %v6563_v31, %v1636_v41  ;;  %5609 = vrcp.f32 %v6587_v49  ;;  %vm1684_vm1 = vweird.f32 %v6565_v36  ;;  %vm6632_vm3 = vcmp.eq.f32.partialorder %v1673_v25, 8.507059e+37 }
 0x1b6   : > { %v1652_v52 = vmul.f32 %v6567_v37, %v1651_v46  ;;  %5611 = vpow2.f32 %v4592_v51  ;;  %v1676_v22 = vor.u32 1.1754944e-38, %v1675_v32  ;;  %v6636_v55 = vor.u32 1.1754944e-38, %v1690_v61 }
 0x1b7   : > { %v6593_v43 = vpop.eup %5603  ;;  %v1638_v57 = vadd.f32 %v6563_v31, %v1637_v47  ;;  %5613 = vrcp.f32 %v6618_v15  ;;  %vm6645_vm4 = vcmp.eq.f32.partialorder %v1688_v1, 8.507059e+37  ;;  %v1718_v30 = vand.u32 2147483647, %v6587_v49 }
 0x1b8   : > { %v1653_v56 = vadd.f32 %v6567_v37, %v1652_v52  ;;  %v1665_v7 = vmul.f32 %v6593_v43, %v6559_v39  ;;  %v6608_v10 = vpop.eup %5605  ;;  %vm1670_vm2 = vweird.f32 %v6593_v43  ;;  %v1720_v29 = vand.u32 2147483648, %v6587_v49 }
 0x1b9   : > { %v1642_v19 = vsel %vm6600_vm14, %v6563_v31, %v1638_v57  ;;  %v1680_v14 = vmul.f32 %v6608_v10, %v6565_v36  ;;  %v5608_v23 = vpop.eup %5607  ;;  %v4593_v63 = vmul.f32 -1.442695, %v6621_v16  ;;  %vm6657_vm5 = vmor %vm1669_vm15, %vm1670_vm2  ;;  %vm1685_vm8 = vweird.f32 %v6608_v10 }
 0x1ba   : > { %v1666_v21 = vsub.f32 1.0, %v1665_v7  ;;  %v1657_v27 = vsel %vm6613_vm0, %v6567_v37, %v1653_v56  ;;  %v1647_v18 = vsel %vm6577_vm10, %v1646_v45, %v1642_v19  ;;  %vm1714_vm9 = vweird.f32 %v6587_v49  ;;  %vm6681_vm10 = vmor %vm1684_vm1, %vm1685_vm8 }
 0x1bb   : > { %v1681_v31 = vsub.f32 1.0, %v1680_v14  ;;  %v5610_v35 = vpop.eup %5609  ;;  %v1662_v45 = vsel %vm6581_vm11, %v1661_v6, %v1657_v27  ;;  %5615 = vpow2.f32 %v4593_v63  ;;  %v6667_v46 = vadd.f32 1.0, %v5608_v23 }
 0x1bc   : > { %v1667_v2 = vmul.f32 %v6593_v43, %v1666_v21  ;;  %v1710_v24 = vmul.f32 %v5610_v35, %v6587_v49  ;;  %v5612_v42 = vpop.eup %5611  ;;  %v1733_v51 = vand.u32 2147483647, %v6618_v15  ;;  %v2834_v52 = vmul.f32 %v1647_v18, %v6528_v33  ;;  %v1088_v12 = vpop.f32.mrf.mxu0 }
 0x1bd   : > { %v1682_v41 = vmul.f32 %v6608_v10, %v1681_v31  ;;  %v6673_v50 = vadd.f32 1.0, %v5612_v42  ;;  %vm6685_vm11 = vcmp.eq.f32.partialorder %v1718_v30, 8.507059e+37  ;;  %5617 = vrcp.f32 %v6667_v46  ;;  %v6690_v57 = vpop.eup %5613 }
 0x1be   : > { %v1668_v37 = vadd.f32 %v6593_v43, %v1667_v2  ;;  %v1711_v47 = vsub.f32 1.0, %v1710_v24  ;;  %vm1715_vm12 = vweird.f32 %v5610_v35  ;;  %v1721_v33 = vor.u32 1.1754944e-38, %v1720_v29 }
 0x1bf   : > { %4579 = vmatmul.msk.bf16.gmra.mxu0 %vm1028_vm7, %v6466_v53  ;;  %v1683_v39 = vadd.f32 %v6608_v10, %v1682_v41  ;;  %5619 = vrcp.f32 %v6673_v50  ;;  %v1725_v36 = vmul.f32 %v6690_v57, %v6618_v15  ;;  %vm1729_vm13 = vweird.f32 %v6618_v15  ;;  %vm1716_vm15 = vmor %vm1714_vm9, %vm1715_vm12 }
 0x1c0   : > { %v1672_v48 = vsel %vm6657_vm5, %v6593_v43, %v1668_v37  ;;  %v1712_v32 = vmul.f32 %v5610_v35, %v1711_v47  ;;  %v6694_v43 = vmul.f32 %v1662_v45, %v6531_v5  ;;  %v1735_v61 = vand.u32 2147483648, %v6618_v15  ;;  %v1181_v45 = vpop.f32.mrf.mxu2 }
 0x1c1   : > { %v1677_v60 = vsel %vm6632_vm3, %v1676_v22, %v1672_v48  ;;  %v1687_v56 = vsel %vm6681_vm10, %v6608_v10, %v1683_v39  ;;  %vm6705_vm14 = vcmp.eq.f32.partialorder %v1733_v51, 8.507059e+37  ;;  %v1793_v5 = vand.u32 2147483647, %v6667_v46  ;;  %v5616_v1 = vpop.eup %5615  ;;  %v1230_v39 = vpop.f32.mrf.mxu3 }
 0x1c2   : > { %v1713_v6 = vadd.f32 %v5610_v35, %v1712_v32  ;;  %v1726_v19 = vsub.f32 1.0, %v1725_v36  ;;  %vm1730_vm0 = vweird.f32 %v6690_v57  ;;  %v1748_v21 = vand.u32 2147483647, %v6673_v50 }
 0x1c3   : > { %v6716_v10 = vadd.f32 %v1132_v34, %v6525_v44  ;;  %v1750_v9 = vand.u32 2147483648, %v6673_v50  ;;  %v6719_v22 = vadd.f32 1.0, %v5616_v1  ;;  %v1795_v23 = vand.u32 2147483648, %v6667_v46  ;;  %v6722_v27 = vpop.eup %5617  ;;  %vm6744_vm2 = vmor %vm1729_vm13, %vm1730_vm0 }
 0x1c4   : > { %v1717_v14 = vsel %vm1716_vm15, %v5610_v35, %v1713_v6  ;;  %v1727_v2 = vmul.f32 %v6690_v57, %v1726_v19  ;;  %v1736_v31 = vor.u32 1.1754944e-38, %v1735_v61  ;;  %v6729_v29 = vmul.f32 %v1677_v60, %v6541_v11  ;;  %v1090_v6 = vpop.f32.mrf.mxu0 }
 0x1c5   : > { %v1722_v49 = vsel %vm6685_vm11, %v1721_v33, %v1717_v14  ;;  %v4596_v18 = vmul.f32 -1.442695, %v6716_v10  ;;  %v5620_v30 = vpop.eup %5619  ;;  %v6734_v35 = vsel %vm6645_vm4, %v6636_v55, %v1687_v56  ;;  %5621 = vrcp.f32 %v6719_v22 }
 0x1c6   : > { %v2839_v63 = vmul.f32 %v1722_v49, %v6547_v13  ;;  %vm1789_vm1 = vweird.f32 %v6667_v46  ;;  %v1728_v37 = vadd.f32 %v6690_v57, %v1727_v2  ;;  %v1740_v28 = vmul.f32 %v5620_v30, %v6673_v50 }
 0x1c7   : > { %vm1744_vm3 = vweird.f32 %v6673_v50  ;;  %vm6750_vm4 = vcmp.eq.f32.partialorder %v1748_v21, 8.507059e+37  ;;  %v1751_v38 = vor.u32 1.1754944e-38, %v1750_v9  ;;  %v1785_v41 = vmul.f32 %v6722_v27, %v6667_v46  ;;  %v1134_v21 = vpop.f32.mrf.mxu1 }
 0x1c8   : > { %v2914_v55 = vadd.f32 %v2839_v63, %v2834_v52  ;;  %vm6756_vm5 = vcmp.eq.f32.partialorder %v1793_v5, 8.507059e+37  ;;  %v1796_v15 = vor.u32 1.1754944e-38, %v1795_v23  ;;  %v1741_v42 = vsub.f32 1.0, %v1740_v28  ;;  %v1183_v13 = vpop.f32.mrf.mxu2 }
 0x1c9   : > { %vm1745_vm8 = vweird.f32 %v5620_v30  ;;  %vm1759_vm9 = vweird.f32 %v6719_v22  ;;  %5623 = vpow2.f32 %v4596_v18  ;;  %v1732_v47 = vsel %vm6744_vm2, %v6690_v57, %v1728_v37 }
 0x1ca   : > { %v1786_v51 = vsub.f32 1.0, %v1785_v41  ;;  %v6765_v52 = vadd.f32 %v1181_v45, %v6536_v0  ;;  %v6768_v48 = vadd.f32 %v1230_v39, %v6538_v8  ;;  %v1742_v25 = vmul.f32 %v5620_v30, %v1741_v42  ;;  %vm6778_vm10 = vmor %vm1744_vm3, %vm1745_vm8 }
 0x1cb   : > { %v1763_v53 = vand.u32 2147483647, %v6719_v22  ;;  %v1765_v32 = vand.u32 2147483648, %v6719_v22  ;;  %v6774_v33 = vadd.f32 %v6629_v20, %v6523_v62  ;;  %v5622_v36 = vpop.eup %5621  ;;  %vm1790_vm11 = vweird.f32 %v6722_v27 }
 0x1cc   : > { %v1787_v61 = vmul.f32 %v6722_v27, %v1786_v51  ;;  %v4597_v60 = vmul.f32 -1.442695, %v6765_v52  ;;  %v4598_v56 = vmul.f32 -1.442695, %v6768_v48  ;;  %v1737_v20 = vsel %vm6705_vm14, %v1736_v31, %v1732_v47  ;;  %vm1791_vm13 = vmor %vm1789_vm1, %vm1790_vm11  ;;  %v1093_v51 = vpop.f32.mrf.mxu0 }
 0x1cd   : > { %v1743_v5 = vadd.f32 %v5620_v30, %v1742_v25  ;;  %v1755_v34 = vmul.f32 %v5622_v36, %v6719_v22  ;;  %v6790_v50 = vadd.f32 %v1088_v12, %v6523_v62  ;;  %vm1760_vm12 = vweird.f32 %v5622_v36 }
 0x1ce   : > { %v1788_v1 = vadd.f32 %v6722_v27, %v1787_v61  ;;  %5625 = vpow2.f32 %v4597_v60  ;;  %v4600_v19 = vmul.f32 -1.442695, %v6774_v33  ;;  %v1766_v23 = vor.u32 1.1754944e-38, %v1765_v32  ;;  %vm6817_vm14 = vmor %vm1759_vm9, %vm1760_vm12 }
 0x1cf   : > { %4580 = vmatmul.msk.bf16.gmra.mxu0 %vm1028_vm7, %v6476_v54  ;;  %v5624_v14 = vpop.eup %5623  ;;  %v1747_v7 = vsel %vm6778_vm10, %v5620_v30, %v1743_v5  ;;  %v1756_v9 = vsub.f32 1.0, %v1755_v34  ;;  %5627 = vpow2.f32 %v4598_v56  ;;  %v6803_v54 = vadd.f32 %v1134_v21, %v6525_v44 }
 0x1d0   : > { %v1752_v12 = vsel %vm6750_vm4, %v1751_v38, %v1747_v7  ;;  %v1792_v49 = vsel %vm1791_vm13, %v6722_v27, %v1788_v1  ;;  %v6808_v2 = vadd.f32 1.0, %v5624_v14  ;;  %5629 = vpow2.f32 %v4600_v19 }
 0x1d1   : > { %v1757_v31 = vmul.f32 %v5622_v36, %v1756_v9  ;;  %v1797_v18 = vsel %vm6756_vm5, %v1796_v15, %v1792_v49  ;;  %v4601_v46 = vmul.f32 -1.442695, %v6803_v54  ;;  %v2840_v30 = vmul.f32 %v1737_v20, %v6553_v4 }
 0x1d2   : > { %v2844_v27 = vmul.f32 %v1797_v18, %v6557_v26  ;;  %5631 = vrcp.f32 %v6808_v2  ;;  %v4605_v37 = vmul.f32 -1.442695, %v6790_v50  ;;  %v2841_v11 = vmul.f32 %v1752_v12, %v6572_v40 }
 0x1d3   : > { %v1758_v28 = vadd.f32 %v5622_v36, %v1757_v31  ;;  %vm1764_vm15 = vcmp.eq.f32.partialorder %v1763_v53, 8.507059e+37  ;;  %5633 = vpow2.f32 %v4601_v46  ;;  %v1808_v22 = vand.u32 2147483647, %v6808_v2 }
 0x1d4   : > { %v5626_v4 = vpop.eup %5625  ;;  %v6825_v38 = vadd.f32 %v2914_v55, %v2844_v27  ;;  %v1810_v41 = vand.u32 2147483648, %v6808_v2  ;;  %v6830_v24 = vadd.f32 %v1183_v13, %v6536_v0  ;;  %v2837_v15 = vmul.f32 %v6734_v35, %v6544_v3 }
 0x1d5   : > { %v5628_v26 = vpop.eup %5627  ;;  %v1762_v40 = vsel %vm6817_vm14, %v5622_v36, %v1758_v28  ;;  %v6836_v42 = vadd.f32 1.0, %v5626_v4  ;;  %v6839_v45 = vadd.f32 %v1090_v6, %v6523_v62  ;;  %v6842_v55 = vadd.f32 %v2840_v30, %v6694_v43 }
 0x1d6   : > { %v1767_v39 = vsel %vm1764_vm15, %v1766_v23, %v1762_v40  ;;  %v6844_v47 = vadd.f32 1.0, %v5628_v26  ;;  %5635 = vpow2.f32 %v4605_v37  ;;  %v5630_v25 = vpop.eup %5629  ;;  %v6847_v53 = vadd.f32 %v2841_v11, %v6729_v29  ;;  %v1232_v23 = vpop.f32.mrf.mxu3 }
 0x1d7   : > { %vm1804_vm0 = vweird.f32 %v6808_v2  ;;  %5637 = vrcp.f32 %v6836_v42  ;;  %v4602_v3 = vmul.f32 -1.442695, %v6830_v24  ;;  %v2842_v32 = vmul.f32 %v1767_v39, %v6621_v16 }
 0x1d8   : > { %v5632_v35 = vpop.eup %5631  ;;  %vm6853_vm1 = vcmp.eq.f32.partialorder %v1808_v22, 8.507059e+37  ;;  %v1811_v36 = vor.u32 1.1754944e-38, %v1810_v41  ;;  %5639 = vrcp.f32 %v6844_v47  ;;  %v1823_v61 = vand.u32 2147483647, %v6836_v42 }
 0x1d9   : > { %v5634_v57 = vpop.eup %5633  ;;  %v1800_v29 = vmul.f32 %v5632_v35, %v6808_v2  ;;  %v4610_v60 = vmul.f32 -1.442695, %v6839_v45  ;;  %v6862_v56 = vadd.f32 %v1093_v51, %v6523_v62  ;;  %vm1805_vm2 = vweird.f32 %v5632_v35 }
 0x1da   : > { %v1825_v16 = vand.u32 2147483648, %v6836_v42  ;;  %v1838_v6 = vand.u32 2147483647, %v6844_v47  ;;  %v6866_v20 = vadd.f32 1.0, %v5630_v25  ;;  %v1840_v34 = vand.u32 2147483648, %v6844_v47  ;;  %vm6887_vm8 = vmor %vm1804_vm0, %vm1805_vm2 }
 0x1db   : > { %v1801_v5 = vsub.f32 1.0, %v1800_v29  ;;  %v6869_v1 = vadd.f32 1.0, %v5634_v57  ;;  %5641 = vpow2.f32 %v4602_v3  ;;  %v6871_v21 = vadd.f32 %v2842_v32, %v2837_v15 }
 0x1dc   : > { %v5636_v19 = vpop.eup %5635  ;;  %vm1819_vm3 = vweird.f32 %v6836_v42  ;;  %vm1834_vm4 = vweird.f32 %v6844_v47  ;;  %5643 = vrcp.f32 %v6866_v20  ;;  %vm6876_vm5 = vcmp.eq.f32.partialorder %v1823_v61, 8.507059e+37 }
 0x1dd   : > { %v5638_v14 = vpop.eup %5637  ;;  %v1802_v7 = vmul.f32 %v5632_v35, %v1801_v5  ;;  %v1870_v12 = vand.u32 2147483648, %v6866_v20  ;;  %5645 = vrcp.f32 %v6869_v1  ;;  %v1826_v46 = vor.u32 1.1754944e-38, %v1825_v16 }
 0x1de   : > { %v5640_v49 = vpop.eup %5639  ;;  %v1815_v18 = vmul.f32 %v5638_v14, %v6836_v42  ;;  %vm6892_vm9 = vcmp.eq.f32.partialorder %v1838_v6, 8.507059e+37  ;;  %v6897_v63 = vadd.f32 %v1232_v23, %v6538_v8  ;;  %v1841_v37 = vor.u32 1.1754944e-38, %v1840_v34 }
 0x1df   : > { %4581 = vmatmul.msk.bf16.gmra.mxu0 %vm1028_vm7, %v6488_v58  ;;  %v1803_v27 = vadd.f32 %v5632_v35, %v1802_v7  ;;  %v1830_v58 = vmul.f32 %v5640_v49, %v6844_v47  ;;  %v1868_v2 = vand.u32 2147483647, %v6866_v20  ;;  %vm1820_vm10 = vweird.f32 %v5638_v14 }
 0x1e0   : > { %v1816_v11 = vsub.f32 1.0, %v1815_v18  ;;  %vm1879_vm11 = vweird.f32 %v6869_v1  ;;  %v1883_v28 = vand.u32 2147483647, %v6869_v1  ;;  %vm1835_vm12 = vweird.f32 %v5640_v49  ;;  %vm6915_vm14 = vmor %vm1819_vm3, %vm1820_vm10 }
 0x1e1   : > { %v5642_v13 = vpop.eup %5641  ;;  %v1807_v4 = vsel %vm6887_vm8, %v5632_v35, %v1803_v27  ;;  %v1831_v22 = vsub.f32 1.0, %v1830_v58  ;;  %vm1864_vm13 = vweird.f32 %v6866_v20  ;;  %v1871_v41 = vor.u32 1.1754944e-38, %v1870_v12  ;;  %vm6928_vm0 = vmor %vm1834_vm4, %vm1835_vm12 }
 0x1e2   : > { %v5644_v26 = vpop.eup %5643  ;;  %v1812_v15 = vsel %vm6853_vm1, %v1811_v36, %v1807_v4  ;;  %v1817_v40 = vmul.f32 %v5638_v14, %v1816_v11  ;;  %v1885_v39 = vand.u32 2147483648, %v6869_v1  ;;  %v6909_v51 = vadd.f32 1.0, %v5642_v13  ;;  %v1186_v11 = vpop.f32.mrf.mxu2 }
 0x1e3   : > { %v5646_v25 = vpop.eup %5645  ;;  %v2845_v3 = vmul.f32 %v1812_v15, %v6716_v10  ;;  %v1832_v32 = vmul.f32 %v5640_v49, %v1831_v22  ;;  %v1860_v57 = vmul.f32 %v5644_v26, %v6866_v20  ;;  %vm6920_vm15 = vcmp.eq.f32.partialorder %v1868_v2, 8.507059e+37 }
 0x1e4   : > { %v4603_v36 = vmul.f32 -1.442695, %v6897_v63  ;;  %v1818_v29 = vadd.f32 %v5638_v14, %v1817_v40  ;;  %v1875_v42 = vmul.f32 %v5646_v25, %v6869_v1  ;;  %5647 = vrcp.f32 %v6909_v51 }
 0x1e5   : > { %v6934_v61 = vadd.f32 1.0, %v5636_v19  ;;  %v6937_v16 = vadd.f32 %v6842_v55, %v2845_v3  ;;  %v1833_v6 = vadd.f32 %v5640_v49, %v1832_v32  ;;  %v1861_v5 = vsub.f32 1.0, %v1860_v57 }
 0x1e6   : > { %5649 = vpow2.f32 %v4610_v60  ;;  %v1822_v34 = vsel %vm6915_vm14, %v5638_v14, %v1818_v29  ;;  %vm1865_vm1 = vweird.f32 %v5644_v26  ;;  %v1876_v47 = vsub.f32 1.0, %v1875_v42 }
 0x1e7   : > { %vm1880_vm2 = vweird.f32 %v5646_v25  ;;  %v1827_v7 = vsel %vm6876_vm5, %v1826_v46, %v1822_v34  ;;  %v1837_v12 = vsel %vm6928_vm0, %v5640_v49, %v1833_v6  ;;  %v1862_v19 = vmul.f32 %v5644_v26, %v1861_v5  ;;  %vm1866_vm5 = vmor %vm1864_vm13, %vm1865_vm1 }
 0x1e8   : > { %5651 = vpow2.f32 %v4603_v36  ;;  %v2846_v55 = vmul.f32 %v1827_v7, %v6765_v52  ;;  %v1842_v23 = vsel %vm6892_vm9, %v1841_v37, %v1837_v12  ;;  %v1877_v60 = vmul.f32 %v5646_v25, %v1876_v47  ;;  %vm6955_vm4 = vmor %vm1879_vm11, %vm1880_vm2 }
 0x1e9   : > { %vm6948_vm3 = vcmp.eq.f32.partialorder %v1883_v28, 8.507059e+37  ;;  %v2847_v14 = vmul.f32 %v1842_v23, %v6768_v48  ;;  %v1863_v18 = vadd.f32 %v5644_v26, %v1862_v19  ;;  %v1886_v49 = vor.u32 1.1754944e-38, %v1885_v39 }
 0x1ea   : > { %5653 = vrcp.f32 %v6934_v61  ;;  %v5648_v52 = vpop.eup %5647  ;;  %v6961_v46 = vadd.f32 %v6847_v53, %v2846_v55  ;;  %v1878_v30 = vadd.f32 %v5646_v25, %v1877_v60  ;;  %vm1894_vm8 = vweird.f32 %v6909_v51  ;;  %v1137_v53 = vpop.f32.mrf.mxu1 }
 0x1eb   : > { %v1898_v48 = vand.u32 2147483647, %v6909_v51  ;;  %v6969_v27 = vadd.f32 %v6871_v21, %v2847_v14  ;;  %v1867_v58 = vsel %vm1866_vm5, %v5644_v26, %v1863_v18  ;;  %v1890_v37 = vmul.f32 %v5648_v52, %v6909_v51  ;;  %v1188_v14 = vpop.f32.mrf.mxu2 }
 0x1ec   : > { %v5650_v1 = vpop.eup %5649  ;;  %v1900_v2 = vand.u32 2147483648, %v6909_v51  ;;  %v1872_v20 = vsel %vm6920_vm15, %v1871_v41, %v1867_v58  ;;  %v1882_v28 = vsel %vm6955_vm4, %v5646_v25, %v1878_v30  ;;  %vm1895_vm9 = vweird.f32 %v5648_v52 }
 0x1ed   : > { %v1943_v13 = vand.u32 2147483647, %v6934_v61  ;;  %v2849_v21 = vmul.f32 %v1872_v20, %v6774_v33  ;;  %v1887_v22 = vsel %vm6948_vm3, %v1886_v49, %v1882_v28  ;;  %v1891_v26 = vsub.f32 1.0, %v1890_v37  ;;  %vm7006_vm11 = vmor %vm1894_vm8, %vm1895_vm9 }
 0x1ee   : > { %v5652_v4 = vpop.eup %5651  ;;  %v6982_v15 = vadd.f32 %v1137_v53, %v6525_v44  ;;  %vm6986_vm10 = vcmp.eq.f32.partialorder %v1898_v48, 8.507059e+37  ;;  %v1945_v39 = vand.u32 2147483648, %v6934_v61  ;;  %v6994_v33 = vadd.f32 %v1186_v11, %v6536_v0 }
 0x1ef   : > { %4582 = vmatmul.msk.bf16.gmra.mxu0 %vm1028_vm7, %v6498_v17  ;;  %v6990_v40 = vadd.f32 1.0, %v5652_v4  ;;  %v6997_v3 = vadd.f32 %v6825_v38, %v2849_v21  ;;  %v1892_v35 = vmul.f32 %v5648_v52, %v1891_v26  ;;  %v7000_v57 = vadd.f32 1.0, %v5650_v1 }
 0x1f0   : > { %v5654_v25 = vpop.eup %5653  ;;  %v4606_v32 = vmul.f32 -1.442695, %v6982_v15  ;;  %v2850_v17 = vmul.f32 %v1887_v22, %v6803_v54  ;;  %v1901_v36 = vor.u32 1.1754944e-38, %v1900_v2  ;;  %vm1939_vm12 = vweird.f32 %v6934_v61  ;;  %v1235_v54 = vpop.f32.mrf.mxu3 }
 0x1f1   : > { %5655 = vrcp.f32 %v6990_v40  ;;  %v1893_v38 = vadd.f32 %v5648_v52, %v1892_v35  ;;  %v1913_v29 = vand.u32 2147483647, %v6990_v40  ;;  %v1935_v10 = vmul.f32 %v5654_v25, %v6934_v61 }
 0x1f2   : > { %vm7014_vm13 = vcmp.eq.f32.partialorder %v1943_v13, 8.507059e+37  ;;  %v1946_v51 = vor.u32 1.1754944e-38, %v1945_v39  ;;  %5657 = vpow2.f32 %v4606_v32  ;;  %v4607_v6 = vmul.f32 -1.442695, %v6994_v33  ;;  %v1139_v31 = vpop.f32.mrf.mxu1 }
 0x1f3   : > { %v7020_v5 = vadd.f32 %v1235_v54, %v6538_v8  ;;  %v1897_v34 = vsel %vm7006_vm11, %v5648_v52, %v1893_v38  ;;  %v1915_v47 = vand.u32 2147483648, %v6990_v40  ;;  %v1936_v7 = vsub.f32 1.0, %v1935_v10 }
 0x1f4   : > { %5659 = vrcp.f32 %v7000_v57  ;;  %v7027_v12 = vadd.f32 %v6937_v16, %v2850_v17  ;;  %v1902_v19 = vsel %vm6986_vm10, %v1901_v36, %v1897_v34  ;;  %vm1909_vm14 = vweird.f32 %v6990_v40 }
 0x1f5   : > { %5661 = vpow2.f32 %v4607_v6  ;;  %v4608_v55 = vmul.f32 -1.442695, %v7020_v5  ;;  %vm7033_vm15 = vcmp.eq.f32.partialorder %v1913_v29, 8.507059e+37  ;;  %v1937_v60 = vmul.f32 %v5654_v25, %v1936_v7 }
 0x1f6   : > { %vm1940_vm0 = vweird.f32 %v5654_v25  ;;  %v7038_v16 = vadd.f32 %v1139_v31, %v6525_v44  ;;  %v7041_v9 = vadd.f32 %v1188_v14, %v6536_v0  ;;  %v4615_v49 = vmul.f32 -1.442695, %v6862_v56 }
 0x1f7   : > { %v5656_v18 = vpop.eup %5655  ;;  %5663 = vpow2.f32 %v4608_v55  ;;  %v2851_v52 = vmul.f32 %v1902_v19, %v6830_v24  ;;  %v1916_v48 = vor.u32 1.1754944e-38, %v1915_v47  ;;  %v1938_v1 = vadd.f32 %v5654_v25, %v1937_v60  ;;  %vm1941_vm2 = vmor %vm1939_vm12, %vm1940_vm0 }
 0x1f8   : > { %v1905_v30 = vmul.f32 %v5656_v18, %v6990_v40  ;;  %v5658_v58 = vpop.eup %5657  ;;  %vm1910_vm1 = vweird.f32 %v5656_v18  ;;  %v2018_v37 = vand.u32 2147483647, %v7000_v57  ;;  %v4611_v2 = vmul.f32 -1.442695, %v7038_v16 }
 0x1f9   : > { %v4612_v53 = vmul.f32 -1.442695, %v7041_v9  ;;  %v1942_v28 = vsel %vm1941_vm2, %v5654_v25, %v1938_v1  ;;  %v7053_v24 = vadd.f32 1.0, %v5658_v58  ;;  %5665 = vpow2.f32 %v4615_v49  ;;  %vm7066_vm4 = vmor %vm1909_vm14, %vm1910_vm1 }
 0x1fa   : > { %v7051_v11 = vpop.eup %5659  ;;  %v1906_v20 = vsub.f32 1.0, %v1905_v30  ;;  %v1947_v4 = vsel %vm7014_vm13, %v1946_v51, %v1942_v28  ;;  %v2020_v21 = vand.u32 2147483648, %v7000_v57  ;;  %5667 = vpow2.f32 %v4611_v2 }
 0x1fb   : > { %v5662_v13 = vpop.eup %5661  ;;  %v2010_v61 = vmul.f32 %v7051_v11, %v7000_v57  ;;  %v2854_v26 = vmul.f32 %v1947_v4, %v6790_v50  ;;  %5669 = vrcp.f32 %v7053_v24  ;;  %vm2014_vm3 = vweird.f32 %v7000_v57 }
 0x1fc   : > { %v1907_v22 = vmul.f32 %v5656_v18, %v1906_v20  ;;  %v1958_v25 = vand.u32 2147483647, %v7053_v24  ;;  %v1960_v35 = vand.u32 2147483648, %v7053_v24  ;;  %v7072_v32 = vadd.f32 1.0, %v5662_v13 }
 0x1fd   : > { %v5664_v41 = vpop.eup %5663  ;;  %v2011_v17 = vsub.f32 1.0, %v2010_v61  ;;  %v2917_v43 = vadd.f32 %v6997_v3, %v2854_v26  ;;  %5671 = vpow2.f32 %v4612_v53  ;;  %v7080_v40 = vadd.f32 %v6961_v46, %v2851_v52  ;;  %v1237_v53 = vpop.f32.mrf.mxu3 }
 0x1fe   : > { %v1908_v50 = vadd.f32 %v5656_v18, %v1907_v22  ;;  %v7075_v36 = vadd.f32 1.0, %v5664_v41  ;;  %5673 = vrcp.f32 %v7072_v32  ;;  %vm7083_vm5 = vcmp.eq.f32.partialorder %v2018_v37, 8.507059e+37 }
 0x1ff   : > { %4583 = vmatmul.msk.bf16.gmra.mxu0 %vm1028_vm7, %v6508_v59  ;;  %v2021_v29 = vor.u32 1.1754944e-38, %v2020_v21  ;;  %v5666_v10 = vpop.eup %5665  ;;  %v1973_v42 = vand.u32 2147483647, %v7072_v32  ;;  %v1975_v54 = vand.u32 2147483648, %v7072_v32  ;;  %vm1954_vm8 = vweird.f32 %v7053_v24 }
 0x200   : > { %v1912_v3 = vsel %vm7066_vm4, %v5656_v18, %v1908_v50  ;;  %5675 = vrcp.f32 %v7075_v36  ;;  %v5668_v59 = vpop.eup %5667  ;;  %v1988_v51 = vand.u32 2147483647, %v7075_v36  ;;  %vm2015_vm9 = vweird.f32 %v7051_v11 }
 0x201   : > { %v1917_v46 = vsel %vm7033_vm15, %v1916_v48, %v1912_v3  ;;  %v5670_v6 = vpop.eup %5669  ;;  %vm7097_vm10 = vcmp.eq.f32.partialorder %v1958_v25, 8.507059e+37  ;;  %v1961_v47 = vor.u32 1.1754944e-38, %v1960_v35  ;;  %v1990_v7 = vand.u32 2147483648, %v7075_v36  ;;  %vm2016_vm0 = vmor %vm2014_vm3, %vm2015_vm9  ;;  %v1142_v35 = vpop.f32.mrf.mxu1 }
 0x202   : > { %v2012_v19 = vmul.f32 %v7051_v11, %v2011_v17  ;;  %v2852_v55 = vmul.f32 %v1917_v46, %v6897_v63  ;;  %v1950_v23 = vmul.f32 %v5670_v6, %v7053_v24  ;;  %vm1969_vm11 = vweird.f32 %v7072_v32 }
 0x203   : > { %vm1984_vm12 = vweird.f32 %v7075_v36  ;;  %v5672_v60 = vpop.eup %5671  ;;  %vm7107_vm13 = vcmp.eq.f32.partialorder %v1973_v42, 8.507059e+37  ;;  %v1976_v14 = vor.u32 1.1754944e-38, %v1975_v54  ;;  %v7112_v49 = vadd.f32 1.0, %v5668_v59  ;;  %v1095_v42 = vpop.f32.mrf.mxu0 }
 0x204   : > { %v2013_v18 = vadd.f32 %v7051_v11, %v2012_v19  ;;  %v5674_v52 = vpop.eup %5673  ;;  %v1951_v30 = vsub.f32 1.0, %v1950_v23  ;;  %vm1955_vm14 = vweird.f32 %v5670_v6  ;;  %vm7114_vm15 = vcmp.eq.f32.partialorder %v1988_v51, 8.507059e+37 }
 0x205   : > { %v7122_v48 = vadd.f32 1.0, %v5672_v60  ;;  %v1965_v58 = vmul.f32 %v5674_v52, %v7072_v32  ;;  %v1991_v37 = vor.u32 1.1754944e-38, %v1990_v7  ;;  %5677 = vrcp.f32 %v7112_v49  ;;  %vm7135_vm1 = vmor %vm1954_vm8, %vm1955_vm14 }
 0x206   : > { %v5676_v1 = vpop.eup %5675  ;;  %v2017_v2 = vsel %vm2016_vm0, %v7051_v11, %v2013_v18  ;;  %v1952_v20 = vmul.f32 %v5670_v6, %v1951_v30  ;;  %v7131_v57 = vadd.f32 %v1237_v53, %v6538_v8  ;;  %vm1970_vm2 = vweird.f32 %v5674_v52 }
 0x207   : > { %v1980_v28 = vmul.f32 %v5676_v1, %v7075_v36  ;;  %v2022_v13 = vsel %vm7083_vm5, %v2021_v29, %v2017_v2  ;;  %v1966_v61 = vsub.f32 1.0, %v1965_v58  ;;  %vm1985_vm3 = vweird.f32 %v5676_v1  ;;  %vm7151_vm4 = vmor %vm1969_vm11, %vm1970_vm2 }
 0x208   : > { %v2859_v11 = vmul.f32 %v2022_v13, %v6839_v45  ;;  %v1953_v21 = vadd.f32 %v5670_v6, %v1952_v20  ;;  %v2033_v26 = vand.u32 2147483647, %v7112_v49  ;;  %5679 = vrcp.f32 %v7122_v48  ;;  %vm7164_vm8 = vmor %vm1984_vm12, %vm1985_vm3 }
 0x209   : > { %v1981_v22 = vsub.f32 1.0, %v1980_v28  ;;  %v2955_v41 = vadd.f32 %v6969_v27, %v2852_v55  ;;  %v1967_v39 = vmul.f32 %v5674_v52, %v1966_v61  ;;  %v7145_v24 = vadd.f32 1.0, %v5666_v10 }
 0x20a   : > { %v7143_v25 = vadd.f32 %v2917_v43, %v2859_v11  ;;  %v1957_v17 = vsel %vm7135_vm1, %v5670_v6, %v1953_v21  ;;  %vm2029_vm5 = vweird.f32 %v7112_v49  ;;  %v7157_v27 = vadd.f32 %v1142_v35, %v6525_v44  ;;  %v5907_v6 = vld [vmem:[#allocation2 + $0x38] sm:$0xff]  ;;  %v1240_v11 = vpop.f32.mrf.mxu3 }
 0x20b   : > { %v1982_v50 = vmul.f32 %v5676_v1, %v1981_v22  ;;  %v5678_v43 = vpop.eup %5677  ;;  %v1962_v38 = vsel %vm7097_vm10, %v1961_v47, %v1957_v17  ;;  %v1968_v29 = vadd.f32 %v5674_v52, %v1967_v39  ;;  %v2035_v10 = vand.u32 2147483648, %v7112_v49 }
 0x20c   : > { %v4613_v3 = vmul.f32 -1.442695, %v7131_v57  ;;  %v2855_v54 = vmul.f32 %v1962_v38, %v6982_v15  ;;  %v2025_v46 = vmul.f32 %v5678_v43, %v7112_v49  ;;  %vm7172_vm9 = vcmp.eq.f32.partialorder %v2033_v26, 8.507059e+37 }
 0x20d   : > { %v1983_v59 = vadd.f32 %v5676_v1, %v1982_v50  ;;  %v1972_v36 = vsel %vm7151_vm4, %v5674_v52, %v1968_v29  ;;  %vm2030_vm10 = vweird.f32 %v5678_v43  ;;  %vm2044_vm11 = vweird.f32 %v7122_v48  ;;  %v1191_v52 = vpop.f32.mrf.mxu2 }
 0x20e   : > { %5681 = vpow2.f32 %v4613_v3  ;;  %v5680_v34 = vpop.eup %5679  ;;  %v2930_v15 = vadd.f32 %v7027_v12, %v2855_v54  ;;  %v1977_v47 = vsel %vm7107_vm13, %v1976_v14, %v1972_v36  ;;  %v2026_v19 = vsub.f32 1.0, %v2025_v46  ;;  %v1144_v54 = vpop.f32.mrf.mxu1 }
 0x20f   : > { %4584 = vmatmul.msk.bf16.gmra.mxu0 %vm1028_vm7, %v5907_v6  ;;  %v1987_v7 = vsel %vm7164_vm8, %v5676_v1, %v1983_v59  ;;  %v2856_v55 = vmul.f32 %v1977_v47, %v6994_v33  ;;  %v2040_v60 = vmul.f32 %v5680_v34, %v7122_v48  ;;  %v2050_v18 = vand.u32 2147483648, %v7122_v48  ;;  %vm7196_vm7 = vmor %vm2029_vm5, %vm2030_vm10 }
 0x210   : > { %v1992_v23 = vsel %vm7114_vm15, %v1991_v37, %v1987_v7  ;;  %v2027_v12 = vmul.f32 %v5678_v43, %v2026_v19  ;;  %v2036_v58 = vor.u32 1.1754944e-38, %v2035_v10  ;;  %5683 = vrcp.f32 %v7145_v24 }
 0x211   : > { %v2857_v30 = vmul.f32 %v1992_v23, %v7020_v5  ;;  %v2943_v31 = vadd.f32 %v7080_v40, %v2856_v55  ;;  %v2041_v14 = vsub.f32 1.0, %v2040_v60  ;;  %vm2045_vm12 = vweird.f32 %v5680_v34 }
 0x212   : > { %v2048_v63 = vand.u32 2147483647, %v7122_v48  ;;  %v2028_v5 = vadd.f32 %v5678_v43, %v2027_v12  ;;  %v4616_v37 = vmul.f32 -1.442695, %v7157_v27  ;;  %v7205_v2 = vadd.f32 %v1191_v52, %v6536_v0  ;;  %vm7214_vm13 = vmor %vm2044_vm11, %vm2045_vm12 }
 0x213   : > { %v7201_v1 = vadd.f32 %v2955_v41, %v2857_v30  ;;  %v2042_v53 = vmul.f32 %v5680_v34, %v2041_v14  ;;  %v2051_v20 = vor.u32 1.1754944e-38, %v2050_v18  ;;  %v7208_v49 = vadd.f32 %v1095_v42, %v6523_v62  ;;  %v1098_v41 = vpop.f32.mrf.mxu0 }
 0x214   : > { %v5682_v40 = vpop.eup %5681  ;;  %v2032_v28 = vsel %vm7196_vm7, %v5678_v43, %v2028_v5  ;;  %5685 = vpow2.f32 %v4616_v37  ;;  %v4617_v61 = vmul.f32 -1.442695, %v7205_v2  ;;  %vm2049_vm14 = vcmp.eq.f32.partialorder %v2048_v63, 8.507059e+37 }
 0x215   : > { %v7218_v4 = vadd.f32 1.0, %v5682_v40  ;;  %v2037_v21 = vsel %vm7172_vm9, %v2036_v58, %v2032_v28  ;;  %v2043_v22 = vadd.f32 %v5680_v34, %v2042_v53  ;;  %v7224_v26 = vadd.f32 %v1240_v11, %v6538_v8  ;;  %v1193_v59 = vpop.f32.mrf.mxu2 }
 0x216   : > { %v5684_v48 = vpop.eup %5683  ;;  %v2860_v39 = vmul.f32 %v2037_v21, %v7038_v16  ;;  %v4620_v35 = vmul.f32 -1.442695, %v7208_v49  ;;  %v2093_v50 = vand.u32 2147483647, %v7145_v24  ;;  %v2095_v43 = vand.u32 2147483648, %v7145_v24 }
 0x217   : > { %5687 = vrcp.f32 %v7218_v4  ;;  %v2047_v17 = vsel %vm7214_vm13, %v5680_v34, %v2043_v22  ;;  %v2085_v45 = vmul.f32 %v5684_v48, %v7145_v24  ;;  %v2063_v32 = vand.u32 2147483647, %v7218_v4 }
 0x218   : > { %v7234_v38 = vadd.f32 %v2930_v15, %v2860_v39  ;;  %v2052_v29 = vsel %vm2049_vm14, %v2051_v20, %v2047_v17  ;;  %5689 = vpow2.f32 %v4617_v61  ;;  %v2065_v10 = vand.u32 2147483648, %v7218_v4 }
 0x219   : > { %v2861_v16 = vmul.f32 %v2052_v29, %v7041_v9  ;;  %v2086_v3 = vsub.f32 1.0, %v2085_v45  ;;  %v4618_v42 = vmul.f32 -1.442695, %v7224_v26  ;;  %vm2090_vm15 = vweird.f32 %v5684_v48 }
 0x21a   : > { %v5686_v46 = vpop.eup %5685  ;;  %5691 = vpow2.f32 %v4620_v35  ;;  %v7241_v51 = vadd.f32 %v1144_v54, %v6525_v44  ;;  %v7244_v36 = vadd.f32 %v1193_v59, %v6536_v0  ;;  %vm2089_vm0 = vweird.f32 %v7145_v24 }
 0x21b   : > { %v7246_v6 = vadd.f32 %v2943_v31, %v2861_v16  ;;  %v2087_v34 = vmul.f32 %v5684_v48, %v2086_v3  ;;  %v7248_v9 = vadd.f32 1.0, %v5686_v46  ;;  %5693 = vpow2.f32 %v4618_v42  ;;  %vm2091_vm4 = vmor %vm2089_vm0, %vm2090_vm15  ;;  %v1100_v33 = vpop.f32.mrf.mxu0 }
 0x21c   : > { %vm7251_vm1 = vcmp.eq.f32.partialorder %v2093_v50, 8.507059e+37  ;;  %v4621_v7 = vmul.f32 -1.442695, %v7241_v51  ;;  %v7257_v19 = vadd.f32 %v1098_v41, %v6523_v62  ;;  %v2096_v60 = vor.u32 1.1754944e-38, %v2095_v43 }
 0x21d   : > { %v5688_v15 = vpop.eup %5687  ;;  %v2088_v23 = vadd.f32 %v5684_v48, %v2087_v34  ;;  %5695 = vrcp.f32 %v7248_v9  ;;  %vm2059_vm2 = vweird.f32 %v7218_v4  ;;  %vm7262_vm3 = vcmp.eq.f32.partialorder %v2063_v32, 8.507059e+37 }
 0x21e   : > { %v2055_v55 = vmul.f32 %v5688_v15, %v7218_v4  ;;  %v5690_v18 = vpop.eup %5689  ;;  %v2066_v52 = vor.u32 1.1754944e-38, %v2065_v10  ;;  %v4622_v30 = vmul.f32 -1.442695, %v7244_v36  ;;  %vm2060_vm5 = vweird.f32 %v5688_v15 }
 0x21f   : > { %v2092_v58 = vsel %vm2091_vm4, %v5684_v48, %v2088_v23  ;;  %v7268_v31 = vadd.f32 1.0, %v5690_v18  ;;  %v2108_v5 = vand.u32 2147483647, %v7248_v9  ;;  %5697 = vpow2.f32 %v4621_v7  ;;  %vm7279_vm8 = vmor %vm2059_vm2, %vm2060_vm5 }
 0x220   : > { %v2056_v12 = vsub.f32 1.0, %v2055_v55  ;;  %v5692_v14 = vpop.eup %5691  ;;  %v2097_v63 = vsel %vm7251_vm1, %v2096_v60, %v2092_v58  ;;  %v4625_v37 = vmul.f32 -1.442695, %v7257_v19  ;;  %v2110_v28 = vand.u32 2147483648, %v7248_v9 }
 0x221   : > { %v5694_v40 = vpop.eup %5693  ;;  %v2864_v20 = vmul.f32 %v2097_v63, %v6862_v56  ;;  %5699 = vrcp.f32 %v7268_v31  ;;  %v7285_v11 = vadd.f32 1.0, %v5692_v14  ;;  %v7288_v21 = vadd.f32 %v1100_v33, %v6523_v62 }
 0x222   : > { %v2057_v53 = vmul.f32 %v5688_v15, %v2056_v12  ;;  %v7283_v61 = vadd.f32 1.0, %v5694_v40  ;;  %5701 = vpow2.f32 %v4622_v30  ;;  %vm2104_vm9 = vweird.f32 %v7248_v9 }
 0x223   : > { %v5696_v22 = vpop.eup %5695  ;;  %v7291_v41 = vadd.f32 %v7143_v25, %v2864_v20  ;;  %v2123_v4 = vand.u32 2147483647, %v7268_v31  ;;  %vm7296_vm10 = vcmp.eq.f32.partialorder %v2108_v5, 8.507059e+37  ;;  %v2125_v35 = vand.u32 2147483648, %v7268_v31 }
 0x224   : > { %v2058_v56 = vadd.f32 %v5688_v15, %v2057_v53  ;;  %v2100_v48 = vmul.f32 %v5696_v22, %v7248_v9  ;;  %5703 = vpow2.f32 %v4625_v37  ;;  %vm2105_vm11 = vweird.f32 %v5696_v22 }
 0x225   : > { %v2111_v45 = vor.u32 1.1754944e-38, %v2110_v28  ;;  %5705 = vrcp.f32 %v7283_v61  ;;  %v5698_v25 = vpop.eup %5697  ;;  %v2138_v29 = vand.u32 2147483647, %v7283_v61  ;;  %vm2119_vm7 = vweird.f32 %v7268_v31  ;;  %vm7325_vm13 = vmor %vm2104_vm9, %vm2105_vm11 }
 0x226   : > { %v2062_v17 = vsel %vm7279_vm8, %v5688_v15, %v2058_v56  ;;  %v2101_v43 = vsub.f32 1.0, %v2100_v48  ;;  %5707 = vrcp.f32 %v7285_v11  ;;  %vm7310_vm12 = vcmp.eq.f32.partialorder %v2123_v4, 8.507059e+37 }
 0x227   : > { %v2067_v50 = vsel %vm7262_vm3, %v2066_v52, %v2062_v17  ;;  %v5700_v32 = vpop.eup %5699  ;;  %v7315_v3 = vmul.f32 -1.442695, %v7288_v21  ;;  %v2126_v46 = vor.u32 1.1754944e-38, %v2125_v35  ;;  %v2140_v34 = vand.u32 2147483648, %v7283_v61 }
 0x228   : > { %v2862_v16 = vmul.f32 %v2067_v50, %v7131_v57  ;;  %v5702_v42 = vpop.eup %5701  ;;  %v2102_v54 = vmul.f32 %v5696_v22, %v2101_v43  ;;  %v2115_v59 = vmul.f32 %v5700_v32, %v7268_v31  ;;  %vm2134_vm14 = vweird.f32 %v7283_v61 }
 0x229   : > { %v2168_v47 = vand.u32 2147483647, %v7285_v11  ;;  %v7331_v7 = vadd.f32 1.0, %v5698_v25  ;;  %vm2120_vm15 = vweird.f32 %v5700_v32  ;;  %vm7333_vm0 = vcmp.eq.f32.partialorder %v2138_v29, 8.507059e+37  ;;  %v1242_v29 = vpop.f32.mrf.mxu3 }
 0x22a   : > { %v7320_v15 = vadd.f32 %v7201_v1, %v2862_v16  ;;  %v5704_v55 = vpop.eup %5703  ;;  %v2103_v23 = vadd.f32 %v5696_v22, %v2102_v54  ;;  %v2116_v60 = vsub.f32 1.0, %v2115_v59  ;;  %vm2164_vm1 = vweird.f32 %v7285_v11  ;;  %vm7349_vm2 = vmor %vm2119_vm7, %vm2120_vm15 }
 0x22b   : > { %v5706_v18 = vpop.eup %5705  ;;  %v2170_v9 = vand.u32 2147483648, %v7285_v11  ;;  %5709 = vrcp.f32 %v7331_v7  ;;  %v7340_v24 = vadd.f32 1.0, %v5702_v42  ;;  %v2141_v33 = vor.u32 1.1754944e-38, %v2140_v34 }
 0x22c   : > { %v5708_v52 = vpop.eup %5707  ;;  %v2107_v30 = vsel %vm7325_vm13, %v5696_v22, %v2103_v23  ;;  %v2117_v12 = vmul.f32 %v5700_v32, %v2116_v60  ;;  %v2130_v58 = vmul.f32 %v5706_v18, %v7283_v61  ;;  %vm7354_vm3 = vcmp.eq.f32.partialorder %v2168_v47, 8.507059e+37 }
 0x22d   : > { %v2112_v14 = vsel %vm7296_vm10, %v2111_v45, %v2107_v30  ;;  %v2160_v5 = vmul.f32 %v5708_v52, %v7285_v11  ;;  %v2183_v40 = vand.u32 2147483647, %v7331_v7  ;;  %vm2135_vm4 = vweird.f32 %v5706_v18 }
 0x22e   : > { %v2865_v53 = vmul.f32 %v2112_v14, %v7157_v27  ;;  %v2118_v20 = vadd.f32 %v5700_v32, %v2117_v12  ;;  %v2131_v28 = vsub.f32 1.0, %v2130_v58  ;;  %v2171_v22 = vor.u32 1.1754944e-38, %v2170_v9  ;;  %vm7371_vm8 = vmor %vm2134_vm14, %vm2135_vm4  ;;  %v1147_v9 = vpop.f32.mrf.mxu1 }
 0x22f   : > { %v2161_v13 = vsub.f32 1.0, %v2160_v5  ;;  %5711 = vrcp.f32 %v7340_v24  ;;  %v7361_v31 = vadd.f32 1.0, %v5704_v55  ;;  %vm2179_vm5 = vweird.f32 %v7331_v7 }
 0x230   : > { %v2932_v56 = vadd.f32 %v7234_v38, %v2865_v53  ;;  %v2122_v4 = vsel %vm7349_vm2, %v5700_v32, %v2118_v20  ;;  %v2132_v48 = vmul.f32 %v5706_v18, %v2131_v28  ;;  %vm2165_vm9 = vweird.f32 %v5708_v52  ;;  %v1196_v28 = vpop.f32.mrf.mxu2 }
 0x231   : > { %v5710_v39 = vpop.eup %5709  ;;  %v2127_v27 = vsel %vm7310_vm12, %v2126_v46, %v2122_v4  ;;  %v2162_v17 = vmul.f32 %v5708_v52, %v2161_v13  ;;  %vm7375_vm10 = vcmp.eq.f32.partialorder %v2183_v40, 8.507059e+37  ;;  %v2185_v43 = vand.u32 2147483648, %v7331_v7  ;;  %vm2166_vm12 = vmor %vm2164_vm1, %vm2165_vm9  ;;  %v1245_v4 = vpop.f32.mrf.mxu3 }
 0x232   : > { %v2866_v45 = vmul.f32 %v2127_v27, %v7205_v2  ;;  %v2133_v25 = vadd.f32 %v5706_v18, %v2132_v48  ;;  %v2175_v50 = vmul.f32 %v5710_v39, %v7331_v7  ;;  %vm2180_vm11 = vweird.f32 %v5710_v39 }
 0x233   : > { %v2163_v32 = vadd.f32 %v5708_v52, %v2162_v17  ;;  %vm2194_vm7 = vweird.f32 %v7340_v24  ;;  %v7384_v61 = vadd.f32 %v1242_v29, %v6538_v8  ;;  %5713 = vrcp.f32 %v7361_v31  ;;  %vm2181_vm13 = vmor %vm2179_vm5, %vm2180_vm11 }
 0x234   : > { %v2945_v16 = vadd.f32 %v7246_v6, %v2866_v45  ;;  %v2137_v10 = vsel %vm7371_vm8, %v5706_v18, %v2133_v25  ;;  %v2176_v2 = vsub.f32 1.0, %v2175_v50  ;;  %v2198_v46 = vand.u32 2147483647, %v7340_v24  ;;  %v1103_v45 = vpop.f32.mrf.mxu0 }
 0x235   : > { %v5712_v42 = vpop.eup %5711  ;;  %v2142_v54 = vsel %vm7333_vm0, %v2141_v33, %v2137_v10  ;;  %v2167_v59 = vsel %vm2166_vm12, %v5708_v52, %v2163_v32  ;;  %v4623_v34 = vmul.f32 -1.442695, %v7384_v61  ;;  %v2186_v23 = vor.u32 1.1754944e-38, %v2185_v43 }
 0x236   : > { %v2867_v6 = vmul.f32 %v2142_v54, %v7224_v26  ;;  %v2172_v57 = vsel %vm7354_vm3, %v2171_v22, %v2167_v59  ;;  %v2177_v47 = vmul.f32 %v5710_v39, %v2176_v2  ;;  %v2190_v11 = vmul.f32 %v5712_v42, %v7340_v24 }
 0x237   : > { %v2869_v55 = vmul.f32 %v2172_v57, %v7208_v49  ;;  %v2200_v60 = vand.u32 2147483648, %v7340_v24  ;;  %5715 = vpow2.f32 %v4623_v34  ;;  %vm2195_vm14 = vweird.f32 %v5712_v42 }
 0x238   : > { %v7406_v1 = vadd.f32 %v7320_v15, %v2867_v6  ;;  %v2178_v26 = vadd.f32 %v5710_v39, %v2177_v47  ;;  %v2191_v18 = vsub.f32 1.0, %v2190_v11  ;;  %v7410_v30 = vadd.f32 %v1147_v9, %v6525_v44  ;;  %vm7418_vm15 = vmor %vm2194_vm7, %vm2195_vm14 }
 0x239   : > { %v2920_v52 = vadd.f32 %v7291_v41, %v2869_v55  ;;  %v7412_v49 = vpop.eup %5713  ;;  %vm2199_vm0 = vcmp.eq.f32.partialorder %v2198_v46, 8.507059e+37  ;;  %v2201_v33 = vor.u32 1.1754944e-38, %v2200_v60  ;;  %5717 = vpow2.f32 %v7315_v3 }
 0x23a   : > { %v2182_v7 = vsel %vm2181_vm13, %v5710_v39, %v2178_v26  ;;  %v2192_v12 = vmul.f32 %v5712_v42, %v2191_v18  ;;  %v4626_v41 = vmul.f32 -1.442695, %v7410_v30  ;;  %v2235_v40 = vmul.f32 %v7412_v49, %v7361_v31 }
 0x23b   : > { %v2187_v58 = vsel %vm7375_vm10, %v2186_v23, %v2182_v7  ;;  %v2921_v14 = vrot.slane %v2920_v52, 4  ;;  %v7430_v22 = vadd.f32 %v1196_v28, %v6536_v0  ;;  %v7434_v3 = vadd.f32 %v1245_v4, %v6538_v8 }
 0x23c   : > { %v2870_v63 = vmul.f32 %v2187_v58, %v7241_v51  ;;  %v2193_v5 = vadd.f32 %v5712_v42, %v2192_v12  ;;  %5719 = vpow2.f32 %v4626_v41  ;;  %v2236_v39 = vsub.f32 1.0, %v2235_v40 }
 0x23d   : > { %v5716_v37 = vpop.eup %5715  ;;  %v2922_v51 = vadd.f32 %v2921_v14, %v2920_v52  ;;  %v4627_v17 = vmul.f32 -1.442695, %v7430_v22  ;;  %v4628_v29 = vmul.f32 -1.442695, %v7434_v3  ;;  %v2243_v32 = vand.u32 2147483647, %v7361_v31 }
 0x23e   : > { %v2933_v24 = vadd.f32 %v2932_v56, %v2870_v63  ;;  %v2197_v53 = vsel %vm7418_vm15, %v5712_v42, %v2193_v5  ;;  %v1592_v20 = vadd.f32 1.0, %v5716_v37  ;;  %v7447_v54 = vadd.f32 %v1103_v45, %v6523_v62 }
 0x23f   : > { %v2202_v13 = vsel %vm2199_vm0, %v2201_v33, %v2197_v53  ;;  %v5718_v27 = vpop.eup %5717  ;;  %v2923_v25 = vrot.slane %v2922_v51, 2  ;;  %vm2240_vm2 = vweird.f32 %v7412_v49  ;;  %vm2239_vm4 = vweird.f32 %v7361_v31  ;;  %v1149_v53 = vpop.f32.mrf.mxu1 }
 0x240   : > { %v2871_v48 = vmul.f32 %v2202_v13, %v7244_v36  ;;  %5721 = vrcp.f32 %v1592_v20  ;;  %v2934_v56 = vrot.slane %v2933_v24, 4  ;;  %v2237_v36 = vmul.f32 %v7412_v49, %v2236_v39  ;;  %vm7453_vm5 = vmor %vm2239_vm4, %vm2240_vm2 }
 0x241   : > { %5723 = vpow2.f32 %v4627_v17  ;;  %v7442_v10 = vadd.f32 1.0, %v5718_v27  ;;  %vm2209_vm1 = vweird.f32 %v1592_v20  ;;  %v2924_v34 = vadd.f32 %v2923_v25, %v2922_v51 }
 0x242   : > { %v2946_v35 = vadd.f32 %v2945_v16, %v2871_v48  ;;  %v5720_v38 = vpop.eup %5719  ;;  %v2935_v42 = vadd.f32 %v2934_v56, %v2933_v24  ;;  %v2245_v16 = vand.u32 2147483648, %v7361_v31  ;;  %v2213_v6 = vand.u32 2147483647, %v1592_v20 }
 0x243   : > { %v7437_v43 = vadd.f32 1.0, %v5720_v38  ;;  %v2215_v57 = vand.u32 2147483648, %v1592_v20  ;;  %v2238_v11 = vadd.f32 %v7412_v49, %v2237_v36  ;;  %vm7457_vm8 = vcmp.eq.f32.partialorder %v2243_v32, 8.507059e+37 }
 0x244   : > { %v2947_v50 = vrot.slane %v2946_v35, 4  ;;  %v2936_v55 = vrot.slane %v2935_v42, 2  ;;  %v2246_v52 = vor.u32 1.1754944e-38, %v2245_v16  ;;  %v2925_v12 = vrot.slane %v2924_v34, 1 }
 0x245   : > { %5725 = vrcp.f32 %v7437_v43  ;;  %v2216_v31 = vor.u32 1.1754944e-38, %v2215_v57  ;;  %v7471_v33 = vmul.f32 -1.442695, %v7447_v54  ;;  %vm2214_vm10 = vcmp.eq.f32.partialorder %v2213_v6, 8.507059e+37 }
 0x246   : > { %v5722_v2 = vpop.eup %5721  ;;  %v2948_v59 = vadd.f32 %v2947_v50, %v2946_v35  ;;  %5727 = vpow2.f32 %v4628_v29  ;;  %v2242_v14 = vsel %vm7453_vm5, %v7412_v49, %v2238_v11  ;;  %v7478_v37 = vadd.f32 %v2936_v55, %v2935_v42  ;;  %v1105_v11 = vpop.f32.mrf.mxu0 }
 0x247   : > { %v2205_v46 = vmul.f32 %v5722_v2, %v1592_v20  ;;  %vm2210_vm3 = vweird.f32 %v5722_v2  ;;  %5729 = vrcp.f32 %v7442_v10  ;;  %v5724_v23 = vpop.eup %5723  ;;  %v2258_v40 = vand.u32 2147483647, %v7437_v43  ;;  %v1198_v20 = vpop.f32.mrf.mxu2 }
 0x248   : > { %v2949_v60 = vrot.slane %v2948_v59, 2  ;;  %vm7464_vm9 = vmor %vm2209_vm1, %vm2210_vm3  ;;  %v7468_v15 = vadd.f32 1.0, %v5724_v23  ;;  %v2260_v24 = vand.u32 2147483648, %v7437_v43  ;;  %v7490_v4 = vadd.f32 %v1149_v53, %v6525_v44 }
 0x249   : > { %v2206_v47 = vsub.f32 1.0, %v2205_v46  ;;  %v7493_v51 = vadd.f32 %v1198_v20, %v6536_v0  ;;  %v7499_v35 = vadd.f32 %v2925_v12, %v2924_v34  ;;  %v7504_v38 = vsel %vm7457_vm8, %v2246_v52, %v2242_v14 }
 0x24a   : > { %5731 = vrcp.f32 %v7468_v15  ;;  %v7485_v13 = vadd.f32 %v2949_v60, %v2948_v59  ;;  %vm2254_vm11 = vweird.f32 %v7437_v43  ;;  %v2938_v45 = vrot.slane %v7478_v37, 1  ;;  %v1247_v60 = vpop.f32.mrf.mxu3 }
 0x24b   : > { %v2207_v26 = vmul.f32 %v5722_v2, %v2206_v47  ;;  %v7461_v7 = vpop.eup %5725  ;;  %vm2314_vm7 = vweird.f32 %v7442_v10  ;;  %v2318_v25 = vand.u32 2147483647, %v7442_v10  ;;  %v2261_v29 = vor.u32 1.1754944e-38, %v2260_v24 }
 0x24c   : > { %v2250_v63 = vmul.f32 %v7461_v7, %v7437_v43  ;;  %v5728_v5 = vpop.eup %5727  ;;  %vm7519_vm12 = vcmp.eq.f32.partialorder %v2258_v40, 8.507059e+37  ;;  %v4631_v59 = vmul.f32 -1.442695, %v7490_v4  ;;  %v4632_v46 = vmul.f32 -1.442695, %v7493_v51 }
 0x24d   : > { %v2208_v41 = vadd.f32 %v5722_v2, %v2207_v26  ;;  %v7483_v28 = vpop.eup %5729  ;;  %v7495_v27 = vadd.f32 1.0, %v5728_v5  ;;  %vm2255_vm13 = vweird.f32 %v7461_v7  ;;  %v2273_v34 = vand.u32 2147483647, %v7468_v15 }
 0x24e   : > { %v2251_v39 = vsub.f32 1.0, %v2250_v63  ;;  %v2310_v56 = vmul.f32 %v7483_v28, %v7442_v10  ;;  %v2275_v6 = vand.u32 2147483648, %v7468_v15  ;;  %vm2315_vm14 = vweird.f32 %v7483_v28  ;;  %vm7544_vm1 = vmor %vm2254_vm11, %vm2255_vm13  ;;  %v1152_v63 = vpop.f32.mrf.mxu1 }
 0x24f   : > { %v2212_v49 = vsel %vm7464_vm9, %v5722_v2, %v2208_v41  ;;  %5733 = vrcp.f32 %v7495_v27  ;;  %v2951_v2 = vrot.slane %v7485_v13, 1  ;;  %vm7532_vm15 = vcmp.eq.f32.partialorder %v2318_v25, 8.507059e+37  ;;  %vm7564_vm4 = vmor %vm2314_vm7, %vm2315_vm14  ;;  %v1201_v9 = vpop.f32.mrf.mxu2 }
 0x250   : > { %v2217_v48 = vsel %vm2214_vm10, %v2216_v31, %v2212_v49  ;;  %v2311_v36 = vsub.f32 1.0, %v2310_v56  ;;  %v7515_v32 = vpop.eup %5731  ;;  %v2252_v42 = vmul.f32 %v7461_v7, %v2251_v39  ;;  %5735 = vpow2.f32 %v4631_v59 }
 0x251   : > { %v2872_v17 = vmul.f32 %v2217_v48, %v7384_v61  ;;  %v2320_v61 = vand.u32 2147483648, %v7442_v10  ;;  %vm2269_vm0 = vweird.f32 %v7468_v15  ;;  %5737 = vpow2.f32 %v4632_v46 }
 0x252   : > { %v2312_v57 = vmul.f32 %v7483_v28, %v2311_v36  ;;  %v2253_v18 = vadd.f32 %v7461_v7, %v2252_v42  ;;  %vm2270_vm2 = vweird.f32 %v7515_v32  ;;  %v7551_v12 = vadd.f32 %v1247_v60, %v6538_v8 }
 0x253   : > { %v7512_v50 = vadd.f32 %v7406_v1, %v2872_v17  ;;  %v2265_v1 = vmul.f32 %v7515_v32, %v7468_v15  ;;  %v2321_v23 = vor.u32 1.1754944e-38, %v2320_v61  ;;  %vm7554_vm3 = vcmp.eq.f32.partialorder %v2273_v34, 8.507059e+37  ;;  %vm7579_vm8 = vmor %vm2269_vm0, %vm2270_vm2  ;;  %v1108_v34 = vpop.f32.mrf.mxu0 }
 0x254   : > { %v2313_v52 = vadd.f32 %v7483_v28, %v2312_v57  ;;  %v2276_v41 = vor.u32 1.1754944e-38, %v2275_v6  ;;  %vm2284_vm5 = vweird.f32 %v7495_v27  ;;  %v4633_v40 = vmul.f32 -1.442695, %v7551_v12 }
 0x255   : > { %v2266_v55 = vsub.f32 1.0, %v2265_v1  ;;  %v7537_v26 = vpop.eup %5733  ;;  %v7574_v24 = vadd.f32 %v1152_v63, %v6525_v44  ;;  %v2288_v49 = vand.u32 2147483647, %v7495_v27  ;;  %5739 = vpow2.f32 %v7471_v33 }
 0x256   : > { %v2280_v43 = vmul.f32 %v7537_v26, %v7495_v27  ;;  %v2317_v5 = vsel %vm7564_vm4, %v7483_v28, %v2313_v52  ;;  %v5736_v48 = vpop.eup %5735  ;;  %v2257_v28 = vsel %vm7544_vm1, %v7461_v7, %v2253_v18  ;;  %v2290_v39 = vand.u32 2147483648, %v7495_v27 }
 0x257   : > { %v2267_v58 = vmul.f32 %v7515_v32, %v2266_v55  ;;  %5741 = vpow2.f32 %v4633_v40  ;;  %v4636_v56 = vmul.f32 -1.442695, %v7574_v24  ;;  %v5738_v15 = vpop.eup %5737  ;;  %v2322_v25 = vsel %vm7532_vm15, %v2321_v23, %v2317_v5 }
 0x258   : > { %v2281_v20 = vsub.f32 1.0, %v2280_v43  ;;  %v1600_v36 = vadd.f32 1.0, %v5736_v48  ;;  %v7594_v61 = vadd.f32 %v1105_v11, %v6523_v62  ;;  %vm2285_vm9 = vweird.f32 %v7537_v26 }
 0x259   : > { %v2268_v53 = vadd.f32 %v7515_v32, %v2267_v58  ;;  %v7600_v7 = vadd.f32 1.0, %v5738_v15  ;;  %5743 = vpow2.f32 %v4636_v56  ;;  %v2262_v42 = vsel %vm7519_vm12, %v2261_v29, %v2257_v28  ;;  %vm7627_vm10 = vmor %vm2284_vm5, %vm2285_vm9 }
 0x25a   : > { %v2282_v17 = vmul.f32 %v7537_v26, %v2281_v20  ;;  %5745 = vrcp.f32 %v1600_v36  ;;  %v2874_v59 = vmul.f32 %v7504_v38, %v7257_v19  ;;  %v2879_v1 = vmul.f32 %v2322_v25, %v7288_v21 }
 0x25b   : > { %v2272_v33 = vsel %vm7579_vm8, %v7515_v32, %v2268_v53  ;;  %5747 = vrcp.f32 %v7600_v7  ;;  %v5740_v32 = vpop.eup %5739  ;;  %v3045_v6 = vpack.c.bf16 %v7499_v35, %v7499_v35  ;;  %v7614_v16 = vadd.f32 %v2938_v45, %v7478_v37 }
 0x25c   : > { %v2283_v46 = vadd.f32 %v7537_v26, %v2282_v17  ;;  %v7619_v19 = vadd.f32 %v2951_v2, %v7485_v13  ;;  %v2277_v21 = vsel %vm7554_vm3, %v2276_v41, %v2272_v33  ;;  %v7632_v37 = vmul.f32 %v2262_v42, %v7410_v30 }
 0x25d   : > { %v5742_v29 = vpop.eup %5741  ;;  %vm7634_vm11 = vcmp.eq.f32.partialorder %v2288_v49, 8.507059e+37  ;;  %v2291_v13 = vor.u32 1.1754944e-38, %v2290_v39  ;;  %v4640_v2 = vmul.f32 -1.442695, %v7594_v61  ;;  %v2333_v57 = vand.u32 2147483647, %v1600_v36 }
 0x25e   : > { %v2335_v47 = vand.u32 2147483648, %v1600_v36  ;;  %v7639_v11 = vadd.f32 1.0, %v5742_v29  ;;  %v7642_v27 = vadd.f32 %v1108_v34, %v6523_v62  ;;  %v7645_v23 = vmul.f32 %v2277_v21, %v7430_v22  ;;  %v1250_v22 = vpop.f32.mrf.mxu3 }
 0x25f   : > { %v5744_v55 = vpop.eup %5743  ;;  %v2287_v30 = vsel %vm7627_vm10, %v7537_v26, %v2283_v46  ;;  %v7650_v60 = vadd.f32 %v2879_v1, %v2874_v59  ;;  %v7652_v18 = vadd.f32 1.0, %v5740_v32  ;;  %vm2329_vm7 = vweird.f32 %v1600_v36 }
 0x260   : > { %v5746_v52 = vpop.eup %5745  ;;  %vm2344_vm12 = vweird.f32 %v7600_v7  ;;  %5749 = vrcp.f32 %v7639_v11  ;;  %v7657_v58 = vadd.f32 %v1201_v9, %v6536_v0  ;;  %v2348_v43 = vand.u32 2147483647, %v7600_v7 }
 0x261   : > { %v5748_v31 = vpop.eup %5747  ;;  %v2325_v41 = vmul.f32 %v5746_v52, %v1600_v36  ;;  %5751 = vrcp.f32 %v7652_v18  ;;  %v7662_v26 = vadd.f32 %v1250_v22, %v6538_v8  ;;  %v2292_v14 = vsel %vm7634_vm11, %v2291_v13, %v2287_v30 }
 0x262   : > { %vm7666_vm13 = vcmp.eq.f32.partialorder %v2333_v57, 8.507059e+37  ;;  %v2336_v5 = vor.u32 1.1754944e-38, %v2335_v47  ;;  %v2340_v40 = vmul.f32 %v5748_v31, %v7600_v7  ;;  %vm2330_vm14 = vweird.f32 %v5746_v52 }
 0x263   : > { %v2326_v53 = vsub.f32 1.0, %v2325_v41  ;;  %v2350_v10 = vand.u32 2147483648, %v7600_v7  ;;  %v7672_v20 = vadd.f32 1.0, %v5744_v55  ;;  %vm2345_vm15 = vweird.f32 %v5748_v31  ;;  %vm7683_vm0 = vmor %vm2329_vm7, %vm2330_vm14 }
 0x264   : > { %v2341_v49 = vsub.f32 1.0, %v2340_v40  ;;  %v4637_v48 = vmul.f32 -1.442695, %v7657_v58  ;;  %5753 = vpow2.f32 %v4640_v2  ;;  %v7676_v28 = vmul.f32 %v2292_v14, %v7434_v3  ;;  %vm7698_vm2 = vmor %vm2344_vm12, %vm2345_vm15  ;;  %v1154_v14 = vpop.f32.mrf.mxu1 }
 0x265   : > { %v2327_v39 = vmul.f32 %v5746_v52, %v2326_v53  ;;  %5755 = vrcp.f32 %v7672_v20  ;;  %v4638_v56 = vmul.f32 -1.442695, %v7662_v26  ;;  %vm7687_vm1 = vcmp.eq.f32.partialorder %v2348_v43, 8.507059e+37 }
 0x266   : > { %v7680_v15 = vpop.eup %5749  ;;  %v2342_v25 = vmul.f32 %v5748_v31, %v2341_v49  ;;  %v2363_v3 = vand.u32 2147483647, %v7639_v11  ;;  %v2365_v42 = vand.u32 2147483648, %v7639_v11  ;;  %v2351_v1 = vor.u32 1.1754944e-38, %v2350_v10 }
 0x267   : > { %v7693_v59 = vpop.eup %5751  ;;  %v2328_v46 = vadd.f32 %v5746_v52, %v2327_v39  ;;  %v2355_v34 = vmul.f32 %v7680_v15, %v7639_v11  ;;  %5757 = vpow2.f32 %v4637_v48  ;;  %vm2359_vm3 = vweird.f32 %v7639_v11 }
 0x268   : > { %v2343_v32 = vadd.f32 %v5748_v31, %v2342_v25  ;;  %v2385_v21 = vmul.f32 %v7693_v59, %v7652_v18  ;;  %v2393_v38 = vand.u32 2147483647, %v7652_v18  ;;  %vm2389_vm4 = vweird.f32 %v7652_v18 }
 0x269   : > { %v2332_v7 = vsel %vm7683_vm0, %v5746_v52, %v2328_v46  ;;  %v2356_v29 = vsub.f32 1.0, %v2355_v34  ;;  %5759 = vpow2.f32 %v4638_v56  ;;  %vm7713_vm5 = vcmp.eq.f32.partialorder %v2363_v3, 8.507059e+37  ;;  %v1203_v56 = vpop.f32.mrf.mxu2 }
 0x26a   : > { %v5754_v45 = vpop.eup %5753  ;;  %v2347_v13 = vsel %vm7698_vm2, %v5748_v31, %v2343_v32  ;;  %v2366_v57 = vor.u32 1.1754944e-38, %v2365_v42  ;;  %v2386_v47 = vsub.f32 1.0, %v2385_v21  ;;  %vm2360_vm8 = vweird.f32 %v7680_v15 }
 0x26b   : > { %v7717_v55 = vpop.eup %5755  ;;  %v2357_v30 = vmul.f32 %v7680_v15, %v2356_v29  ;;  %v2395_v9 = vand.u32 2147483648, %v7652_v18  ;;  %v7722_v52 = vadd.f32 1.0, %v5754_v45  ;;  %v2337_v22 = vsel %vm7666_vm13, %v2336_v5, %v2332_v7  ;;  %vm7742_vm10 = vmor %vm2359_vm3, %vm2360_vm8 }
 0x26c   : > { %v2387_v31 = vmul.f32 %v7693_v59, %v2386_v47  ;;  %vm7727_vm9 = vcmp.eq.f32.partialorder %v2393_v38, 8.507059e+37  ;;  %v2400_v43 = vmul.f32 %v7717_v55, %v7672_v20  ;;  %v2352_v53 = vsel %vm7687_vm1, %v2351_v1, %v2347_v13  ;;  %v1252_v13 = vpop.f32.mrf.mxu3 }
 0x26d   : > { %v5758_v40 = vpop.eup %5757  ;;  %v2358_v10 = vadd.f32 %v7680_v15, %v2357_v30  ;;  %5761 = vrcp.f32 %v7722_v52  ;;  %v7738_v63 = vadd.f32 %v1154_v14, %v6525_v44  ;;  %vm2390_vm11 = vweird.f32 %v7693_v59 }
 0x26e   : > { %v2388_v49 = vadd.f32 %v7693_v59, %v2387_v31  ;;  %v2401_v48 = vsub.f32 1.0, %v2400_v43  ;;  %v7748_v39 = vadd.f32 1.0, %v5758_v40  ;;  %v2880_v25 = vmul.f32 %v2337_v22, %v7490_v4  ;;  %vm7763_vm13 = vmor %vm2389_vm4, %vm2390_vm11 }
 0x26f   : > { %v5760_v17 = vpop.eup %5759  ;;  %vm2404_vm7 = vweird.f32 %v7672_v20  ;;  %v2408_v33 = vand.u32 2147483647, %v7672_v20  ;;  %v2410_v11 = vand.u32 2147483648, %v7672_v20  ;;  %v2881_v3 = vmul.f32 %v2352_v53, %v7493_v51 }
 0x270   : > { %v2402_v42 = vmul.f32 %v7717_v55, %v2401_v48  ;;  %vm2405_vm12 = vweird.f32 %v7717_v55  ;;  %5763 = vrcp.f32 %v7748_v39  ;;  %v2362_v46 = vsel %vm7742_vm10, %v7680_v15, %v2358_v10  ;;  %v1157_v10 = vpop.f32.mrf.mxu1 }
 0x271   : > { %v2423_v36 = vand.u32 2147483647, %v7748_v39  ;;  %v2470_v51 = vand.u32 2147483648, %v7722_v52  ;;  %v4641_v1 = vmul.f32 -1.442695, %v7738_v63  ;;  %v2392_v34 = vsel %vm7763_vm13, %v7693_v59, %v2388_v49  ;;  %vm7784_vm14 = vmor %vm2404_vm7, %vm2405_vm12  ;;  %v1206_v5 = vpop.f32.mrf.mxu2 }
 0x272   : > { %v2403_v32 = vadd.f32 %v7717_v55, %v2402_v42  ;;  %v2425_v15 = vand.u32 2147483648, %v7748_v39  ;;  %v7775_v21 = vadd.f32 1.0, %v5760_v17  ;;  %v7780_v38 = vadd.f32 %v2880_v25, %v7632_v37 }
 0x273   : > { %v7777_v18 = vpop.eup %5761  ;;  %v2396_v7 = vor.u32 1.1754944e-38, %v2395_v9  ;;  %vm7788_vm15 = vcmp.eq.f32.partialorder %v2408_v33, 8.507059e+37  ;;  %v2411_v45 = vor.u32 1.1754944e-38, %v2410_v11  ;;  %v7793_v47 = vadd.f32 %v2881_v3, %v7645_v23 }
 0x274   : > { %v2367_v37 = vsel %vm7713_vm5, %v2366_v57, %v2362_v46  ;;  %5765 = vrcp.f32 %v7775_v21  ;;  %vm2464_vm0 = vweird.f32 %v7722_v52  ;;  %v2468_v20 = vand.u32 2147483647, %v7722_v52 }
 0x275   : > { %v2397_v30 = vsel %vm7727_vm9, %v2396_v7, %v2392_v34  ;;  %vm2419_vm1 = vweird.f32 %v7748_v39  ;;  %vm7803_vm2 = vcmp.eq.f32.partialorder %v2423_v36, 8.507059e+37  ;;  %v2471_v23 = vor.u32 1.1754944e-38, %v2470_v51 }
 0x276   : > { %v5764_v22 = vpop.eup %5763  ;;  %v2407_v2 = vsel %vm7784_vm14, %v7717_v55, %v2403_v32  ;;  %v2426_v57 = vor.u32 1.1754944e-38, %v2425_v15  ;;  %v2460_v31 = vmul.f32 %v7777_v18, %v7722_v52  ;;  %5767 = vpow2.f32 %v4641_v1 }
 0x277   : > { %v2415_v41 = vmul.f32 %v5764_v22, %v7748_v39  ;;  %vm2434_vm3 = vweird.f32 %v7775_v21  ;;  %v2438_v43 = vand.u32 2147483647, %v7775_v21  ;;  %v2440_v14 = vand.u32 2147483648, %v7775_v21  ;;  %v1255_v39 = vpop.f32.mrf.mxu3 }
 0x278   : > { %vm2420_vm4 = vweird.f32 %v5764_v22  ;;  %v2461_v40 = vsub.f32 1.0, %v2460_v31  ;;  %v7817_v53 = vadd.f32 %v1203_v56, %v6536_v0  ;;  %v7820_v55 = vadd.f32 %v1252_v13, %v6538_v8 }
 0x279   : > { %v2416_v49 = vsub.f32 1.0, %v2415_v41  ;;  %v4645_v48 = vmul.f32 -1.442695, %v7642_v27  ;;  %v7824_v17 = vadd.f32 %v1157_v10, %v6525_v44  ;;  %v7827_v25 = vadd.f32 %v1206_v5, %v6536_v0  ;;  %vm7837_vm9 = vmor %vm2419_vm1, %vm2420_vm4 }
 0x27a   : > { %v5766_v33 = vpop.eup %5765  ;;  %v2462_v11 = vmul.f32 %v7777_v18, %v2461_v40  ;;  %vm2465_vm5 = vweird.f32 %v7777_v18  ;;  %v4642_v56 = vmul.f32 -1.442695, %v7817_v53  ;;  %v4643_v3 = vmul.f32 -1.442695, %v7820_v55 }
 0x27b   : > { %v2417_v42 = vmul.f32 %v5764_v22, %v2416_v49  ;;  %v2430_v46 = vmul.f32 %v5766_v33, %v7775_v21  ;;  %vm2435_vm8 = vweird.f32 %v5766_v33  ;;  %5769 = vpow2.f32 %v4645_v48  ;;  %vm2466_vm10 = vmor %vm2464_vm0, %vm2465_vm5 }
 0x27c   : > { %v5768_v4 = vpop.eup %5767  ;;  %v2463_v51 = vadd.f32 %v7777_v18, %v2462_v11  ;;  %5771 = vpow2.f32 %v4642_v56  ;;  %v4646_v1 = vmul.f32 -1.442695, %v7824_v17  ;;  %v4647_v34 = vmul.f32 -1.442695, %v7827_v25  ;;  %vm7865_vm7 = vmor %vm2434_vm3, %vm2435_vm8 }
 0x27d   : > { %v2418_v32 = vadd.f32 %v5764_v22, %v2417_v42  ;;  %v2431_v15 = vsub.f32 1.0, %v2430_v46  ;;  %v7848_v7 = vadd.f32 1.0, %v5768_v4  ;;  %5773 = vpow2.f32 %v4643_v3 }
 0x27e   : > { %v2412_v29 = vsel %vm7788_vm15, %v2411_v45, %v2407_v2  ;;  %v2467_v13 = vsel %vm2466_vm10, %v7777_v18, %v2463_v51  ;;  %vm2469_vm11 = vcmp.eq.f32.partialorder %v2468_v20, 8.507059e+37  ;;  %v7854_v31 = vadd.f32 %v1255_v39, %v6538_v8 }
 0x27f   : > { %v2422_v41 = vsel %vm7837_vm9, %v5764_v22, %v2418_v32  ;;  %v2432_v40 = vmul.f32 %v5766_v33, %v2431_v15  ;;  %v2472_v10 = vsel %vm2469_vm11, %v2471_v23, %v2467_v13  ;;  %5775 = vrcp.f32 %v7848_v7 }
 0x280   : > { %v2882_v52 = vmul.f32 %v2367_v37, %v7551_v12  ;;  %v2427_v5 = vsel %vm7803_vm2, %v2426_v57, %v2422_v41  ;;  %v2441_v59 = vor.u32 1.1754944e-38, %v2440_v14  ;;  %5777 = vpow2.f32 %v4646_v1 }
 0x281   : > { %v5770_v45 = vpop.eup %5769  ;;  %v2884_v20 = vmul.f32 %v2397_v30, %v7447_v54  ;;  %v2433_v23 = vadd.f32 %v5766_v33, %v2432_v40  ;;  %vm2439_vm12 = vcmp.eq.f32.partialorder %v2438_v43, 8.507059e+37  ;;  %5779 = vpow2.f32 %v4647_v34 }
 0x282   : > { %v5772_v22 = vpop.eup %5771  ;;  %v2885_v12 = vmul.f32 %v2412_v29, %v7574_v24  ;;  %v2889_v37 = vmul.f32 %v2472_v10, %v7594_v61  ;;  %v7872_v9 = vadd.f32 1.0, %v5770_v45  ;;  %v4648_v21 = vmul.f32 -1.442695, %v7854_v31  ;;  %v1110_v61 = vpop.f32.mrf.mxu0 }
 0x283   : > { %v5774_v2 = vpop.eup %5773  ;;  %v2886_v57 = vmul.f32 %v2427_v5, %v7657_v58  ;;  %v2437_v14 = vsel %vm7865_vm7, %v5766_v33, %v2433_v23  ;;  %v2483_v54 = vand.u32 2147483647, %v7848_v7  ;;  %v7879_v30 = vadd.f32 1.0, %v5772_v22  ;;  %v1208_v23 = vpop.f32.mrf.mxu2 }
 0x284   : > { %v2442_v43 = vsel %vm2439_vm12, %v2441_v59, %v2437_v14  ;;  %v2485_v49 = vand.u32 2147483648, %v7848_v7  ;;  %v7882_v24 = vadd.f32 1.0, %v5774_v2  ;;  %5781 = vrcp.f32 %v7872_v9 }
 0x285   : > { %v7885_v48 = vpop.eup %5775  ;;  %v2960_v11 = vrot.slane %v7512_v50, 4  ;;  %v3018_v58 = vadd.f32 %v2882_v52, %v7676_v28  ;;  %v2980_v33 = vadd.f32 %v7650_v60, %v2884_v20  ;;  %5783 = vrcp.f32 %v7879_v30 }
 0x286   : > { %v5778_v56 = vpop.eup %5777  ;;  %v7892_v3 = vadd.f32 %v7780_v38, %v2885_v12  ;;  %v2887_v42 = vmul.f32 %v2442_v43, %v7662_v26  ;;  %v2475_v46 = vmul.f32 %v7885_v48, %v7848_v7  ;;  %5785 = vrcp.f32 %v7882_v24 }
 0x287   : > { %v5780_v4 = vpop.eup %5779  ;;  %v7898_v36 = vadd.f32 %v2980_v33, %v2889_v37  ;;  %vm2479_vm13 = vweird.f32 %v7848_v7  ;;  %5787 = vpow2.f32 %v4648_v21  ;;  %v7902_v60 = vadd.f32 %v1110_v61, %v6523_v62 }
 0x288   : > { %v7905_v28 = vadd.f32 %v7793_v47, %v2886_v57  ;;  %v2476_v38 = vsub.f32 1.0, %v2475_v46  ;;  %vm7907_vm14 = vcmp.eq.f32.partialorder %v2483_v54, 8.507059e+37  ;;  %v2486_v51 = vor.u32 1.1754944e-38, %v2485_v49  ;;  %v1159_v57 = vpop.f32.mrf.mxu1 }
 0x289   : > { %v2498_v1 = vand.u32 2147483647, %v7879_v30  ;;  %vm2480_vm15 = vweird.f32 %v7885_v48  ;;  %vm2494_vm0 = vweird.f32 %v7879_v30  ;;  %vm2539_vm1 = vweird.f32 %v7872_v9 }
 0x28a   : > { %v7915_v34 = vadd.f32 1.0, %v5778_v56  ;;  %v5782_v32 = vpop.eup %5781  ;;  %v7917_v15 = vadd.f32 %v3018_v58, %v2887_v42  ;;  %v2477_v47 = vmul.f32 %v7885_v48, %v2476_v38  ;;  %v2500_v39 = vand.u32 2147483648, %v7879_v30  ;;  %vm7944_vm4 = vmor %vm2479_vm13, %vm2480_vm15 }
 0x28b   : > { %v7921_v29 = vadd.f32 1.0, %v5780_v4  ;;  %v7923_v13 = vpop.eup %5783  ;;  %vm2509_vm2 = vweird.f32 %v7882_v24  ;;  %v2513_v41 = vand.u32 2147483647, %v7882_v24  ;;  %v2535_v40 = vmul.f32 %v5782_v32, %v7872_v9 }
 0x28c   : > { %5789 = vrcp.f32 %v7915_v34  ;;  %v7929_v10 = vpop.eup %5785  ;;  %v2478_v52 = vadd.f32 %v7885_v48, %v2477_v47  ;;  %v2490_v5 = vmul.f32 %v7923_v13, %v7879_v30  ;;  %vm7934_vm3 = vcmp.eq.f32.partialorder %v2498_v1, 8.507059e+37 }
 0x28d   : > { %v2515_v59 = vand.u32 2147483648, %v7882_v24  ;;  %v2543_v45 = vand.u32 2147483647, %v7872_v9  ;;  %v5788_v20 = vpop.eup %5787  ;;  %v2505_v22 = vmul.f32 %v7929_v10, %v7882_v24  ;;  %v2536_v12 = vsub.f32 1.0, %v2535_v40 }
 0x28e   : > { %vm2540_vm5 = vweird.f32 %v5782_v32  ;;  %v2545_v37 = vand.u32 2147483648, %v7872_v9  ;;  %v2491_v21 = vsub.f32 1.0, %v2490_v5  ;;  %vm2495_vm8 = vweird.f32 %v7923_v13 }
 0x28f   : > { %v2501_v2 = vor.u32 1.1754944e-38, %v2500_v39  ;;  %5791 = vrcp.f32 %v7921_v29  ;;  %v2506_v14 = vsub.f32 1.0, %v2505_v22  ;;  %vm2510_vm9 = vweird.f32 %v7929_v10  ;;  %vm7964_vm11 = vmor %vm2539_vm1, %vm2540_vm5 }
 0x290   : > { %vm7954_vm10 = vcmp.eq.f32.partialorder %v2513_v41, 8.507059e+37  ;;  %v2537_v54 = vmul.f32 %v5782_v32, %v2536_v12  ;;  %v2482_v43 = vsel %vm7944_vm4, %v7885_v48, %v2478_v52  ;;  %v2492_v49 = vmul.f32 %v7923_v13, %v2491_v21  ;;  %vm7974_vm7 = vmor %vm2494_vm0, %vm2495_vm8  ;;  %v1162_v42 = vpop.f32.mrf.mxu1 }
 0x291   : > { %v2516_v61 = vor.u32 1.1754944e-38, %v2515_v59  ;;  %v7968_v33 = vadd.f32 1.0, %v5788_v20  ;;  %v2507_v48 = vmul.f32 %v7929_v10, %v2506_v14  ;;  %vm7979_vm12 = vcmp.eq.f32.partialorder %v2543_v45, 8.507059e+37  ;;  %vm7988_vm13 = vmor %vm2509_vm2, %vm2510_vm9 }
 0x292   : > { %v7970_v56 = vpop.eup %5789  ;;  %v2538_v46 = vadd.f32 %v5782_v32, %v2537_v54  ;;  %v2546_v9 = vor.u32 1.1754944e-38, %v2545_v37  ;;  %v2493_v38 = vadd.f32 %v7923_v13, %v2492_v49  ;;  %v2558_v47 = vand.u32 2147483647, %v7915_v34  ;;  %v1257_v54 = vpop.f32.mrf.mxu3 }
 0x293   : > { %v2550_v1 = vmul.f32 %v7970_v56, %v7915_v34  ;;  %v2560_v39 = vand.u32 2147483648, %v7915_v34  ;;  %v2487_v41 = vsel %vm7907_vm14, %v2486_v51, %v2482_v43  ;;  %v2508_v40 = vadd.f32 %v7929_v10, %v2507_v48 }
 0x294   : > { %v2542_v52 = vsel %vm7964_vm11, %v5782_v32, %v2538_v46  ;;  %v2573_v24 = vand.u32 2147483647, %v7921_v29  ;;  %v2497_v59 = vsel %vm7974_vm7, %v7923_v13, %v2493_v38  ;;  %v2575_v20 = vand.u32 2147483648, %v7921_v29 }
 0x295   : > { %v8002_v5 = vpop.eup %5791  ;;  %v2551_v45 = vsub.f32 1.0, %v2550_v1  ;;  %5793 = vrcp.f32 %v7968_v33  ;;  %v2512_v26 = vsel %vm7988_vm13, %v7929_v10, %v2508_v40  ;;  %v2547_v51 = vsel %vm7979_vm12, %v2546_v9, %v2542_v52  ;;  %v1113_v10 = vpop.f32.mrf.mxu0  ;;  %v5353_v40 = vld [vmem:[%s6037_s18 + $0xec] sm:$0xf0] }
 0x296   : > { %vm2554_vm14 = vweird.f32 %v7915_v34  ;;  %v2565_v32 = vmul.f32 %v8002_v5, %v7921_v29  ;;  %v8018_v13 = vmul.f32 %v2487_v41, %v7738_v63  ;;  %vm8021_vm15 = vcmp.eq.f32.partialorder %v2558_v47, 8.507059e+37 }
 0x297   : > { %v2552_v22 = vmul.f32 %v7970_v56, %v2551_v45  ;;  %v2561_v37 = vor.u32 1.1754944e-38, %v2560_v39  ;;  %v2502_v21 = vsel %vm7934_vm3, %v2501_v2, %v2497_v59  ;;  %vm2555_vm0 = vweird.f32 %v7970_v56 }
 0x298   : > { %v2566_v14 = vsub.f32 1.0, %v2565_v32  ;;  %vm2569_vm1 = vweird.f32 %v7921_v29  ;;  %v2517_v63 = vsel %vm7954_vm10, %v2516_v61, %v2512_v26  ;;  %v8032_v43 = vmul.f32 %v2547_v51, %v7642_v27  ;;  %vm8059_vm4 = vmor %vm2554_vm14, %vm2555_vm0  ;;  %v4779_v29 = vld [vmem:[%s6037_s18 + $0xe0] sm:$0xf]  ;;  %v1211_v51 = vpop.f32.mrf.mxu2  ;;  %v1164_v12 = vpop.f32.mrf.mxu1 }
 0x299   : > { %vm8034_vm2 = vcmp.eq.f32.partialorder %v2573_v24, 8.507059e+37  ;;  %v2576_v58 = vor.u32 1.1754944e-38, %v2575_v20  ;;  %vm2570_vm3 = vweird.f32 %v8002_v5  ;;  %v4650_v2 = vmul.f32 -1.442695, %v7902_v60 }
 0x29a   : > { %v2567_v18 = vmul.f32 %v8002_v5, %v2566_v14  ;;  %v8042_v48 = vadd.f32 %v1159_v57, %v6525_v44  ;;  %v2891_v27 = vmul.f32 %v2502_v21, %v7817_v53  ;;  %v2553_v61 = vadd.f32 %v7970_v56, %v2552_v22  ;;  %vm8069_vm8 = vmor %vm2569_vm1, %vm2570_vm3 }
 0x29b   : > { %v8044_v7 = vpop.eup %5793  ;;  %v2588_v46 = vand.u32 2147483647, %v7968_v33  ;;  %v8050_v4 = vadd.f32 %v1208_v23, %v6536_v0  ;;  %v8053_v9 = vmul.f32 %v2517_v63, %v7820_v55  ;;  %vm2584_vm5 = vweird.f32 %v7968_v33  ;;  %v5349_v55 = vld [vmem:[%s6037_s18 + $0xcc] sm:$0xf0] }
 0x29c   : > { %v2568_v53 = vadd.f32 %v8002_v5, %v2567_v18  ;;  %v2580_v38 = vmul.f32 %v8044_v7, %v7968_v33  ;;  %v2590_v30 = vand.u32 2147483648, %v7968_v33  ;;  %5795 = vpow2.f32 %v4650_v2  ;;  %v1260_v33 = vpop.f32.mrf.mxu3 }
 0x29d   : > { %v4651_v34 = vmul.f32 -1.442695, %v8042_v48  ;;  %v4652_v1 = vmul.f32 -1.442695, %v8050_v4  ;;  %vm2585_vm9 = vweird.f32 %v8044_v7  ;;  %v8078_v39 = vadd.f32 %v1257_v54, %v6538_v8 }
 0x29e   : > { %v2581_v47 = vsub.f32 1.0, %v2580_v38  ;;  %v8081_v41 = vadd.f32 %v1113_v10, %v6523_v62  ;;  %v2557_v52 = vsel %vm8059_vm4, %v7970_v56, %v2553_v61  ;;  %vm8088_vm10 = vcmp.eq.f32.partialorder %v2588_v46, 8.507059e+37  ;;  %vm8102_vm11 = vmor %vm2584_vm5, %vm2585_vm9  ;;  %v4763_v38 = vld [vmem:[%s6037_s18 + $0xc0] sm:$0xf] }
 0x29f   : > { %5797 = vpow2.f32 %v4651_v34  ;;  %v8093_v59 = vadd.f32 %v1162_v42, %v6525_v44  ;;  %v2572_v45 = vsel %vm8069_vm8, %v8002_v5, %v2568_v53  ;;  %v4653_v26 = vmul.f32 -1.442695, %v8078_v39  ;;  %v1115_v5 = vpop.f32.mrf.mxu0 }
 0x2a0   : > { %v2582_v20 = vmul.f32 %v8044_v7, %v2581_v47  ;;  %5799 = vpow2.f32 %v4652_v1  ;;  %v4655_v32 = vmul.f32 -1.442695, %v8081_v41  ;;  %v4780_v22 = vor.u32 %v5353_v40, %v4779_v29 }
 0x2a1   : > { %v4656_v23 = vmul.f32 -1.442695, %v8093_v59  ;;  %v8109_v10 = vadd.f32 %v1211_v51, %v6536_v0  ;;  %v2562_v21 = vsel %vm8021_vm15, %v2561_v37, %v2557_v52  ;;  %v2591_v54 = vor.u32 1.1754944e-38, %v2590_v30 }
 0x2a2   : > { %v2583_v14 = vadd.f32 %v8044_v7, %v2582_v20  ;;  %5801 = vpow2.f32 %v4653_v26  ;;  %v5796_v63 = vpop.eup %5795  ;;  %v2577_v42 = vsel %vm8034_vm2, %v2576_v58, %v2572_v45  ;;  %4051 = vmatpush.bf16.msrb.mxu1 %v4780_v22  ;;  %v8118_v2 = vadd.f32 %v1260_v33, %v6538_v8 }
 0x2a3   : > { %5803 = vpow2.f32 %v4655_v32  ;;  %v4657_v18 = vmul.f32 -1.442695, %v8109_v10  ;;  %v8123_v61 = vadd.f32 1.0, %v5796_v63  ;;  %v8126_v49 = vadd.f32 %v1115_v5, %v6523_v62 }
 0x2a4   : > { %v2587_v37 = vsel %vm8102_vm11, %v8044_v7, %v2583_v14  ;;  %5805 = vpow2.f32 %v4656_v23  ;;  %v2994_v46 = vadd.f32 %v7892_v3, %v8018_v13  ;;  %v3007_v57 = vadd.f32 %v7905_v28, %v2891_v27 }
 0x2a5   : > { %v5798_v58 = vpop.eup %5797  ;;  %v2895_v53 = vmul.f32 %v2562_v21, %v7824_v17  ;;  %5807 = vpow2.f32 %v4657_v18  ;;  %v2896_v7 = vmul.f32 %v2577_v42, %v7827_v25  ;;  %v2592_v34 = vsel %vm8088_vm10, %v2591_v54, %v2587_v37 }
 0x2a6   : > { %v5800_v30 = vpop.eup %5799  ;;  %5809 = vrcp.f32 %v8123_v61  ;;  %v8139_v62 = vadd.f32 %v1164_v12, %v6525_v44  ;;  %v8144_v3 = vadd.f32 %v2960_v11, %v7512_v50  ;;  %v8146_v17 = vadd.f32 1.0, %v5798_v58 }
 0x2a7   : > { %v8148_v28 = vadd.f32 1.0, %v5800_v30  ;;  %v4658_v13 = vmul.f32 -1.442695, %v8118_v2  ;;  %v3020_v27 = vadd.f32 %v7917_v15, %v8053_v9  ;;  %v8155_v1 = vadd.f32 %v7898_v36, %v8032_v43 }
 0x2a8   : > { %v5802_v25 = vpop.eup %5801  ;;  %v4660_v44 = vmul.f32 -1.442695, %v8126_v49  ;;  %v4764_v47 = vor.u32 %v5349_v55, %v4763_v38  ;;  %v8158_v50 = vadd.f32 %v2994_v46, %v2895_v53  ;;  %v2897_v11 = vmul.f32 %v2592_v34, %v7854_v31 }
 0x2a9   : > { %v5804_v29 = vpop.eup %5803  ;;  %v2620_v40 = vand.u32 2147483648, %v8123_v61  ;;  %5811 = vrcp.f32 %v8146_v17  ;;  %v8163_v24 = vadd.f32 %v3007_v57, %v2896_v7  ;;  %v2618_v15 = vand.u32 2147483647, %v8123_v61 }
 0x2aa   : > { %v5806_v52 = vpop.eup %5805  ;;  %5813 = vrcp.f32 %v8148_v28  ;;  %v8168_v36 = vmul.f32 -1.442695, %v8139_v62  ;;  %4052 = vmatpush.bf16.msrb.mxu1 %v4764_v47  ;;  %vm2614_vm7 = vweird.f32 %v8123_v61  ;;  %v2635_v31 = vand.u32 2147483648, %v8146_v17 }
 0x2ab   : > { %v5808_v43 = vpop.eup %5807  ;;  %v8172_v9 = vadd.f32 1.0, %v5802_v25  ;;  %v8174_v45 = vadd.f32 1.0, %v5804_v29  ;;  %5815 = vpow2.f32 %v4658_v13  ;;  %v2633_v26 = vand.u32 2147483647, %v8146_v17 }
 0x2ac   : > { %v5810_v20 = vpop.eup %5809  ;;  %v2648_v51 = vand.u32 2147483647, %v8148_v28  ;;  %v2650_v56 = vand.u32 2147483648, %v8148_v28  ;;  %5817 = vpow2.f32 %v4660_v44  ;;  %v8179_v32 = vadd.f32 %v3020_v27, %v2897_v11 }
 0x2ad   : > { %v2610_v23 = vmul.f32 %v5810_v20, %v8123_v61  ;;  %v2621_v22 = vor.u32 1.1754944e-38, %v2620_v40  ;;  %5819 = vrcp.f32 %v8172_v9  ;;  %vm8183_vm12 = vcmp.eq.f32.partialorder %v2618_v15, 8.507059e+37 }
 0x2ae   : > { %vm2629_vm13 = vweird.f32 %v8146_v17  ;;  %vm2644_vm14 = vweird.f32 %v8148_v28  ;;  %5821 = vrcp.f32 %v8174_v45  ;;  %v8190_v21 = vadd.f32 1.0, %v5806_v52 }
 0x2af   : > { %v8192_v14 = vpop.eup %5811  ;;  %v2611_v54 = vsub.f32 1.0, %v2610_v23  ;;  %v2636_v33 = vor.u32 1.1754944e-38, %v2635_v31  ;;  %v2663_v63 = vand.u32 2147483647, %v8172_v9  ;;  %v8195_v42 = vadd.f32 1.0, %v5808_v43 }
 0x2b0   : > { %v5814_v18 = vpop.eup %5813  ;;  %vm2615_vm15 = vweird.f32 %v5810_v20  ;;  %v2625_v12 = vmul.f32 %v8192_v14, %v8146_v17  ;;  %vm8199_vm0 = vcmp.eq.f32.partialorder %v2633_v26, 8.507059e+37  ;;  %vm8203_vm1 = vcmp.eq.f32.partialorder %v2648_v51, 8.507059e+37 }
 0x2b1   : > { %v2651_v46 = vor.u32 1.1754944e-38, %v2650_v56  ;;  %v2665_v57 = vand.u32 2147483648, %v8172_v9  ;;  %v8208_v53 = vpop.eup %5815  ;;  %v2612_v38 = vmul.f32 %v5810_v20, %v2611_v54  ;;  %v2640_v55 = vmul.f32 %v5814_v18, %v8148_v28  ;;  %vm8226_vm9 = vmor %vm2614_vm7, %vm2615_vm15 }
 0x2b2   : > { %vm2659_vm2 = vweird.f32 %v8172_v9  ;;  %v2693_v30 = vand.u32 2147483647, %v8174_v45  ;;  %v8213_v7 = vpop.eup %5817  ;;  %v2626_v34 = vsub.f32 1.0, %v2625_v12  ;;  %vm2630_vm3 = vweird.f32 %v8192_v14 }
 0x2b3   : > { %v2695_v13 = vand.u32 2147483648, %v8174_v45  ;;  %5823 = vrcp.f32 %v8190_v21  ;;  %v5820_v25 = vpop.eup %5819  ;;  %v2613_v27 = vadd.f32 %v5810_v20, %v2612_v38  ;;  %v2641_v44 = vsub.f32 1.0, %v2640_v55  ;;  %vm8239_vm10 = vmor %vm2629_vm13, %vm2630_vm3 }
 0x2b4   : > { %vm2645_vm4 = vweird.f32 %v5814_v18  ;;  %vm8218_vm5 = vcmp.eq.f32.partialorder %v2663_v63, 8.507059e+37  ;;  %vm2689_vm8 = vweird.f32 %v8174_v45  ;;  %v5822_v29 = vpop.eup %5821  ;;  %v2627_v40 = vmul.f32 %v8192_v14, %v2626_v34 }
 0x2b5   : > { %v2655_v52 = vmul.f32 %v5820_v25, %v8172_v9  ;;  %v2666_v15 = vor.u32 1.1754944e-38, %v2665_v57  ;;  %5825 = vrcp.f32 %v8195_v42  ;;  %v2617_v43 = vsel %vm8226_vm9, %v5810_v20, %v2613_v27  ;;  %vm8249_vm11 = vmor %vm2644_vm14, %vm2645_vm4 }
 0x2b6   : > { %v2642_v31 = vmul.f32 %v5814_v18, %v2641_v44  ;;  %v2685_v26 = vmul.f32 %v5822_v29, %v8174_v45  ;;  %v2708_v51 = vand.u32 2147483647, %v8190_v21  ;;  %v2628_v56 = vadd.f32 %v8192_v14, %v2627_v40 }
 0x2b7   : > { %v2656_v23 = vsub.f32 1.0, %v2655_v52  ;;  %vm2660_vm7 = vweird.f32 %v5820_v25  ;;  %vm8253_vm13 = vcmp.eq.f32.partialorder %v2693_v30, 8.507059e+37  ;;  %v2622_v54 = vsel %vm8183_vm12, %v2621_v22, %v2617_v43 }
 0x2b8   : > { %v2643_v63 = vadd.f32 %v5814_v18, %v2642_v31  ;;  %v2686_v12 = vsub.f32 1.0, %v2685_v26  ;;  %v2696_v57 = vor.u32 1.1754944e-38, %v2695_v13  ;;  %v2632_v28 = vsel %vm8239_vm10, %v8192_v14, %v2628_v56  ;;  %vm8268_vm15 = vmor %vm2659_vm2, %vm2660_vm7 }
 0x2b9   : > { %v5824_v38 = vpop.eup %5823  ;;  %v2657_v55 = vmul.f32 %v5820_v25, %v2656_v23  ;;  %vm2704_vm14 = vweird.f32 %v8190_v21  ;;  %v2710_v34 = vand.u32 2147483648, %v8190_v21  ;;  %vm2690_vm12 = vweird.f32 %v5822_v29 }
 0x2ba   : > { %v2647_v30 = vsel %vm8249_vm11, %v5814_v18, %v2643_v63  ;;  %v2687_v5 = vmul.f32 %v5822_v29, %v2686_v12  ;;  %vm8272_vm3 = vcmp.eq.f32.partialorder %v2708_v51, 8.507059e+37  ;;  %v2899_v27 = vmul.f32 %v2622_v54, %v7902_v60  ;;  %vm2691_vm2 = vmor %vm2689_vm8, %vm2690_vm12  ;;  %v5035_v54 = vld [vmem:[%s6037_s18 + $0x2e0] sm:$0xf]  ;;  %v5417_v63 = vld [vmem:[%s6037_s18 + $0x2ec] sm:$0xf0] }
 0x2bb   : > { %v5826_v14 = vpop.eup %5825  ;;  %v2658_v44 = vadd.f32 %v5820_v25, %v2657_v55  ;;  %v2700_v11 = vmul.f32 %v5824_v38, %v8190_v21  ;;  %vm2719_vm4 = vweird.f32 %v8195_v42  ;;  %v2637_v9 = vsel %vm8199_vm0, %v2636_v33, %v2632_v28  ;;  %v4747_v55 = vld [vmem:[%s6037_s18 + $0xa0] sm:$0xf] }
 0x2bc   : > { %v2652_v18 = vsel %vm8203_vm1, %v2651_v46, %v2647_v30  ;;  %v2688_v40 = vadd.f32 %v5822_v29, %v2687_v5  ;;  %v2715_v52 = vmul.f32 %v5826_v14, %v8195_v42  ;;  %vm2705_vm9 = vweird.f32 %v5824_v38 }
 0x2bd   : > { %v2662_v43 = vsel %vm8268_vm15, %v5820_v25, %v2658_v44  ;;  %v2701_v60 = vsub.f32 1.0, %v2700_v11  ;;  %v2723_v61 = vand.u32 2147483647, %v8195_v42  ;;  %vm2720_vm0 = vweird.f32 %v5826_v14  ;;  %vm8297_vm1 = vmor %vm2704_vm14, %vm2705_vm9  ;;  %v4715_v25 = vld [vmem:[%s6037_s18 + $0x60] sm:$0xf] }
 0x2be   : > { %v2667_v37 = vsel %vm8218_vm5, %v2666_v15, %v2662_v43  ;;  %v2692_v33 = vsel %vm2691_vm2, %v5822_v29, %v2688_v40  ;;  %v2716_v31 = vsub.f32 1.0, %v2715_v52  ;;  %v2900_v58 = vmul.f32 %v2637_v9, %v8042_v48  ;;  %vm8308_vm5 = vmor %vm2719_vm4, %vm2720_vm0  ;;  %v5019_v40 = vld [vmem:[%s6037_s18 + $0x2c0] sm:$0xf] }
 0x2bf   : > { %v2901_v46 = vmul.f32 %v2652_v18, %v8050_v4  ;;  %v2702_v26 = vmul.f32 %v5824_v38, %v2701_v60  ;;  %v2711_v51 = vor.u32 1.1754944e-38, %v2710_v34  ;;  %v2697_v45 = vsel %vm8253_vm13, %v2696_v57, %v2692_v33  ;;  %v5345_v34 = vld [vmem:[%s6037_s18 + $0xac] sm:$0xf0] }
 0x2c0   : > { %v2717_v47 = vmul.f32 %v5826_v14, %v2716_v31  ;;  %v2725_v29 = vand.u32 2147483648, %v8195_v42  ;;  %v8303_v15 = vadd.f32 1.0, %v8208_v53  ;;  %v2902_v48 = vmul.f32 %v2667_v37, %v8078_v39  ;;  %v8321_v42 = vpop.f32.mrf.mxu0  ;;  %v5003_v31 = vld [vmem:[%s6037_s18 + $0x2a0] sm:$0xf] }
 0x2c1   : > { %v2703_v4 = vadd.f32 %v5824_v38, %v2702_v26  ;;  %v8313_v21 = vadd.f32 1.0, %v8213_v7  ;;  %5827 = vpow2.f32 %v8168_v36  ;;  %vm8316_vm8 = vcmp.eq.f32.partialorder %v2723_v61, 8.507059e+37 }
 0x2c2   : > { %v2718_v20 = vadd.f32 %v5826_v14, %v2717_v47  ;;  %v2726_v39 = vor.u32 1.1754944e-38, %v2725_v29  ;;  %5829 = vrcp.f32 %v8303_v15  ;;  %v2962_v23 = vrot.slane %v8144_v3, 2 }
 0x2c3   : > { %v2983_v17 = vadd.f32 %v8155_v1, %v2899_v27  ;;  %v2904_v7 = vmul.f32 %v2697_v45, %v8081_v41  ;;  %v2707_v36 = vsel %vm8297_vm1, %v5824_v38, %v2703_v4  ;;  %v2738_v28 = vand.u32 2147483647, %v8303_v15  ;;  %v1213_v1 = vpop.f32.mrf.mxu2  ;;  %v1262_v41 = vpop.f32.mrf.mxu3  ;;  %v5409_v45 = vld [vmem:[%s6037_s18 + $0x2ac] sm:$0xf0]  ;;  %v5418_v4 = vld [vmem:[%s6037_s18 + $0x2f4] sm:$0xf0] }
 0x2c4   : > { %v2712_v12 = vsel %vm8272_vm3, %v2711_v51, %v2707_v36  ;;  %v2722_v57 = vsel %vm8308_vm5, %v5826_v14, %v2718_v20  ;;  %5831 = vrcp.f32 %v8313_v21  ;;  %v2996_v38 = vadd.f32 %v8158_v50, %v2900_v58 }
 0x2c5   : > { %v3009_v30 = vadd.f32 %v8163_v24, %v2901_v46  ;;  %v2727_v22 = vsel %vm8316_vm8, %v2726_v39, %v2722_v57  ;;  %v2740_v5 = vand.u32 2147483648, %v8303_v15  ;;  %v8344_v13 = vadd.f32 %v8179_v32, %v2902_v48  ;;  %v5413_v32 = vld [vmem:[%s6037_s18 + $0x2cc] sm:$0xf0]  ;;  %v5043_v48 = vld [vmem:[%s6037_s18 + $0x2e8] sm:$0xf] }
 0x2c6   : > { %v2905_v14 = vmul.f32 %v2712_v12, %v8093_v59  ;;  %v2906_v27 = vmul.f32 %v2727_v22, %v8109_v10  ;;  %v5036_v44 = vor.u32 %v5417_v63, %v5035_v54  ;;  %v8348_v9 = vadd.f32 %v2983_v17, %v2904_v7  ;;  %v5337_v39 = vld [vmem:[%s6037_s18 + $0x6c] sm:$0xf0]  ;;  %v5908_v54 = vld [vmem:[%s6032_s10] sm:$0x1f]  ;;  %v5027_v57 = vld [vmem:[%s6037_s18 + $0x2c8] sm:$0xf] }
 0x2c7   : > { %v5828_v11 = vpop.eup %5827  ;;  %v4748_v50 = vor.u32 %v5345_v34, %v4747_v55  ;;  %v8351_v24 = vadd.f32 %v1213_v1, %v6536_v0  ;;  %v8354_v18 = vadd.f32 %v1262_v41, %v6538_v8  ;;  %vm2734_vm10 = vweird.f32 %v8303_v15  ;;  %v4731_v0 = vld [vmem:[%s6037_s18 + $0x80] sm:$0xf]  ;;  %v5341_v8 = vld [vmem:[%s6037_s18 + $0x8c] sm:$0xf0] }
 0x2c8   : > { %v8358_v52 = vpop.eup %5829  ;;  %vm8361_vm11 = vcmp.eq.f32.partialorder %v2738_v28, 8.507059e+37  ;;  %v2768_v10 = vand.u32 2147483647, %v8313_v21  ;;  %v8366_v43 = vadd.f32 1.0, %v5828_v11  ;;  %4077 = vmatpush.bf16.msrb.mxu3 %v5036_v44  ;;  %v8372_v61 = vor.u32 1.1754944e-38, %v2740_v5  ;;  %v1276_v17 = vpop.f32.mrf.mxu0 }
 0x2c9   : > { %v2730_v60 = vmul.f32 %v8358_v52, %v8303_v15  ;;  %vm2764_vm7 = vweird.f32 %v8313_v21  ;;  %4053 = vmatpush.bf16.msrb.mxu1 %v4748_v50  ;;  %v4662_v37 = vmul.f32 -1.442695, %v8351_v24  ;;  %v4663_v33 = vmul.f32 -1.442695, %v8354_v18  ;;  %v5414_v28 = vld [vmem:[%s6037_s18 + $0x2d4] sm:$0xf0] }
 0x2ca   : > { %v8378_v58 = vpop.eup %5831  ;;  %v8380_v46 = vadd.f32 %v2996_v38, %v2905_v14  ;;  %v8382_v26 = vadd.f32 %v3009_v30, %v2906_v27  ;;  %v2770_v51 = vand.u32 2147483648, %v8313_v21  ;;  %5833 = vrcp.f32 %v8366_v43  ;;  %v4987_v41 = vld [vmem:[%s6037_s18 + $0x280] sm:$0xf]  ;;  %v5405_v15 = vld [vmem:[%s6037_s18 + $0x28c] sm:$0xf0] }
 0x2cb   : > { %v2731_v47 = vsub.f32 1.0, %v2730_v60  ;;  %vm2735_vm13 = vweird.f32 %v8358_v52  ;;  %v2760_v29 = vmul.f32 %v8378_v58, %v8313_v21  ;;  %5835 = vpow2.f32 %v4662_v37  ;;  %v4699_v14 = vld [vmem:[%s6037_s18 + $0x40] sm:$0xf]  ;;  %v5333_v27 = vld [vmem:[%s6037_s18 + $0x4c] sm:$0xf0] }
 0x2cc   : > { %vm8393_vm14 = vcmp.eq.f32.partialorder %v2768_v10, 8.507059e+37  ;;  %v2783_v20 = vand.u32 2147483647, %v8366_v43  ;;  %5837 = vpow2.f32 %v4663_v33  ;;  %v5020_v53 = vor.u32 %v5413_v32, %v5019_v40  ;;  %vm8409_vm15 = vmor %vm2734_vm10, %vm2735_vm13  ;;  %v5381_v11 = vld [vmem:[%s6037_s18 + $0x1cc] sm:$0xf0] }
 0x2cd   : > { %v2732_v7 = vmul.f32 %v8358_v52, %v2731_v47  ;;  %v2761_v36 = vsub.f32 1.0, %v2760_v29  ;;  %v8401_v63 = vperm.slane %v5908_v54, 4  ;;  %v4732_v12 = vor.u32 %v5341_v8, %v4731_v0  ;;  %v4907_v54 = vld [vmem:[%s6037_s18 + $0x1e0] sm:$0xf] }
 0x2ce   : > { %v2771_v34 = vor.u32 1.1754944e-38, %v2770_v51  ;;  %vm2779_vm12 = vweird.f32 %v8366_v43  ;;  %4078 = vmatpush.bf16.msrb.mxu3 %v5020_v53  ;;  %v5004_v1 = vor.u32 %v5409_v45, %v5003_v31  ;;  %v5044_v38 = vor.u32 %v5418_v4, %v5043_v48  ;;  %v4971_v45 = vld [vmem:[%s6037_s18 + $0x260] sm:$0xf] }
 0x2cf   : > { %v2733_v30 = vadd.f32 %v8358_v52, %v2732_v7  ;;  %v2762_v22 = vmul.f32 %v8378_v58, %v2761_v36  ;;  %vm2765_vm3 = vweird.f32 %v8378_v58  ;;  %4054 = vmatpush.bf16.msrb.mxu1 %v4732_v12  ;;  %v4716_v5 = vor.u32 %v5337_v39, %v4715_v25  ;;  %v5401_v25 = vld [vmem:[%s6037_s18 + $0x26c] sm:$0xf0]  ;;  %v4683_v4 = vld [vmem:[%s6037_s18 + $0x20] sm:$0xf] }
 0x2d0   : > { %v8421_v44 = vpop.eup %5833  ;;  %vm8423_vm4 = vcmp.eq.f32.partialorder %v2783_v20, 8.507059e+37  ;;  %v2785_v50 = vand.u32 2147483648, %v8366_v43  ;;  %v8430_v40 = vadd.f32 %v8321_v42, %v8401_v63  ;;  %4207 = vmatpush.bf16.msra.mxu0 %v5044_v38  ;;  %v5028_v32 = vor.u32 %v5414_v28, %v5027_v57  ;;  %vm8445_vm2 = vmor %vm2764_vm7, %vm2765_vm3  ;;  %v5329_v20 = vld [vmem:[%s6037_s18 + $0x2c] sm:$0xf0]  ;;  %v1279_v55 = vpop.f32.mrf.mxu0 }
 0x2d1   : > { %v5836_v10 = vpop.eup %5835  ;;  %v2737_v0 = vsel %vm8409_vm15, %v8358_v52, %v2733_v30  ;;  %v2763_v8 = vadd.f32 %v8378_v58, %v2762_v22  ;;  %v2775_v60 = vmul.f32 %v8421_v44, %v8366_v43  ;;  %v8439_v37 = vadd.f32 %v1276_v17, %v8401_v63  ;;  %v5385_v12 = vld [vmem:[%s6037_s18 + $0x1ec] sm:$0xf0]  ;;  %v4667_v30 = vld [vmem:[%s6037_s18] sm:$0xf] }
 0x2d2   : > { %v5838_v42 = vpop.eup %5837  ;;  %vm2780_vm9 = vweird.f32 %v8421_v44  ;;  %v8450_v52 = vadd.f32 1.0, %v5836_v10  ;;  %4079 = vmatpush.bf16.msrb.mxu3 %v5004_v1  ;;  %v4988_v31 = vor.u32 %v5405_v15, %v4987_v41  ;;  %v4700_v51 = vor.u32 %v5333_v27, %v4699_v14  ;;  %v5325_v22 = vld [vmem:[%s6037_s18 + $0xc] sm:$0xf0]  ;;  %v8503_v14 = vld [vmem:[%s6037_s18 + $0x220] sm:$0xf] }
 0x2d3   : > { %v2742_v47 = vsel %vm8361_vm11, %v8372_v61, %v2737_v0  ;;  %v2767_v21 = vsel %vm8445_vm2, %v8378_v58, %v2763_v8  ;;  %v2776_v29 = vsub.f32 1.0, %v2775_v60  ;;  %v8460_v48 = vadd.f32 1.0, %v5838_v42  ;;  %4055 = vmatpush.bf16.msrb.mxu1 %v4716_v5  ;;  %v8469_v61 = vld [vmem:[%s6037_s18 + $0x240] sm:$0xf]  ;;  %v8472_v58 = vld [vmem:[%s6037_s18 + $0x24c] sm:$0xf0]  ;;  %vm8486_vm0 = vmor %vm2779_vm12, %vm2780_vm9 }
 0x2d4   : > { %v2772_v53 = vsel %vm8393_vm14, %v2771_v34, %v2767_v21  ;;  %v2786_v39 = vor.u32 1.1754944e-38, %v2785_v50  ;;  %5839 = vrcp.f32 %v8450_v52  ;;  %v4589_v59 = vmul.f32 -1.442695, %v8430_v40  ;;  %4208 = vmatpush.bf16.msra.mxu0 %v5028_v32  ;;  %v5011_v34 = vld [vmem:[%s6037_s18 + $0x2a8] sm:$0xf] }
 0x2d5   : > { %v2909_v17 = vmul.f32 %v2772_v53, %v8126_v49  ;;  %v2777_v7 = vmul.f32 %v8421_v44, %v2776_v29  ;;  %v4594_v36 = vmul.f32 -1.442695, %v8439_v37  ;;  %v4972_v56 = vor.u32 %v5401_v25, %v4971_v45  ;;  %v5163_v10 = vld [vmem:[%s6037_s18 + $0x3e0] sm:$0xf]  ;;  %v5449_v0 = vld [vmem:[%s6037_s18 + $0x3ec] sm:$0xf0] }
 0x2d6   : > { %v8480_v57 = vmul.f32 %v2742_v47, %v8118_v2  ;;  %vm2794_vm1 = vweird.f32 %v8450_v52  ;;  %5841 = vrcp.f32 %v8460_v48  ;;  %4080 = vmatpush.bf16.msrb.mxu3 %v4988_v31  ;;  %v4684_v49 = vor.u32 %v5329_v20, %v4683_v4  ;;  %v5410_v2 = vld [vmem:[%s6037_s18 + $0x2b4] sm:$0xf0]  ;;  %v4891_v31 = vld [vmem:[%s6037_s18 + $0x1c0] sm:$0xf]  ;;  %v4995_v47 = vld [vmem:[%s6037_s18 + $0x288] sm:$0xf] }
 0x2d7   : > { %v2985_v1 = vadd.f32 %v8348_v9, %v2909_v17  ;;  %v2778_v41 = vadd.f32 %v8421_v44, %v2777_v7  ;;  %v2798_v43 = vand.u32 2147483647, %v8450_v52  ;;  %v2800_v38 = vand.u32 2147483648, %v8450_v52  ;;  %4056 = vmatpush.bf16.msrb.mxu1 %v4700_v51  ;;  %v8506_v9 = vld [vmem:[%s6037_s18 + $0x22c] sm:$0xf0] }
 0x2d8   : > { %vm2809_vm5 = vweird.f32 %v8460_v48  ;;  %v2813_v5 = vand.u32 2147483647, %v8460_v48  ;;  %5843 = vpow2.f32 %v4589_v59  ;;  %v4908_v15 = vor.u32 %v5385_v12, %v4907_v54  ;;  %v5406_v21 = vld [vmem:[%s6037_s18 + $0x294] sm:$0xf0]  ;;  %v5147_v17 = vld [vmem:[%s6037_s18 + $0x3c0] sm:$0xf] }
 0x2d9   : > { %v2986_v27 = vrot.slane %v2985_v1, 4  ;;  %v2782_v50 = vsel %vm8486_vm0, %v8421_v44, %v2778_v41  ;;  %5845 = vpow2.f32 %v4594_v36  ;;  %v4956_v32 = vor.u32 %v8472_v58, %v8469_v61  ;;  %v5445_v7 = vld [vmem:[%s6037_s18 + $0x3cc] sm:$0xf0] }
 0x2da   : > { %v8515_v8 = vpop.eup %5839  ;;  %v2787_v60 = vsel %vm8423_vm4, %v2786_v39, %v2782_v50  ;;  %v2815_v42 = vand.u32 2147483648, %v8460_v48  ;;  %4081 = vmatpush.bf16.msrb.mxu3 %v4972_v56  ;;  %4064 = vmatpush.bf16.msrb.mxu2 %v4908_v15  ;;  %v8521_v44 = vadd.f32 %v1279_v55, %v8401_v63  ;;  %v5012_v33 = vor.u32 %v5410_v2, %v5011_v34  ;;  %v4923_v34 = vld [vmem:[%s6037_s18 + $0x200] sm:$0xf]  ;;  %v5389_v2 = vld [vmem:[%s6037_s18 + $0x20c] sm:$0xf0] }
 0x2db   : > { %v2987_v51 = vadd.f32 %v2986_v27, %v2985_v1  ;;  %v2910_v45 = vmul.f32 %v2787_v60, %v8139_v62  ;;  %v2790_v25 = vmul.f32 %v8515_v8, %v8450_v52  ;;  %vm2795_vm8 = vweird.f32 %v8515_v8  ;;  %4057 = vmatpush.bf16.msrb.mxu1 %v4684_v49 }
 0x2dc   : > { %v8531_v29 = vpop.eup %5841  ;;  %v4599_v4 = vmul.f32 -1.442695, %v8521_v44  ;;  %4209 = vmatpush.bf16.msra.mxu0 %v5012_v33  ;;  %v4668_v20 = vor.u32 %v5325_v22, %v4667_v30  ;;  %v4940_v62 = vor.u32 %v8506_v9, %v8503_v14  ;;  %v5164_v53 = vor.u32 %v5449_v0, %v5163_v10  ;;  %vm8549_vm11 = vmor %vm2794_vm1, %vm2795_vm8  ;;  %v8557_v14 = vpop.f32.mrf.mxu0  ;;  %v4859_v10 = vld [vmem:[%s6037_s18 + $0x180] sm:$0xf] }
 0x2dd   : > { %v2988_v39 = vrot.slane %v2987_v51, 2  ;;  %v2998_v59 = vadd.f32 %v8380_v46, %v2910_v45  ;;  %v2791_v61 = vsub.f32 1.0, %v2790_v25  ;;  %v2805_v58 = vmul.f32 %v8531_v29, %v8460_v48 }
 0x2de   : > { %v5844_v36 = vpop.eup %5843  ;;  %vm2810_vm10 = vweird.f32 %v8531_v29  ;;  %4082 = vmatpush.bf16.msrb.mxu3 %v4956_v32  ;;  %5847 = vpow2.f32 %v4599_v4  ;;  %v4892_v56 = vor.u32 %v5381_v11, %v4891_v31  ;;  %v4996_v54 = vor.u32 %v5406_v21, %v4995_v47  ;;  %v4875_v11 = vld [vmem:[%s6037_s18 + $0x1a0] sm:$0xf]  ;;  %v5377_v47 = vld [vmem:[%s6037_s18 + $0x1ac] sm:$0xf0] }
 0x2df   : > { %v5846_v12 = vpop.eup %5845  ;;  %v2989_v28 = vadd.f32 %v2988_v39, %v2987_v51  ;;  %v2999_v49 = vrot.slane %v2998_v59, 4  ;;  %v2792_v46 = vmul.f32 %v8515_v8, %v2791_v61  ;;  %v2806_v55 = vsub.f32 1.0, %v2805_v58  ;;  %4058 = vmatpush.bf16.msrb.mxu1 %v4668_v20  ;;  %vm8571_vm13 = vmor %vm2809_vm5, %vm2810_vm10 }
 0x2e0   : > { %v2801_v41 = vor.u32 1.1754944e-38, %v2800_v38  ;;  %v8553_v30 = vadd.f32 1.0, %v5844_v36  ;;  %v8555_v22 = vadd.f32 1.0, %v5846_v12  ;;  %4065 = vmatpush.bf16.msrb.mxu2 %v4892_v56  ;;  %v5148_v15 = vor.u32 %v5445_v7, %v5147_v17  ;;  %4210 = vmatpush.bf16.msra.mxu0 %v4996_v54  ;;  %v5351_v56 = vld [vmem:[%s6037_s18 + $0xe4] sm:$0xf] }
 0x2e1   : > { %v3000_v9 = vadd.f32 %v2999_v49, %v2998_v59  ;;  %v2793_v27 = vadd.f32 %v8515_v8, %v2792_v46  ;;  %vm8562_vm7 = vcmp.eq.f32.partialorder %v2798_v43, 8.507059e+37  ;;  %v2807_v38 = vmul.f32 %v8531_v29, %v2806_v55  ;;  %v4781_v54 = vld [vmem:[%s6037_s18 + $0xf0] sm:$0xf0]  ;;  %v4979_v55 = vld [vmem:[%s6037_s18 + $0x268] sm:$0xf] }
 0x2e2   : > { %v2990_v32 = vrot.slane %v2989_v28, 1  ;;  %v2816_v0 = vor.u32 1.1754944e-38, %v2815_v42  ;;  %5849 = vrcp.f32 %v8553_v30  ;;  %4083 = vmatpush.bf16.msrb.mxu3 %v4940_v62  ;;  %v4924_v52 = vor.u32 %v5389_v2, %v4923_v34  ;;  %v5402_v34 = vld [vmem:[%s6037_s18 + $0x274] sm:$0xf0] }
 0x2e3   : > { %4090 = vmatpush.bf16.msra.mxu1 %v5164_v53  ;;  %v3001_v43 = vrot.slane %v3000_v9, 2  ;;  %v2797_v60 = vsel %vm8549_vm11, %v8515_v8, %v2793_v27  ;;  %v2808_v33 = vadd.f32 %v8531_v29, %v2807_v38  ;;  %vm2814_vm14 = vcmp.eq.f32.partialorder %v2813_v5, 8.507059e+37  ;;  %v5441_v27 = vld [vmem:[%s6037_s18 + $0x3ac] sm:$0xf0] }
 0x2e4   : > { %v5848_v31 = vpop.eup %5847  ;;  %v3046_v42 = vpack.c.bf16 %v7614_v16, %v7614_v16  ;;  %v3047_v51 = vpack.c.bf16 %v7619_v19, %v7619_v19  ;;  %v2802_v45 = vsel %vm8562_vm7, %v2801_v41, %v2797_v60  ;;  %5851 = vrcp.f32 %v8555_v22  ;;  %v8628_v12 = vpop.f32.mrf.mxu0 }
 0x2e5   : > { %v3023_v8 = vadd.f32 %v8344_v13, %v8480_v57  ;;  %v3002_v25 = vadd.f32 %v3001_v43, %v3000_v9  ;;  %v2911_v48 = vmul.f32 %v2802_v45, %v8351_v24  ;;  %v2812_v5 = vsel %vm8571_vm13, %v8531_v29, %v2808_v33  ;;  %v5131_v9 = vld [vmem:[%s6037_s18 + $0x3a0] sm:$0xf] }
 0x2e6   : > { %v8597_v21 = vadd.f32 %v2990_v32, %v2989_v28  ;;  %v2817_v4 = vsel %vm2814_vm14, %v2816_v0, %v2812_v5  ;;  %v1703_v20 = vand.u32 2147483647, %v8553_v30  ;;  %v1705_v62 = vand.u32 2147483648, %v8553_v30  ;;  %4084 = vmatpush.bf16.msrb.mxu3 %v4924_v52  ;;  %v5373_v0 = vld [vmem:[%s6037_s18 + $0x18c] sm:$0xf0] }
 0x2e7   : > { %4091 = vmatpush.bf16.msra.mxu1 %v5148_v15  ;;  %v8604_v13 = vadd.f32 %v2962_v23, %v8144_v3  ;;  %v3011_v24 = vadd.f32 %v8382_v26, %v2911_v48  ;;  %v2912_v57 = vmul.f32 %v2817_v4, %v8354_v18  ;;  %v1778_v29 = vand.u32 2147483647, %v8555_v22  ;;  %v4765_v48 = vld [vmem:[%s6037_s18 + $0xd0] sm:$0xf0]  ;;  %v4963_v5 = vld [vmem:[%s6037_s18 + $0x248] sm:$0xf] }
 0x2e8   : > { %v8609_v53 = vpop.eup %5849  ;;  %v3003_v39 = vrot.slane %v3002_v25, 1  ;;  %v1780_v59 = vand.u32 2147483648, %v8555_v22  ;;  %v8612_v61 = vadd.f32 1.0, %v5848_v31  ;;  %v4876_v58 = vor.u32 %v5377_v47, %v4875_v11 }
 0x2e9   : > { %v3012_v17 = vrot.slane %v3011_v24, 4  ;;  %v3024_v7 = vadd.f32 %v3023_v8, %v2912_v57  ;;  %v1695_v3 = vmul.f32 %v8609_v53, %v8553_v30  ;;  %vm1699_vm15 = vweird.f32 %v8553_v30  ;;  %v5115_v57 = vld [vmem:[%s6037_s18 + $0x380] sm:$0xf] }
 0x2ea   : > { %v8617_v23 = vpop.eup %5851  ;;  %v3050_v18 = vpack.c.bf16 %v8597_v21, %v8597_v21  ;;  %vm8621_vm12 = vcmp.eq.f32.partialorder %v1703_v20, 8.507059e+37  ;;  %v1706_v36 = vor.u32 1.1754944e-38, %v1705_v62  ;;  %5853 = vrcp.f32 %v8612_v61  ;;  %4066 = vmatpush.bf16.msrb.mxu2 %v4876_v58  ;;  %v4843_v58 = vld [vmem:[%s6037_s18 + $0x160] sm:$0xf] }
 0x2eb   : > { %v3013_v28 = vadd.f32 %v3012_v17, %v3011_v24  ;;  %v3025_v49 = vrot.slane %v3024_v7, 4  ;;  %v1696_v46 = vsub.f32 1.0, %v1695_v3  ;;  %vm1774_vm3 = vweird.f32 %v8555_v22  ;;  %v5398_v24 = vld [vmem:[%s6037_s18 + $0x254] sm:$0xf0] }
 0x2ec   : > { %v8633_v2 = vadd.f32 %v3003_v39, %v3002_v25  ;;  %v1770_v1 = vmul.f32 %v8617_v23, %v8555_v22  ;;  %vm8637_vm4 = vcmp.eq.f32.partialorder %v1778_v29, 8.507059e+37  ;;  %v1781_v15 = vor.u32 1.1754944e-38, %v1780_v59  ;;  %v5347_v25 = vld [vmem:[%s6037_s18 + $0xc4] sm:$0xf]  ;;  %v5437_v59 = vld [vmem:[%s6037_s18 + $0x38c] sm:$0xf0] }
 0x2ed   : > { %v3014_v50 = vrot.slane %v3013_v28, 2  ;;  %v3026_v38 = vadd.f32 %v3025_v49, %v3024_v7  ;;  %v1697_v32 = vmul.f32 %v8609_v53, %v1696_v46  ;;  %vm1700_vm2 = vweird.f32 %v8609_v53  ;;  %v4947_v46 = vld [vmem:[%s6037_s18 + $0x228] sm:$0xf] }
 0x2ee   : > { %v1771_v52 = vsub.f32 1.0, %v1770_v1  ;;  %vm1775_vm9 = vweird.f32 %v8617_v23  ;;  %v4784_v43 = vor.u32 %v5351_v56, %v4781_v54  ;;  %v8650_v60 = vadd.f32 %v8557_v14, %v8401_v63  ;;  %vm8662_vm0 = vmor %vm1699_vm15, %vm1700_vm2  ;;  %v5343_v56 = vld [vmem:[%s6037_s18 + $0xa4] sm:$0xf]  ;;  %v4749_v54 = vld [vmem:[%s6037_s18 + $0xb0] sm:$0xf0] }
 0x2ef   : > { %v3015_v33 = vadd.f32 %v3014_v50, %v3013_v28  ;;  %v3027_v31 = vrot.slane %v3026_v38, 2  ;;  %v1698_v45 = vadd.f32 %v8609_v53, %v1697_v32  ;;  %v4980_v8 = vor.u32 %v5402_v34, %v4979_v55  ;;  %vm1776_vm5 = vmor %vm1774_vm3, %vm1775_vm9  ;;  %v5099_v50 = vld [vmem:[%s6037_s18 + $0x360] sm:$0xf]  ;;  %v8699_v32 = vpop.f32.mrf.mxu0  ;;  %v5390_v14 = vld [vmem:[%s6037_s18 + $0x214] sm:$0xf0] }
 0x2f0   : > { %v8656_v11 = vpop.eup %5853  ;;  %v1772_v47 = vmul.f32 %v8617_v23, %v1771_v52  ;;  %4116 = vmatpush.bf16.msra.mxu3 %v4784_v43  ;;  %v4604_v4 = vmul.f32 -1.442695, %v8650_v60  ;;  %v5132_v20 = vor.u32 %v5441_v27, %v5131_v9  ;;  %v4860_v62 = vor.u32 %v5373_v0, %v4859_v10  ;;  %v5394_v27 = vld [vmem:[%s6037_s18 + $0x234] sm:$0xf0]  ;;  %v5365_v52 = vld [vmem:[%s6037_s18 + $0x14c] sm:$0xf0] }
 0x2f1   : > { %v1702_v30 = vsel %vm8662_vm0, %v8609_v53, %v1698_v45  ;;  %v1845_v29 = vmul.f32 %v8656_v11, %v8612_v61  ;;  %vm1849_vm1 = vweird.f32 %v8612_v61  ;;  %v1853_v39 = vand.u32 2147483647, %v8612_v61  ;;  %4211 = vmatpush.bf16.msra.mxu0 %v4980_v8  ;;  %v5369_v53 = vld [vmem:[%s6037_s18 + $0x16c] sm:$0xf0]  ;;  %v5339_v43 = vld [vmem:[%s6037_s18 + $0x84] sm:$0xf] }
 0x2f2   : > { %v3051_v17 = vpack.c.bf16 %v8633_v2, %v8633_v2  ;;  %v1707_v7 = vsel %vm8621_vm12, %v1706_v36, %v1702_v30  ;;  %v1773_v3 = vadd.f32 %v8617_v23, %v1772_v47  ;;  %5855 = vpow2.f32 %v4604_v4  ;;  %4092 = vmatpush.bf16.msra.mxu1 %v5132_v20  ;;  %4067 = vmatpush.bf16.msrb.mxu2 %v4860_v62  ;;  %v4931_v8 = vld [vmem:[%s6037_s18 + $0x208] sm:$0xf]  ;;  %v5384_v47 = vld [vmem:[%s6037_s18 + $0x1ec] sm:$0xf]  ;;  %v5083_v30 = vld [vmem:[%s6037_s18 + $0x340] sm:$0xf] }
 0x2f3   : > { %v3016_v28 = vrot.slane %v3015_v33, 1  ;;  %v8687_v49 = vadd.f32 %v3027_v31, %v3026_v38  ;;  %v1846_v26 = vsub.f32 1.0, %v1845_v29  ;;  %v1855_v36 = vand.u32 2147483648, %v8612_v61  ;;  %v5433_v38 = vld [vmem:[%s6037_s18 + $0x36c] sm:$0xf0] }
 0x2f4   : > { %v1777_v55 = vsel %vm1776_vm5, %v8617_v23, %v1773_v3  ;;  %v4768_v34 = vor.u32 %v5347_v25, %v4765_v48  ;;  %v4964_v1 = vor.u32 %v5398_v24, %v4963_v5  ;;  %v5116_v9 = vor.u32 %v5437_v59, %v5115_v57  ;;  %v4827_v23 = vld [vmem:[%s6037_s18 + $0x140] sm:$0xf]  ;;  %v4917_v57 = vld [vmem:[%s6037_s18 + $0x1f8] sm:$0xf0]  ;;  %v5429_v61 = vld [vmem:[%s6037_s18 + $0x34c] sm:$0xf0] }
 0x2f5   : > { %v2838_v22 = vmul.f32 %v1707_v7, %v8430_v40  ;;  %v1782_v10 = vsel %vm8637_vm4, %v1781_v15, %v1777_v55  ;;  %v1847_v0 = vmul.f32 %v8656_v11, %v1846_v26  ;;  %vm1850_vm8 = vweird.f32 %v8656_v11  ;;  %v4733_v15 = vld [vmem:[%s6037_s18 + $0x90] sm:$0xf0]  ;;  %v5335_v26 = vld [vmem:[%s6037_s18 + $0x64] sm:$0xf]  ;;  %v5357_v2 = vld [vmem:[%s6037_s18 + $0x10c] sm:$0xf0] }
 0x2f6   : > { %v2843_v31 = vmul.f32 %v1782_v10, %v8439_v37  ;;  %vm8710_vm10 = vcmp.eq.f32.partialorder %v1853_v39, 8.507059e+37  ;;  %4117 = vmatpush.bf16.msra.mxu3 %v4768_v34  ;;  %4212 = vmatpush.bf16.msra.mxu0 %v4964_v1  ;;  %v4844_v40 = vor.u32 %v5369_v53, %v4843_v58  ;;  %v4752_v41 = vor.u32 %v5343_v56, %v4749_v54  ;;  %vm1851_vm11 = vmor %vm1849_vm1, %vm1850_vm8  ;;  %v4811_v53 = vld [vmem:[%s6037_s18 + $0x120] sm:$0xf]  ;;  %v5361_v56 = vld [vmem:[%s6037_s18 + $0x12c] sm:$0xf0] }
 0x2f7   : > { %v3017_v25 = vadd.f32 %v3016_v28, %v3015_v33  ;;  %v1848_v48 = vadd.f32 %v8656_v11, %v1847_v0  ;;  %v1856_v5 = vor.u32 1.1754944e-38, %v1855_v36  ;;  %4093 = vmatpush.bf16.msra.mxu1 %v5116_v9  ;;  %v8719_v37 = vadd.f32 %v8628_v12, %v8401_v63  ;;  %v4717_v36 = vld [vmem:[%s6037_s18 + $0x70] sm:$0xf0]  ;;  %v5067_v1 = vld [vmem:[%s6037_s18 + $0x320] sm:$0xf] }
 0x2f8   : > { %v5856_v4 = vpop.eup %5855  ;;  %v2966_v20 = vadd.f32 %v2843_v31, %v2838_v22  ;;  %4068 = vmatpush.bf16.msrb.mxu2 %v4844_v40  ;;  %v4948_v33 = vor.u32 %v5394_v27, %v4947_v46  ;;  %v5100_v62 = vor.u32 %v5433_v38, %v5099_v50  ;;  %v4828_v24 = vor.u32 %v5365_v52, %v4827_v23  ;;  %v5380_v46 = vld [vmem:[%s6037_s18 + $0x1cc] sm:$0xf]  ;;  %v5425_v9 = vld [vmem:[%s6037_s18 + $0x32c] sm:$0xf0]  ;;  %v4795_v22 = vld [vmem:[%s6037_s18 + $0x100] sm:$0xf]  ;;  %v1289_v23 = vpop.f32.mrf.mxu0 }
 0x2f9   : > { %v3029_v12 = vrot.slane %v8687_v49, 1  ;;  %v1852_v29 = vsel %vm1851_vm11, %v8656_v11, %v1848_v48  ;;  %v8731_v39 = vadd.f32 1.0, %v5856_v4  ;;  %v4609_v59 = vmul.f32 -1.442695, %v8719_v37  ;;  %v4701_v31 = vld [vmem:[%s6037_s18 + $0x50] sm:$0xf0] }
 0x2fa   : > { %v1857_v58 = vsel %vm8710_vm10, %v1856_v5, %v1852_v29  ;;  %4118 = vmatpush.bf16.msra.mxu3 %v4752_v41  ;;  %4213 = vmatpush.bf16.msra.mxu0 %v4948_v33  ;;  %v4736_v7 = vor.u32 %v5339_v43, %v4733_v15  ;;  %v4932_v3 = vor.u32 %v5390_v14, %v4931_v8  ;;  %v3230_v11 = vunpack.c.l.b16 %v3050_v18  ;;  %v4901_v18 = vld [vmem:[%s6037_s18 + $0x1d8] sm:$0xf0]  ;;  %v5376_v40 = vld [vmem:[%s6037_s18 + $0x1ac] sm:$0xf]  ;;  %v5051_v14 = vld [vmem:[%s6037_s18 + $0x300] sm:$0xf] }
 0x2fb   : > { %v3052_v54 = vpack.c.bf16 %v3017_v25, %v3017_v25  ;;  %v2848_v28 = vmul.f32 %v1857_v58, %v8521_v44  ;;  %5857 = vrcp.f32 %v8731_v39  ;;  %4094 = vmatpush.bf16.msra.mxu1 %v5100_v62  ;;  %v3231_v55 = vunpack.c.l.b16 %v3051_v17  ;;  %v4885_v41 = vld [vmem:[%s6037_s18 + $0x1b8] sm:$0xf0]  ;;  %v5327_v4 = vld [vmem:[%s6037_s18 + $0x24] sm:$0xf]  ;;  %v4909_v62 = vld [vmem:[%s6037_s18 + $0x1f0] sm:$0xf0] }
 0x2fc   : > { %5859 = vpow2.f32 %v4609_v59  ;;  %4069 = vmatpush.bf16.msrb.mxu2 %v4828_v24  ;;  %v4920_v21 = vor.u32 %v5384_v47, %v4917_v57  ;;  %v5084_v34 = vor.u32 %v5429_v61, %v5083_v30  ;;  %v2964_v44 = vrot.slane %v8604_v13, 1  ;;  %v5421_v47 = vld [vmem:[%s6037_s18 + $0x30c] sm:$0xf0]  ;;  %v5372_v59 = vld [vmem:[%s6037_s18 + $0x18c] sm:$0xf] }
 0x2fd   : > { %v8755_v27 = vadd.f32 %v3029_v12, %v8687_v49  ;;  %v8757_v50 = vadd.f32 %v2966_v20, %v2848_v28  ;;  %v4812_v38 = vor.u32 %v5361_v56, %v4811_v53  ;;  %v3226_v17 = vunpack.c.l.b16 %v3046_v42  ;;  %v5331_v42 = vld [vmem:[%s6037_s18 + $0x44] sm:$0xf] }
 0x2fe   : > { %4119 = vmatpush.bf16.msra.mxu3 %v4736_v7  ;;  %4214 = vmatpush.bf16.msra.mxu0 %v4932_v3  ;;  %v4720_v10 = vor.u32 %v5335_v26, %v4717_v36  ;;  %v8766_v49 = vadd.f32 %v8699_v32, %v8401_v63  ;;  %v3225_v0 = vunpack.c.l.b16 %v3045_v6  ;;  %v3232_v52 = vunpack.c.l.b16 %v3052_v54  ;;  %v4869_v3 = vld [vmem:[%s6037_s18 + $0x198] sm:$0xf0]  ;;  %v5379_v26 = vld [vmem:[%s6037_s18 + $0x1c4] sm:$0xf]  ;;  %v4893_v36 = vld [vmem:[%s6037_s18 + $0x1d0] sm:$0xf0] }
 0x2ff   : > { %4095 = vmatpush.bf16.msra.mxu1 %v5084_v34  ;;  %v4904_v43 = vor.u32 %v5380_v46, %v4901_v18  ;;  %v5068_v16 = vor.u32 %v5425_v9, %v5067_v1  ;;  %vm3235_vm7 = vcmask 1041409   ;;  %v4796_v45 = vor.u32 %v5357_v2, %v4795_v22  ;;  %v5323_v34 = vld [vmem:[%s6037_s18 + $0x4] sm:$0xf]  ;;  %v4669_v18 = vld [vmem:[%s6037_s18 + $0x10] sm:$0xf0] }
 0x300   : > { %4070 = vmatpush.bf16.msrb.mxu2 %v4812_v38  ;;  %v4614_v32 = vmul.f32 -1.442695, %v8766_v49  ;;  %v3236_v35 = vsel %vm3235_vm7, %v3230_v11, %v3225_v0  ;;  %v3237_v6 = vsel %vm3235_vm7, %v3231_v55, %v3226_v17  ;;  %v3227_v8 = vunpack.c.l.b16 %v3047_v51  ;;  %v4685_v51 = vld [vmem:[%s6037_s18 + $0x30] sm:$0xf0]  ;;  %v1291_v55 = vpop.f32.mrf.mxu0  ;;  %v5447_v1 = vld [vmem:[%s6037_s18 + $0x3e4] sm:$0xf] }
 0x301   : > { %v8778_v15 = vpop.eup %5857  ;;  %v8784_v25 = vadd.f32 %v2964_v44, %v8604_v13  ;;  %v3053_v48 = vpack.c.bf16 %v8755_v27, %v8755_v27  ;;  %v8788_v5 = vpack.c.b16 %v3236_v35, %v3236_v35  ;;  %v4704_v19 = vor.u32 %v5331_v42, %v4701_v31  ;;  %v5383_v13 = vld [vmem:[%s6037_s18 + $0x1e4] sm:$0xf]  ;;  %v5165_v22 = vld [vmem:[%s6037_s18 + $0x3f0] sm:$0xf0]  ;;  %v5368_v2 = vld [vmem:[%s6037_s18 + $0x16c] sm:$0xf] }
 0x302   : > { %4259 = vmatpush.bf16.msrb.mxu0 %v4920_v21  ;;  %v5860_v20 = vpop.eup %5859  ;;  %v1920_v33 = vmul.f32 %v8778_v15, %v8731_v39  ;;  %4120 = vmatpush.bf16.msra.mxu3 %v4720_v10  ;;  %5861 = vpow2.f32 %v4614_v32  ;;  %v8799_v24 = vadd.f32 %v1289_v23, %v8401_v63  ;;  %v1928_v57 = vand.u32 2147483647, %v8731_v39  ;;  %v4853_v17 = vld [vmem:[%s6037_s18 + $0x178] sm:$0xf0]  ;;  %v5375_v31 = vld [vmem:[%s6037_s18 + $0x1a4] sm:$0xf] }
 0x303   : > { %v8802_v30 = vadd.f32 1.0, %v5860_v20  ;;  %4096 = vmatpush.bf16.msra.mxu1 %v5068_v16  ;;  %v4888_v12 = vor.u32 %v5376_v40, %v4885_v41  ;;  %v8804_v29 = vpack.c.b16 %v3237_v6, %v3237_v6  ;;  %v5052_v58 = vor.u32 %v5421_v47, %v5051_v14  ;;  %v4877_v32 = vld [vmem:[%s6037_s18 + $0x1b0] sm:$0xf0]  ;;  %v5443_v6 = vld [vmem:[%s6037_s18 + $0x3c4] sm:$0xf] }
 0x304   : > { %v1921_v61 = vsub.f32 1.0, %v1920_v33  ;;  %4071 = vmatpush.bf16.msrb.mxu2 %v4796_v45  ;;  %4059 = vmatmul.bf16.vlgmr.msrb.gmra.mxu1 %v8788_v5  ;;  %v4619_v7 = vmul.f32 -1.442695, %v8799_v24  ;;  %v3238_v53 = vsel %vm3235_vm7, %v3232_v52, %v3227_v8  ;;  %v1930_v56 = vand.u32 2147483648, %v8731_v39  ;;  %v5149_v14 = vld [vmem:[%s6037_s18 + $0x3d0] sm:$0xf0] }
 0x305   : > { %5863 = vrcp.f32 %v8802_v30  ;;  %v4688_v11 = vor.u32 %v5327_v4, %v4685_v51  ;;  %v4912_v54 = vor.u32 %v5383_v13, %v4909_v62  ;;  %vm1925_vm13 = vweird.f32 %v8778_v15  ;;  %v5364_v47 = vld [vmem:[%s6037_s18 + $0x14c] sm:$0xf]  ;;  %v4837_v4 = vld [vmem:[%s6037_s18 + $0x158] sm:$0xf0]  ;;  %v5371_v62 = vld [vmem:[%s6037_s18 + $0x184] sm:$0xf] }
 0x306   : > { %4260 = vmatpush.bf16.msrb.mxu0 %v4904_v43  ;;  %v1922_v28 = vmul.f32 %v8778_v15, %v1921_v61  ;;  %4121 = vmatpush.bf16.msra.mxu3 %v4704_v19  ;;  %5865 = vpow2.f32 %v4619_v7  ;;  %v8817_v46 = vpack.c.b16 %v3238_v53, %v3238_v53  ;;  %v4872_v21 = vor.u32 %v5372_v59, %v4869_v3  ;;  %v5439_v61 = vld [vmem:[%s6037_s18 + $0x3a4] sm:$0xf]  ;;  %v5133_v7 = vld [vmem:[%s6037_s18 + $0x3b0] sm:$0xf0]  ;;  %v5360_v3 = vld [vmem:[%s6037_s18 + $0x12c] sm:$0xf] }
 0x307   : > { %4072 = vmatmul.bf16.vlgmr.msrb.gmra.mxu2 %v8804_v29  ;;  %v8824_v9 = vadd.f32 %v1291_v55, %v8401_v63  ;;  %v3048_v27 = vpack.c.bf16 %v8784_v25, %v8784_v25  ;;  %vm1924_vm14 = vweird.f32 %v8731_v39  ;;  %4097 = vmatpush.bf16.msra.mxu1 %v5052_v58  ;;  %v1931_v0 = vor.u32 1.1754944e-38, %v1930_v56  ;;  %v4821_v53 = vld [vmem:[%s6037_s18 + $0x138] sm:$0xf0] }
 0x308   : > { %v5862_v44 = vpop.eup %5861  ;;  %v1923_v38 = vadd.f32 %v8778_v15, %v1922_v28  ;;  %4085 = vmatmul.bf16.vlgmr.msrb.gmra.mxu3 %v8817_v46  ;;  %vm8836_vm15 = vmor %vm1924_vm14, %vm1925_vm13  ;;  %v4896_v52 = vor.u32 %v5379_v26, %v4893_v36  ;;  %4215 = vmatmul.bf16.vlgmr.msra.gmra.mxu0 %v8817_v46  ;;  %v3233_v43 = vunpack.c.l.b16 %v3053_v48  ;;  %vm1929_vm12 = vcmp.eq.f32.partialorder %v1928_v57, 8.507059e+37  ;;  %v4861_v57 = vld [vmem:[%s6037_s18 + $0x190] sm:$0xf0]  ;;  %v1294_v28 = vpop.f32.mrf.mxu0 }
 0x309   : > { %v8840_v23 = vadd.f32 1.0, %v5862_v44  ;;  %v4624_v39 = vmul.f32 -1.442695, %v8824_v9  ;;  %v4672_v42 = vor.u32 %v5323_v34, %v4669_v18  ;;  %v5168_v41 = vor.u32 %v5447_v1, %v5165_v22  ;;  %v5367_v34 = vld [vmem:[%s6037_s18 + $0x164] sm:$0xf] }
 0x30a   : > { %4261 = vmatpush.bf16.msrb.mxu0 %v4888_v12  ;;  %v1927_v16 = vsel %vm8836_vm15, %v8778_v15, %v1923_v38  ;;  %4122 = vmatpush.bf16.msra.mxu3 %v4688_v11  ;;  %v4856_v35 = vor.u32 %v5368_v2, %v4853_v17  ;;  %v3228_v15 = vunpack.c.l.b16 %v3048_v27  ;;  %v2003_v20 = vand.u32 2147483647, %v8802_v30  ;;  %v5435_v22 = vld [vmem:[%s6037_s18 + $0x384] sm:$0xf]  ;;  %v5117_v2 = vld [vmem:[%s6037_s18 + $0x390] sm:$0xf0] }
 0x30b   : > { %4129 = vmatpush.bf16.msrb.mxu1 %v4912_v54  ;;  %v8849_v45 = vpop.eup %5863  ;;  %v1932_v40 = vsel %vm1929_vm12, %v1931_v0, %v1927_v16  ;;  %5867 = vrcp.f32 %v8840_v23  ;;  %v4880_v19 = vor.u32 %v5375_v31, %v4877_v32  ;;  %v2005_v13 = vand.u32 2147483648, %v8802_v30 }
 0x30c   : > { %v5866_v8 = vpop.eup %5865  ;;  %v2853_v25 = vmul.f32 %v1932_v40, %v8650_v60  ;;  %v1995_v48 = vmul.f32 %v8849_v45, %v8802_v30  ;;  %5869 = vpow2.f32 %v4624_v39  ;;  %v5152_v12 = vor.u32 %v5443_v6, %v5149_v14  ;;  %v5356_v39 = vld [vmem:[%s6037_s18 + $0x10c] sm:$0xf]  ;;  %v4829_v6 = vld [vmem:[%s6037_s18 + $0x150] sm:$0xf0] }
 0x30d   : > { %v8860_v33 = vadd.f32 1.0, %v5866_v8  ;;  %v4840_v59 = vor.u32 %v5364_v47, %v4837_v4  ;;  %v3239_v58 = vsel %vm3235_vm7, %v3233_v43, %v3228_v15  ;;  %vm2000_vm3 = vweird.f32 %v8849_v45  ;;  %v4805_v43 = vld [vmem:[%s6037_s18 + $0x118] sm:$0xf0]  ;;  %v5386_v8 = vld [vmem:[%s6037_s18 + $0x1f4] sm:$0xf0] }
 0x30e   : > { %4262 = vmatpush.bf16.msrb.mxu0 %v4872_v21  ;;  %v8863_v51 = vadd.f32 %v8757_v50, %v2853_v25  ;;  %v1996_v60 = vsub.f32 1.0, %v1995_v48  ;;  %4123 = vmatpush.bf16.msra.mxu3 %v4672_v42  ;;  %vm1999_vm4 = vweird.f32 %v8802_v30  ;;  %vm8879_vm2 = vcmp.eq.f32.partialorder %v2003_v20, 8.507059e+37  ;;  %v4845_v30 = vld [vmem:[%s6037_s18 + $0x170] sm:$0xf0]  ;;  %v5431_v25 = vld [vmem:[%s6037_s18 + $0x364] sm:$0xf] }
 0x30f   : > { %4130 = vmatpush.bf16.msrb.mxu1 %v4896_v52  ;;  %5871 = vrcp.f32 %v8860_v33  ;;  %v4864_v54 = vor.u32 %v5371_v62, %v4861_v57  ;;  %v2006_v36 = vor.u32 1.1754944e-38, %v2005_v13  ;;  %v8886_v21 = vpack.c.b16 %v3239_v58, %v3239_v58  ;;  %vm8892_vm9 = vmor %vm1999_vm4, %vm2000_vm3  ;;  %v5101_v20 = vld [vmem:[%s6037_s18 + $0x370] sm:$0xf0] }
 0x310   : > { %v1997_v50 = vmul.f32 %v8849_v45, %v1996_v60  ;;  %v2078_v44 = vand.u32 2147483647, %v8840_v23  ;;  %v5136_v27 = vor.u32 %v5439_v61, %v5133_v7  ;;  %v4824_v38 = vor.u32 %v5360_v3, %v4821_v53  ;;  %v1296_v62 = vpop.f32.mrf.mxu0  ;;  %v4813_v61 = vld [vmem:[%s6037_s18 + $0x130] sm:$0xf0]  ;;  %v5427_v53 = vld [vmem:[%s6037_s18 + $0x344] sm:$0xf] }
 0x311   : > { %v8876_v56 = vpop.eup %5867  ;;  %v8906_v52 = vadd.f32 %v1294_v28, %v8401_v63  ;;  %vm2074_vm0 = vweird.f32 %v8840_v23  ;;  %v2080_v31 = vand.u32 2147483648, %v8840_v23  ;;  %v4848_v32 = vor.u32 %v5367_v34, %v4845_v30  ;;  %v4797_v34 = vld [vmem:[%s6037_s18 + $0x110] sm:$0xf0] }
 0x312   : > { %4155 = vmatpush.bf16.msrb.mxu3 %v5168_v41  ;;  %4263 = vmatpush.bf16.msrb.mxu0 %v4856_v35  ;;  %v1998_v26 = vadd.f32 %v8849_v45, %v1997_v50  ;;  %v2070_v55 = vmul.f32 %v8876_v56, %v8840_v23  ;;  %v5870_v18 = vpop.eup %5869  ;;  %vm2075_vm1 = vweird.f32 %v8876_v56  ;;  %v5363_v35 = vld [vmem:[%s6037_s18 + $0x144] sm:$0xf]  ;;  %vm8923_vm5 = vcmp.eq.f32.partialorder %v2078_v44, 8.507059e+37 }
 0x313   : > { %4131 = vmatpush.bf16.msrb.mxu1 %v4880_v19  ;;  %v8902_v0 = vadd.f32 1.0, %v5870_v18  ;;  %v5120_v15 = vor.u32 %v5435_v22, %v5117_v2  ;;  %v4629_v4 = vmul.f32 -1.442695, %v8906_v52  ;;  %vm2076_vm8 = vmor %vm2074_vm0, %vm2075_vm1  ;;  %v2081_v19 = vor.u32 1.1754944e-38, %v2080_v31 }
 0x314   : > { %v2002_v17 = vsel %vm8892_vm9, %v8849_v45, %v1998_v26  ;;  %v2071_v10 = vsub.f32 1.0, %v2070_v55  ;;  %4098 = vmatmul.bf16.vlgmr.msra.gmra.mxu1 %v8886_v21  ;;  %v2153_v60 = vand.u32 2147483647, %v8860_v33  ;;  %v4832_v13 = vor.u32 %v5363_v35, %v4829_v6  ;;  %v5355_v55 = vld [vmem:[%s6037_s18 + $0x104] sm:$0xf] }
 0x315   : > { %v8910_v16 = vpop.eup %5871  ;;  %v2007_v42 = vsel %vm8879_vm2, %v2006_v36, %v2002_v17  ;;  %5873 = vrcp.f32 %v8902_v0  ;;  %v8946_v23 = vadd.f32 %v1296_v62, %v8401_v63  ;;  %v5104_v50 = vor.u32 %v5431_v25, %v5101_v20  ;;  %v4915_v6 = vld [vmem:[%s6037_s18 + $0x1e8] sm:$0xf] }
 0x316   : > { %4156 = vmatpush.bf16.msrb.mxu3 %v5152_v12  ;;  %4264 = vmatpush.bf16.msrb.mxu0 %v4840_v59  ;;  %v2858_v45 = vmul.f32 %v2007_v42, %v8719_v37  ;;  %v2072_v40 = vmul.f32 %v8876_v56, %v2071_v10  ;;  %v2145_v41 = vmul.f32 %v8910_v16, %v8860_v33  ;;  %vm2150_vm10 = vweird.f32 %v8910_v16  ;;  %v5359_v59 = vld [vmem:[%s6037_s18 + $0x124] sm:$0xf] }
 0x317   : > { %4132 = vmatpush.bf16.msrb.mxu1 %v4864_v54  ;;  %v4808_v37 = vor.u32 %v5356_v39, %v4805_v43  ;;  %vm2149_vm11 = vweird.f32 %v8860_v33  ;;  %5875 = vpow2.f32 %v4629_v4  ;;  %vm2154_vm14 = vcmp.eq.f32.partialorder %v2153_v60, 8.507059e+37  ;;  %v5382_v4 = vld [vmem:[%s6037_s18 + $0x1d4] sm:$0xf0] }
 0x318   : > { %v2969_v48 = vadd.f32 %v8863_v51, %v2858_v45  ;;  %v2073_v14 = vadd.f32 %v8876_v56, %v2072_v40  ;;  %v2146_v47 = vsub.f32 1.0, %v2145_v41  ;;  %4124 = vmatmul.bf16.vlgmr.msra.gmra.mxu3 %v8788_v5  ;;  %v2155_v51 = vand.u32 2147483648, %v8860_v33  ;;  %vm2151_vm13 = vmor %vm2149_vm11, %vm2150_vm10  ;;  %v1299_v10 = vpop.f32.mrf.mxu0  ;;  %v5419_v45 = vld [vmem:[%s6037_s18 + $0x304] sm:$0xf]  ;;  %v5053_v40 = vld [vmem:[%s6037_s18 + $0x310] sm:$0xf0] }
 0x319   : > { %v4816_v28 = vor.u32 %v5359_v59, %v4813_v61  ;;  %v4634_v33 = vmul.f32 -1.442695, %v8946_v23  ;;  %v2228_v22 = vand.u32 2147483647, %v8902_v0  ;;  %v2230_v2 = vand.u32 2147483648, %v8902_v0 }
 0x31a   : > { %4157 = vmatpush.bf16.msrb.mxu3 %v5136_v27  ;;  %4265 = vmatpush.bf16.msrb.mxu0 %v4824_v38  ;;  %v2077_v57 = vsel %vm2076_vm8, %v8876_v56, %v2073_v14  ;;  %v2147_v12 = vmul.f32 %v8910_v16, %v2146_v47  ;;  %v5085_v56 = vld [vmem:[%s6037_s18 + $0x350] sm:$0xf0]  ;;  %v2156_v54 = vor.u32 1.1754944e-38, %v2155_v51  ;;  %v5423_v27 = vld [vmem:[%s6037_s18 + $0x324] sm:$0xf]  ;;  %v4800_v17 = vor.u32 %v5355_v55, %v4797_v34 }
 0x31b   : > { %4133 = vmatpush.bf16.msrb.mxu1 %v4848_v32  ;;  %v2082_v58 = vsel %vm8923_vm5, %v2081_v19, %v2077_v57  ;;  %v5874_v11 = vpop.eup %5873  ;;  %v5088_v18 = vor.u32 %v5427_v53, %v5085_v56  ;;  %v5069_v38 = vld [vmem:[%s6037_s18 + $0x330] sm:$0xf0]  ;;  %5877 = vpow2.f32 %v4634_v33  ;;  %vm2224_vm12 = vweird.f32 %v8902_v0  ;;  %v4899_v47 = vld [vmem:[%s6037_s18 + $0x1c8] sm:$0xf] }
 0x31c   : > { %v2863_v7 = vmul.f32 %v2082_v58, %v8766_v49  ;;  %v2148_v3 = vadd.f32 %v8910_v16, %v2147_v12  ;;  %v2220_v36 = vmul.f32 %v5874_v11, %v8902_v0  ;;  %vm2225_vm15 = vweird.f32 %v5874_v11  ;;  %v4883_v57 = vld [vmem:[%s6037_s18 + $0x1a8] sm:$0xf]  ;;  %v5378_v12 = vld [vmem:[%s6037_s18 + $0x1b4] sm:$0xf0] }
 0x31d   : > { %v5876_v39 = vpop.eup %5875  ;;  %v5072_v42 = vor.u32 %v5423_v27, %v5069_v38  ;;  %vm2226_vm3 = vmor %vm2224_vm12, %vm2225_vm15  ;;  %v2231_v41 = vor.u32 1.1754944e-38, %v2230_v2  ;;  %vm2229_vm4 = vcmp.eq.f32.partialorder %v2228_v22, 8.507059e+37  ;;  %v5056_v0 = vor.u32 %v5419_v45, %v5053_v40 }
 0x31e   : > { %4158 = vmatpush.bf16.msrb.mxu3 %v5120_v15  ;;  %4266 = vmatpush.bf16.msrb.mxu0 %v4808_v37  ;;  %v2970_v49 = vadd.f32 %v2969_v48, %v2863_v7  ;;  %v2152_v26 = vsel %vm2151_vm13, %v8910_v16, %v2148_v3  ;;  %v2221_v44 = vsub.f32 1.0, %v2220_v36  ;;  %v8976_v35 = vadd.f32 1.0, %v5876_v39  ;;  %v5374_v7 = vld [vmem:[%s6037_s18 + $0x194] sm:$0xf0] }
 0x31f   : > { %4134 = vmatpush.bf16.msrb.mxu1 %v4832_v13  ;;  %v2157_v30 = vsel %vm2154_vm14, %v2156_v54, %v2152_v26  ;;  %v4916_v14 = vor.u32 %v5386_v8, %v4915_v6  ;;  %v4900_v13 = vor.u32 %v5382_v4, %v4899_v47  ;;  %v4884_v58 = vor.u32 %v5378_v12, %v4883_v57  ;;  %v4851_v26 = vld [vmem:[%s6037_s18 + $0x168] sm:$0xf]  ;;  %v5370_v36 = vld [vmem:[%s6037_s18 + $0x174] sm:$0xf0]  ;;  %v4789_v12 = vld [vmem:[%s6037_s18 + $0xf8] sm:$0xf0] }
 0x320   : > { %v2868_v1 = vmul.f32 %v2157_v30, %v8799_v24  ;;  %v2222_v16 = vmul.f32 %v5874_v11, %v2221_v44  ;;  %v8969_v24 = vadd.f32 %v1299_v10, %v8401_v63  ;;  %v1301_v20 = vpop.f32.mrf.mxu0  ;;  %v4852_v30 = vor.u32 %v5370_v36, %v4851_v26  ;;  %v5366_v44 = vld [vmem:[%s6037_s18 + $0x154] sm:$0xf0]  ;;  %v4803_v4 = vld [vmem:[%s6037_s18 + $0x108] sm:$0xf] }
 0x321   : > { %4267 = vmatmul.bf16.vlgmr.msrb.gmra.mxu0 %v8804_v29  ;;  %v5878_v25 = vpop.eup %5877  ;;  %v8988_v60 = vadd.f32 %v1301_v20, %v8401_v63  ;;  %v2303_v2 = vand.u32 2147483647, %v8976_v35  ;;  %vm2299_vm9 = vweird.f32 %v8976_v35  ;;  %v5358_v20 = vld [vmem:[%s6037_s18 + $0x114] sm:$0xf0] }
 0x322   : > { %4159 = vmatpush.bf16.msrb.mxu3 %v5104_v50  ;;  %v2971_v43 = vadd.f32 %v2970_v49, %v2868_v1  ;;  %v2223_v31 = vadd.f32 %v5874_v11, %v2222_v16  ;;  %v4639_v32 = vmul.f32 -1.442695, %v8969_v24  ;;  %v8990_v51 = vadd.f32 1.0, %v5878_v25  ;;  %v4867_v50 = vld [vmem:[%s6037_s18 + $0x188] sm:$0xf] }
 0x323   : > { %4135 = vmatpush.bf16.msrb.mxu1 %v4816_v28  ;;  %v4644_v62 = vmul.f32 -1.442695, %v8988_v60  ;;  %v4868_v54 = vor.u32 %v5374_v7, %v4867_v50  ;;  %v4835_v1 = vld [vmem:[%s6037_s18 + $0x148] sm:$0xf]  ;;  %vm9040_vm0 = vcmp.eq.f32.partialorder %v2303_v2, 8.507059e+37  ;;  %v4804_v36 = vor.u32 %v5358_v20, %v4803_v4 }
 0x324   : > { %v2227_v15 = vsel %vm2226_vm3, %v5874_v11, %v2223_v31  ;;  %5879 = vpow2.f32 %v4639_v32  ;;  %v2380_v10 = vand.u32 2147483648, %v8990_v51  ;;  %v4836_v16 = vor.u32 %v5366_v44, %v4835_v1  ;;  %v4819_v31 = vld [vmem:[%s6037_s18 + $0x128] sm:$0xf]  ;;  %v5362_v32 = vld [vmem:[%s6037_s18 + $0x134] sm:$0xf0] }
 0x325   : > { %v2232_v37 = vsel %vm2229_vm4, %v2231_v41, %v2227_v15  ;;  %5881 = vrcp.f32 %v8976_v35  ;;  %v2378_v40 = vand.u32 2147483647, %v8990_v51  ;;  %v4820_v47 = vor.u32 %v5362_v32, %v4819_v31  ;;  %v5481_v50 = vld [vmem:[%s6037_s18 + $0x4ec] sm:$0xf0]  ;;  %v4773_v2 = vld [vmem:[%s6037_s18 + $0xd8] sm:$0xf0] }
 0x326   : > { %4160 = vmatpush.bf16.msrb.mxu3 %v5088_v18  ;;  %v2873_v48 = vmul.f32 %v2232_v37, %v8824_v9  ;;  %5883 = vpow2.f32 %v4644_v62  ;;  %v9044_v37 = vor.u32 1.1754944e-38, %v2380_v10  ;;  %vm2374_vm10 = vweird.f32 %v8990_v51  ;;  %v5275_v10 = vld [vmem:[%s6037_s18 + $0x4c0] sm:$0xf]  ;;  %v5277_v31 = vld [vmem:[%s6037_s18 + $0x4d0] sm:$0xf0] }
 0x327   : > { %4136 = vmatpush.bf16.msrb.mxu1 %v4800_v17  ;;  %5885 = vrcp.f32 %v8990_v51  ;;  %v2305_v17 = vand.u32 2147483648, %v8976_v35  ;;  %vm9061_vm5 = vcmp.eq.f32.partialorder %v2378_v40, 8.507059e+37  ;;  %v4757_v4 = vld [vmem:[%s6037_s18 + $0xb8] sm:$0xf0] }
 0x328   : > { %v8985_v19 = vadd.f32 %v2971_v43, %v2873_v48  ;;  %v1304_v3 = vpop.f32.mrf.mxu0 }
 0x329   : > { %v9007_v56 = vadd.f32 %v1304_v3, %v8401_v63  ;;  %v2306_v15 = vor.u32 1.1754944e-38, %v2305_v17 }
 0x32a   : > { %4161 = vmatpush.bf16.msrb.mxu3 %v5072_v42  ;;  %4137 = vmatmul.bf16.vlgmr.msrb.gmra.mxu1 %v8804_v29  ;;  %v5880_v9 = vpop.eup %5879  ;;  %v2973_v6 = vrot.slane %v8985_v19, 4 }
 0x32b   : > { %v8996_v59 = vpop.eup %5881  ;;  %v8999_v61 = vadd.f32 1.0, %v5880_v9  ;;  %v4649_v49 = vmul.f32 -1.442695, %v9007_v56  ;;  %v5352_v9 = vld [vmem:[%s6037_s18 + $0xec] sm:$0xf] }
 0x32c   : > { %v2295_v53 = vmul.f32 %v8996_v59, %v8976_v35  ;;  %v5884_v11 = vpop.eup %5883  ;;  %vm2300_vm2 = vweird.f32 %v8996_v59  ;;  %v4792_v1 = vor.u32 %v5352_v9, %v4789_v12  ;;  %v5259_v9 = vld [vmem:[%s6037_s18 + $0x4a0] sm:$0xf] }
 0x32d   : > { %5887 = vrcp.f32 %v8999_v61  ;;  %v9009_v28 = vpop.eup %5885  ;;  %v9014_v55 = vadd.f32 1.0, %v5884_v11  ;;  %vm9048_vm1 = vmor %vm2299_vm9, %vm2300_vm2  ;;  %v2453_v7 = vand.u32 2147483647, %v8999_v61  ;;  %v5479_v11 = vld [vmem:[%s6037_s18 + $0x4e4] sm:$0xf]  ;;  %vm2449_vm15 = vweird.f32 %v8999_v61 }
 0x32e   : > { %4162 = vmatpush.bf16.msrb.mxu3 %v5056_v0  ;;  %v2296_v33 = vsub.f32 1.0, %v2295_v53  ;;  %v2370_v34 = vmul.f32 %v9009_v28, %v8990_v51  ;;  %5889 = vpow2.f32 %v4649_v49  ;;  %vm2375_vm8 = vweird.f32 %v9009_v28  ;;  %v5475_v51 = vld [vmem:[%s6037_s18 + $0x4c4] sm:$0xf] }
 0x32f   : > { %5891 = vrcp.f32 %v9014_v55  ;;  %vm9093_vm11 = vmor %vm2374_vm10, %vm2375_vm8  ;;  %vm9098_vm14 = vcmp.eq.f32.partialorder %v2453_v7, 8.507059e+37  ;;  %vm2524_vm3 = vweird.f32 %v9014_v55 }
 0x330   : > { %v1306_v27 = vpop.f32.mrf.mxu0  ;;  %v2297_v38 = vmul.f32 %v8996_v59, %v2296_v33  ;;  %v2371_v39 = vsub.f32 1.0, %v2370_v34  ;;  %v5293_v33 = vld [vmem:[%s6037_s18 + $0x4f0] sm:$0xf0]  ;;  %v2455_v34 = vand.u32 2147483648, %v8999_v61 }
 0x331   : > { %4163 = vmatmul.bf16.vlgmr.msrb.gmra.mxu3 %v8886_v21  ;;  %v9025_v22 = vadd.f32 %v1306_v27, %v8401_v63  ;;  %v5348_v27 = vld [vmem:[%s6037_s18 + $0xcc] sm:$0xf]  ;;  %v5296_v17 = vor.u32 %v5479_v11, %v5293_v33  ;;  %v4741_v33 = vld [vmem:[%s6037_s18 + $0x98] sm:$0xf0] }
 0x332   : > { %4194 = vmatpush.bf16.msra.mxu3 %v4916_v14  ;;  %v2298_v45 = vadd.f32 %v8996_v59, %v2297_v38  ;;  %v2372_v25 = vmul.f32 %v9009_v28, %v2371_v39  ;;  %v5477_v39 = vld [vmem:[%s6037_s18 + $0x4cc] sm:$0xf0]  ;;  %v2456_v8 = vor.u32 1.1754944e-38, %v2455_v34  ;;  %v4776_v35 = vor.u32 %v5348_v27, %v4773_v2  ;;  %v5243_v34 = vld [vmem:[%s6037_s18 + $0x480] sm:$0xf] }
 0x333   : > { %v9018_v18 = vpop.eup %5887  ;;  %v4654_v42 = vmul.f32 -1.442695, %v9025_v22  ;;  %4168 = vmatpush.bf16.msra.mxu1 %v5296_v17  ;;  %v5245_v17 = vld [vmem:[%s6037_s18 + $0x490] sm:$0xf0] }
 0x334   : > { %v2445_v43 = vmul.f32 %v9018_v18, %v8999_v61  ;;  %v5890_v41 = vpop.eup %5889  ;;  %v2302_v62 = vsel %vm9048_vm1, %v8996_v59, %v2298_v45  ;;  %v2373_v49 = vadd.f32 %v9009_v28, %v2372_v25  ;;  %vm2450_vm13 = vweird.f32 %v9018_v18  ;;  %v5344_v25 = vld [vmem:[%s6037_s18 + $0xac] sm:$0xf] }
 0x335   : > { %5893 = vpow2.f32 %v4654_v42  ;;  %v9046_v0 = vpop.eup %5891  ;;  %v9053_v14 = vadd.f32 1.0, %v5890_v41  ;;  %v2307_v38 = vsel %vm9040_vm0, %v2306_v15, %v2302_v62  ;;  %v5276_v41 = vor.u32 %v5477_v39, %v5275_v10  ;;  %vm9127_vm12 = vmor %vm2449_vm15, %vm2450_vm13 }
 0x336   : > { %4195 = vmatpush.bf16.msra.mxu3 %v4900_v13  ;;  %v2446_v48 = vsub.f32 1.0, %v2445_v43  ;;  %v2520_v3 = vmul.f32 %v9046_v0, %v9014_v55  ;;  %v2377_v45 = vsel %vm9093_vm11, %v9009_v28, %v2373_v49  ;;  %v2878_v28 = vmul.f32 %v2307_v38, %v8906_v52 }
 0x337   : > { %5895 = vrcp.f32 %v9053_v14  ;;  %v2382_v62 = vsel %vm9061_vm5, %v9044_v37, %v2377_v45  ;;  %v2528_v61 = vand.u32 2147483647, %v9014_v55  ;;  %v2603_v11 = vand.u32 2147483647, %v9053_v14 }
 0x338   : > { %v1309_v13 = vpop.f32.mrf.mxu0  ;;  %v2447_v26 = vmul.f32 %v9018_v18, %v2446_v48  ;;  %v2521_v42 = vsub.f32 1.0, %v2520_v3  ;;  %vm2525_vm4 = vweird.f32 %v9046_v0  ;;  %vm2599_vm5 = vweird.f32 %v9053_v14 }
 0x339   : > { %v9073_v53 = vadd.f32 %v1309_v13, %v8401_v63  ;;  %v5473_v13 = vld [vmem:[%s6037_s18 + $0x4ac] sm:$0xf0]  ;;  %vm9160_vm2 = vcmp.eq.f32.partialorder %v2528_v61, 8.507059e+37  ;;  %vm9169_vm9 = vmor %vm2524_vm3, %vm2525_vm4  ;;  %vm9177_vm0 = vcmp.eq.f32.partialorder %v2603_v11, 8.507059e+37 }
 0x33a   : > { %4196 = vmatpush.bf16.msra.mxu3 %v4884_v58  ;;  %v5291_v58 = vld [vmem:[%s6037_s18 + $0x4e0] sm:$0xf]  ;;  %v2448_v40 = vadd.f32 %v9018_v18, %v2447_v26  ;;  %v2522_v52 = vmul.f32 %v9046_v0, %v2521_v42  ;;  %v2883_v26 = vmul.f32 %v2382_v62, %v8946_v23  ;;  %v5467_v23 = vld [vmem:[%s6037_s18 + $0x484] sm:$0xf]  ;;  %v5139_v42 = vld [vmem:[%s6037_s18 + $0x3a8] sm:$0xf] }
 0x33b   : > { %v5292_v59 = vor.u32 %v5481_v50, %v5291_v58  ;;  %v4659_v44 = vmul.f32 -1.442695, %v9073_v53  ;;  %v5471_v58 = vld [vmem:[%s6037_s18 + $0x4a4] sm:$0xf]  ;;  %v5261_v50 = vld [vmem:[%s6037_s18 + $0x4b0] sm:$0xf0] }
 0x33c   : > { %v2452_v37 = vsel %vm9127_vm12, %v9018_v18, %v2448_v40  ;;  %v5264_v3 = vor.u32 %v5471_v58, %v5261_v50  ;;  %v5340_v18 = vld [vmem:[%s6037_s18 + $0x8c] sm:$0xf]  ;;  %v2523_v27 = vadd.f32 %v9046_v0, %v2522_v52  ;;  %v4709_v58 = vld [vmem:[%s6037_s18 + $0x58] sm:$0xf0] }
 0x33d   : > { %4103 = vmatpush.bf16.msra.mxu2 %v5292_v59  ;;  %v4744_v45 = vor.u32 %v5340_v18, %v4741_v33  ;;  %v5336_v40 = vld [vmem:[%s6037_s18 + $0x6c] sm:$0xf]  ;;  %v5459_v18 = vld [vmem:[%s6037_s18 + $0x444] sm:$0xf] }
 0x33e   : > { %4197 = vmatpush.bf16.msra.mxu3 %v4868_v54  ;;  %v5894_v54 = vpop.eup %5893 }
 0x33f   : > { %v9105_v32 = vpop.eup %5895 }
 0x340   : > { %v2595_v15 = vmul.f32 %v9105_v32, %v9053_v14  ;;  %v1311_v48 = vpop.f32.mrf.mxu0  ;;  %vm2600_vm1 = vweird.f32 %v9105_v32 }
 0x341   : > { %v9118_v20 = vadd.f32 %v1311_v48, %v8401_v63  ;;  %4104 = vmatpush.bf16.msra.mxu2 %v5276_v41  ;;  %v5260_v63 = vor.u32 %v5473_v13, %v5259_v9  ;;  %v2527_v48 = vsel %vm9169_vm9, %v9046_v0, %v2523_v27  ;;  %v5463_v9 = vld [vmem:[%s6037_s18 + $0x464] sm:$0xf]  ;;  %vm9208_vm8 = vmor %vm2599_vm5, %vm2600_vm1  ;;  %v4693_v27 = vld [vmem:[%s6037_s18 + $0x38] sm:$0xf0]  ;;  %vm4320_vm5 = vcmask 1045508  }
 0x342   : > { %4198 = vmatpush.bf16.msra.mxu3 %v4852_v30  ;;  %v9081_v30 = vadd.f32 1.0, %v5894_v54  ;;  %v2596_v57 = vsub.f32 1.0, %v2595_v15  ;;  %v4760_v54 = vor.u32 %v5344_v25, %v4757_v4  ;;  %v5227_v15 = vld [vmem:[%s6037_s18 + $0x460] sm:$0xf]  ;;  %v3031_v25 = vadd.f32 %v2883_v26, %v2878_v28 }
 0x343   : > { %v4664_v7 = vmul.f32 -1.442695, %v9118_v20 }
 0x344   : > { %5897 = vrcp.f32 %v9081_v30  ;;  %v2597_v39 = vmul.f32 %v9105_v32, %v2596_v57  ;;  %v2680_v52 = vand.u32 2147483648, %v9081_v30  ;;  %v5211_v57 = vld [vmem:[%s6037_s18 + $0x440] sm:$0xf]  ;;  %vm2674_vm13 = vweird.f32 %v9081_v30 }
 0x345   : > { %5899 = vpow2.f32 %v4659_v44  ;;  %4105 = vmatpush.bf16.msra.mxu2 %v5260_v63  ;;  %v2457_v44 = vsel %vm9098_vm14, %v2456_v8, %v2452_v37  ;;  %v5332_v63 = vld [vmem:[%s6037_s18 + $0x4c] sm:$0xf] }
 0x346   : > { %4199 = vmatpush.bf16.msra.mxu3 %v4836_v16  ;;  %5901 = vpow2.f32 %v4664_v7  ;;  %v5248_v16 = vor.u32 %v5467_v23, %v5245_v17  ;;  %v2888_v41 = vmul.f32 %v2457_v44, %v8969_v24  ;;  %v5229_v24 = vld [vmem:[%s6037_s18 + $0x470] sm:$0xf0]  ;;  %v2598_v62 = vadd.f32 %v9105_v32, %v2597_v39  ;;  %v5461_v7 = vld [vmem:[%s6037_s18 + $0x44c] sm:$0xf0]  ;;  %v5328_v44 = vld [vmem:[%s6037_s18 + $0x2c] sm:$0xf] }
 0x347   : > { %v5232_v12 = vor.u32 %v5463_v9, %v5229_v24  ;;  %v2681_v17 = vor.u32 1.1754944e-38, %v2680_v52  ;;  %v5195_v39 = vld [vmem:[%s6037_s18 + $0x420] sm:$0xf]  ;;  %v5324_v8 = vld [vmem:[%s6037_s18 + $0xc] sm:$0xf] }
 0x348   : > { %v3032_v50 = vadd.f32 %v3031_v25, %v2888_v41  ;;  %v2602_v26 = vsel %vm9208_vm8, %v9105_v32, %v2598_v62  ;;  %v5212_v32 = vor.u32 %v5461_v7, %v5211_v57  ;;  %v5453_v25 = vld [vmem:[%s6037_s18 + $0x40c] sm:$0xf0]  ;;  %v5037_v9 = vld [vmem:[%s6037_s18 + $0x2f0] sm:$0xf0]  ;;  %v5451_v24 = vld [vmem:[%s6037_s18 + $0x404] sm:$0xf] }
 0x349   : > { %v5171_v52 = vld [vmem:[%s6037_s18 + $0x3e8] sm:$0xf] }
 0x34a   : > { %4200 = vmatpush.bf16.msra.mxu3 %v4820_v47  ;;  %v5280_v47 = vor.u32 %v5475_v51, %v5277_v31  ;;  %v9140_v59 = vpop.eup %5897  ;;  %v2605_v31 = vand.u32 2147483648, %v9053_v14 }
 0x34b   : > { %v5900_v49 = vpop.eup %5899  ;;  %vm2675_vm10 = vweird.f32 %v9140_v59 }
 0x34c   : > { %4169 = vmatpush.bf16.msra.mxu1 %v5280_v47  ;;  %v9156_v38 = vadd.f32 1.0, %v5900_v49  ;;  %v2678_v47 = vand.u32 2147483647, %v9081_v30  ;;  %v5902_v13 = vpop.eup %5901  ;;  %v5213_v49 = vld [vmem:[%s6037_s18 + $0x450] sm:$0xf0]  ;;  %vm9237_vm14 = vmor %vm2674_vm13, %vm2675_vm10 }
 0x34d   : > { %v9194_v0 = vadd.f32 1.0, %v5902_v13 }
 0x34e   : > { %4201 = vmatpush.bf16.msra.mxu3 %v4804_v36  ;;  %v2670_v36 = vmul.f32 %v9140_v59, %v9081_v30  ;;  %5903 = vrcp.f32 %v9156_v38  ;;  %v2753_v37 = vand.u32 2147483647, %v9156_v38  ;;  %v2755_v14 = vand.u32 2147483648, %v9156_v38 }
 0x34f   : > { %5905 = vrcp.f32 %v9194_v0  ;;  %vm9223_vm11 = vcmp.eq.f32.partialorder %v2678_v47, 8.507059e+37  ;;  %v9261_v47 = vadd.f32 %v2973_v6, %v8985_v19  ;;  %vm2749_vm3 = vweird.f32 %v9156_v38 }
 0x350   : > { %v2671_v43 = vsub.f32 1.0, %v2670_v36  ;;  %4170 = vmatpush.bf16.msra.mxu1 %v5264_v3  ;;  %vm9241_vm15 = vcmp.eq.f32.partialorder %v2753_v37, 8.507059e+37  ;;  %v2756_v30 = vor.u32 1.1754944e-38, %v2755_v14  ;;  %v2830_v11 = vand.u32 2147483648, %v9194_v0 }
 0x351   : > { %4202 = vmatmul.bf16.vlgmr.msra.gmra.mxu3 %v8804_v29  ;;  %v2530_v29 = vand.u32 2147483648, %v9014_v55  ;;  %v4725_v55 = vld [vmem:[%s6037_s18 + $0x78] sm:$0xf0]  ;;  %vm2824_vm9 = vweird.f32 %v9194_v0 }
 0x352   : > { %4246 = vmatpush.bf16.msrb.mxu3 %v4792_v1  ;;  %v5469_v1 = vld [vmem:[%s6037_s18 + $0x48c] sm:$0xf0]  ;;  %v2672_v28 = vmul.f32 %v9140_v59, %v2671_v43  ;;  %v4728_v61 = vor.u32 %v5336_v40, %v4725_v55  ;;  %v4677_v55 = vld [vmem:[%s6037_s18 + $0x18] sm:$0xf0] }
 0x353   : > { %v5244_v2 = vor.u32 %v5469_v1, %v5243_v34  ;;  %v2531_v51 = vor.u32 1.1754944e-38, %v2530_v29  ;;  %v4712_v1 = vor.u32 %v5332_v63, %v4709_v58  ;;  %v5457_v43 = vld [vmem:[%s6037_s18 + $0x42c] sm:$0xf0]  ;;  %v2828_v63 = vand.u32 2147483647, %v9194_v0 }
 0x354   : > { %4171 = vmatpush.bf16.msra.mxu1 %v5248_v16  ;;  %v9202_v3 = vpop.eup %5903  ;;  %v2673_v36 = vadd.f32 %v9140_v59, %v2672_v28  ;;  %v5301_v58 = vld [vmem:[%s6037_s18 + $0x4f8] sm:$0xf0]  ;;  %v5446_v34 = vld [vmem:[%s6037_s18 + $0x3d4] sm:$0xf0] }
 0x355   : > { %4106 = vmatpush.bf16.msra.mxu2 %v5244_v2  ;;  %v2532_v29 = vsel %vm9160_vm2, %v2531_v51, %v2527_v48  ;;  %v2745_v33 = vmul.f32 %v9202_v3, %v9156_v38  ;;  %v5216_v2 = vor.u32 %v5459_v18, %v5213_v49  ;;  %v5196_v51 = vor.u32 %v5457_v43, %v5195_v39  ;;  %v9256_v48 = vpop.eup %5905  ;;  %v5480_v38 = vld [vmem:[%s6037_s18 + $0x4ec] sm:$0xf]  ;;  %v5411_v18 = vld [vmem:[%s6037_s18 + $0x2c4] sm:$0xf]  ;;  %v5021_v49 = vld [vmem:[%s6037_s18 + $0x2d0] sm:$0xf0] }
 0x356   : > { %4247 = vmatpush.bf16.msrb.mxu3 %v4776_v35  ;;  %v5465_v35 = vld [vmem:[%s6037_s18 + $0x46c] sm:$0xf0]  ;;  %v2893_v23 = vmul.f32 %v2532_v29, %v8988_v60  ;;  %v2677_v40 = vsel %vm9237_vm14, %v9140_v59, %v2673_v36  ;;  %vm2750_vm12 = vweird.f32 %v9202_v3  ;;  %v4696_v59 = vor.u32 %v5328_v44, %v4693_v27  ;;  %v5476_v44 = vld [vmem:[%s6037_s18 + $0x4cc] sm:$0xf]  ;;  %v5285_v27 = vld [vmem:[%s6037_s18 + $0x4d8] sm:$0xf0] }
 0x357   : > { %v5228_v4 = vor.u32 %v5465_v35, %v5227_v15  ;;  %v2746_v10 = vsub.f32 1.0, %v2745_v33  ;;  %v5179_v35 = vld [vmem:[%s6037_s18 + $0x400] sm:$0xf]  ;;  %v2820_v28 = vmul.f32 %v9256_v48, %v9194_v0  ;;  %v2682_v6 = vsel %vm9223_vm11, %v2681_v17, %v2677_v40  ;;  %vm2751_vm4 = vmor %vm2749_vm3, %vm2750_vm12  ;;  %v5155_v33 = vld [vmem:[%s6037_s18 + $0x3c8] sm:$0xf] }
 0x358   : > { %4172 = vmatpush.bf16.msra.mxu1 %v5232_v12  ;;  %v3033_v13 = vadd.f32 %v3032_v50, %v2893_v23  ;;  %v5181_v12 = vld [vmem:[%s6037_s18 + $0x410] sm:$0xf0]  ;;  %v5180_v50 = vor.u32 %v5453_v25, %v5179_v35  ;;  %vm2825_vm2 = vweird.f32 %v9256_v48  ;;  %v5304_v36 = vor.u32 %v5480_v38, %v5301_v58  ;;  %v5442_v60 = vld [vmem:[%s6037_s18 + $0x3b4] sm:$0xf0]  ;;  %v5237_v38 = vld [vmem:[%s6037_s18 + $0x478] sm:$0xf0] }
 0x359   : > { %4107 = vmatpush.bf16.msra.mxu2 %v5228_v4  ;;  %v2747_v41 = vmul.f32 %v9202_v3, %v2746_v10  ;;  %v5415_v4 = vld [vmem:[%s6037_s18 + $0x2e4] sm:$0xf]  ;;  %v2821_v57 = vsub.f32 1.0, %v2820_v28  ;;  %v5184_v7 = vor.u32 %v5451_v24, %v5181_v12  ;;  %v2975_v23 = vrot.slane %v9261_v47, 2  ;;  %v5005_v39 = vld [vmem:[%s6037_s18 + $0x2b0] sm:$0xf0] }
 0x35a   : > { %4248 = vmatpush.bf16.msrb.mxu3 %v4760_v54  ;;  %v2606_v54 = vor.u32 1.1754944e-38, %v2605_v31  ;;  %v5455_v31 = vld [vmem:[%s6037_s18 + $0x424] sm:$0xf]  ;;  %v2831_v17 = vor.u32 1.1754944e-38, %v2830_v11  ;;  %vm2829_vm1 = vcmp.eq.f32.partialorder %v2828_v63, 8.507059e+37 }
 0x35b   : > { %v2748_v62 = vadd.f32 %v9202_v3, %v2747_v41  ;;  %v5407_v10 = vld [vmem:[%s6037_s18 + $0x2a4] sm:$0xf]  ;;  %v2976_v35 = vadd.f32 %v2975_v23, %v9261_v47  ;;  %v4973_v47 = vld [vmem:[%s6037_s18 + $0x270] sm:$0xf0]  ;;  %v5464_v63 = vld [vmem:[%s6037_s18 + $0x46c] sm:$0xf] }
 0x35c   : > { %v2607_v16 = vsel %vm9177_vm0, %v2606_v54, %v2602_v26  ;;  %4173 = vmatpush.bf16.msra.mxu1 %v5216_v2  ;;  %v4680_v54 = vor.u32 %v5324_v8, %v4677_v55  ;;  %v2822_v26 = vmul.f32 %v9256_v48, %v2821_v57  ;;  %vm2826_vm0 = vmor %vm2824_vm9, %vm2825_vm2  ;;  %v5008_v41 = vor.u32 %v5407_v10, %v5005_v39  ;;  %v5403_v55 = vld [vmem:[%s6037_s18 + $0x284] sm:$0xf]  ;;  %v5205_v23 = vld [vmem:[%s6037_s18 + $0x438] sm:$0xf0] }
 0x35d   : > { %4108 = vmatpush.bf16.msra.mxu2 %v5212_v32  ;;  %v2898_v19 = vmul.f32 %v2607_v16, %v9007_v56  ;;  %v2752_v37 = vsel %vm2751_vm4, %v9202_v3, %v2748_v62  ;;  %v5040_v56 = vor.u32 %v5415_v4, %v5037_v9  ;;  %v2903_v3 = vmul.f32 %v2682_v6, %v9025_v22  ;;  %v5438_v4 = vld [vmem:[%s6037_s18 + $0x394] sm:$0xf0]  ;;  %v5253_v9 = vld [vmem:[%s6037_s18 + $0x498] sm:$0xf0]  ;;  %v5399_v28 = vld [vmem:[%s6037_s18 + $0x264] sm:$0xf] }
 0x35e   : > { %4249 = vmatpush.bf16.msrb.mxu3 %v4744_v45  ;;  %v5197_v45 = vld [vmem:[%s6037_s18 + $0x430] sm:$0xf0]  ;;  %v2757_v29 = vsel %vm9241_vm15, %v2756_v30, %v2752_v37  ;;  %v2823_v2 = vadd.f32 %v9256_v48, %v2822_v26  ;;  %v5024_v22 = vor.u32 %v5411_v18, %v5021_v49  ;;  %v5288_v16 = vor.u32 %v5476_v44, %v5285_v27  ;;  %v5434_v6 = vld [vmem:[%s6037_s18 + $0x374] sm:$0xf0]  ;;  %v5395_v57 = vld [vmem:[%s6037_s18 + $0x244] sm:$0xf] }
 0x35f   : > { %v5200_v15 = vor.u32 %v5455_v31, %v5197_v45  ;;  %v2908_v32 = vmul.f32 %v2757_v29, %v9073_v53  ;;  %v5156_v53 = vor.u32 %v5446_v34, %v5155_v33  ;;  %v5269_v31 = vld [vmem:[%s6037_s18 + $0x4b8] sm:$0xf0]  ;;  %v5140_v8 = vor.u32 %v5442_v60, %v5139_v42  ;;  %v5460_v18 = vld [vmem:[%s6037_s18 + $0x44c] sm:$0xf]  ;;  %v5391_v33 = vld [vmem:[%s6037_s18 + $0x224] sm:$0xf] }
 0x360   : > { %v2827_v0 = vsel %vm2826_vm0, %v9256_v48, %v2823_v2  ;;  %v2977_v12 = vrot.slane %v2976_v35, 1  ;;  %v5240_v11 = vor.u32 %v5464_v63, %v5237_v38  ;;  %v5221_v49 = vld [vmem:[%s6037_s18 + $0x458] sm:$0xf0]  ;;  %v4941_v34 = vld [vmem:[%s6037_s18 + $0x230] sm:$0xf0] }
 0x361   : > { %4109 = vmatpush.bf16.msra.mxu2 %v5196_v51  ;;  %4174 = vmatpush.bf16.msra.mxu1 %v5200_v15  ;;  %v2832_v30 = vsel %vm2829_vm1, %v2831_v17, %v2827_v0  ;;  %v5472_v51 = vld [vmem:[%s6037_s18 + $0x4ac] sm:$0xf]  ;;  %v4989_v15 = vld [vmem:[%s6037_s18 + $0x290] sm:$0xf0]  ;;  %v5224_v27 = vor.u32 %v5460_v18, %v5221_v49  ;;  %v5426_v2 = vld [vmem:[%s6037_s18 + $0x334] sm:$0xf0] }
 0x362   : > { %4250 = vmatpush.bf16.msrb.mxu3 %v4728_v61  ;;  %v5450_v61 = vld [vmem:[%s6037_s18 + $0x3f4] sm:$0xf0]  ;;  %v2913_v40 = vmul.f32 %v2832_v30, %v9118_v20  ;;  %v5272_v48 = vor.u32 %v5472_v51, %v5269_v31  ;;  %v5468_v20 = vld [vmem:[%s6037_s18 + $0x48c] sm:$0xf]  ;;  %v4925_v0 = vld [vmem:[%s6037_s18 + $0x210] sm:$0xf0] }
 0x363   : > { %v5172_v14 = vor.u32 %v5450_v61, %v5171_v52  ;;  %v5256_v61 = vor.u32 %v5468_v20, %v5253_v9  ;;  %v5452_v39 = vld [vmem:[%s6037_s18 + $0x40c] sm:$0xf]  ;;  %v5354_v51 = vld [vmem:[%s6037_s18 + $0xf4] sm:$0xf0]  ;;  %v5059_v31 = vld [vmem:[%s6037_s18 + $0x308] sm:$0xf] }
 0x364   : > { %v4771_v20 = vld [vmem:[%s6037_s18 + $0xc8] sm:$0xf]  ;;  %v5350_v9 = vld [vmem:[%s6037_s18 + $0xd4] sm:$0xf0] }
 0x365   : > { %4110 = vmatpush.bf16.msra.mxu2 %v5180_v50  ;;  %4175 = vmatpush.bf16.msra.mxu1 %v5184_v7  ;;  %v4976_v50 = vor.u32 %v5399_v28, %v4973_v47  ;;  %v2978_v7 = vadd.f32 %v2977_v12, %v2976_v35  ;;  %v4772_v28 = vor.u32 %v5350_v9, %v4771_v20  ;;  %v4755_v12 = vld [vmem:[%s6037_s18 + $0xa8] sm:$0xf]  ;;  %v5478_v9 = vld [vmem:[%s6037_s18 + $0x4d4] sm:$0xf0] }
 0x366   : > { %4251 = vmatpush.bf16.msrb.mxu3 %v4712_v1  ;;  %v3034_v1 = vadd.f32 %v3033_v13, %v2898_v19  ;;  %v4992_v13 = vor.u32 %v5403_v55, %v4989_v15  ;;  %v5107_v19 = vld [vmem:[%s6037_s18 + $0x368] sm:$0xf] }
 0x367   : > { %v5108_v37 = vor.u32 %v5434_v6, %v5107_v19  ;;  %v5013_v19 = vld [vmem:[%s6037_s18 + $0x2b8] sm:$0xf0]  ;;  %v5283_v20 = vld [vmem:[%s6037_s18 + $0x4c8] sm:$0xf] }
 0x368   : > { %v3035_v43 = vadd.f32 %v3034_v1, %v2903_v3  ;;  %v3049_v1 = vpack.c.bf16 %v2978_v7, %v2978_v7 }
 0x369   : > { %4142 = vmatpush.bf16.msrb.mxu2 %v5040_v56  ;;  %4220 = vmatpush.bf16.msrb.mxu1 %v5172_v14  ;;  %v4957_v56 = vld [vmem:[%s6037_s18 + $0x250] sm:$0xf0]  ;;  %v5430_v14 = vld [vmem:[%s6037_s18 + $0x354] sm:$0xf0] }
 0x36a   : > { %4252 = vmatpush.bf16.msrb.mxu3 %v4696_v59  ;;  %v3036_v45 = vadd.f32 %v3035_v43, %v2908_v32  ;;  %v5123_v59 = vld [vmem:[%s6037_s18 + $0x388] sm:$0xf]  ;;  %v4960_v26 = vor.u32 %v5395_v57, %v4957_v56  ;;  %v5387_v43 = vld [vmem:[%s6037_s18 + $0x204] sm:$0xf]  ;;  %v3229_v42 = vunpack.c.l.b16 %v3049_v1  ;;  %v4997_v57 = vld [vmem:[%s6037_s18 + $0x298] sm:$0xf0] }
 0x36b   : > { %v5124_v62 = vor.u32 %v5438_v4, %v5123_v59  ;;  %v5075_v32 = vld [vmem:[%s6037_s18 + $0x328] sm:$0xf]  ;;  %v4928_v55 = vor.u32 %v5387_v43, %v4925_v0  ;;  %v5330_v43 = vld [vmem:[%s6037_s18 + $0x34] sm:$0xf0] }
 0x36c   : > { %v3037_v25 = vadd.f32 %v3036_v45, %v2913_v40  ;;  %v5076_v10 = vor.u32 %v5426_v2, %v5075_v32  ;;  %v5422_v45 = vld [vmem:[%s6037_s18 + $0x314] sm:$0xf0]  ;;  %v5189_v40 = vld [vmem:[%s6037_s18 + $0x418] sm:$0xf0]  ;;  %v5396_v32 = vld [vmem:[%s6037_s18 + $0x24c] sm:$0xf] }
 0x36d   : > { %4143 = vmatpush.bf16.msrb.mxu2 %v5024_v22  ;;  %4221 = vmatpush.bf16.msrb.mxu1 %v5156_v53  ;;  %v5456_v22 = vld [vmem:[%s6037_s18 + $0x42c] sm:$0xf]  ;;  %v4944_v53 = vor.u32 %v5391_v33, %v4941_v34  ;;  %v5192_v59 = vor.u32 %v5452_v39, %v5189_v40  ;;  %v4965_v2 = vld [vmem:[%s6037_s18 + $0x258] sm:$0xf0]  ;;  %v4691_v39 = vld [vmem:[%s6037_s18 + $0x28] sm:$0xf] }
 0x36e   : > { %4253 = vmatpush.bf16.msrb.mxu3 %v4680_v54  ;;  %v3038_v24 = vrot.slane %v3037_v25, 4  ;;  %v5091_v54 = vld [vmem:[%s6037_s18 + $0x348] sm:$0xf]  ;;  %v5208_v30 = vor.u32 %v5456_v22, %v5205_v23  ;;  %v5482_v40 = vld [vmem:[%s6037_s18 + $0x4f4] sm:$0xf0] }
 0x370   : > { %v3039_v52 = vadd.f32 %v3038_v24, %v3037_v25  ;;  %v5412_v24 = vld [vmem:[%s6037_s18 + $0x2cc] sm:$0xf] }
 0x371   : > { %4254 = vmatmul.bf16.vlgmr.msrb.gmra.mxu3 %v8788_v5  ;;  %4144 = vmatpush.bf16.msrb.mxu2 %v5008_v41  ;;  %v5416_v41 = vld [vmem:[%s6037_s18 + $0x2ec] sm:$0xf] }
 0x372   : > { %4298 = vmatpush.bf16.msra.mxu3 %v5304_v36  ;;  %4222 = vmatpush.bf16.msrb.mxu1 %v5140_v8  ;;  %v3040_v58 = vrot.slane %v3039_v52, 2  ;;  %v5092_v36 = vor.u32 %v5430_v14, %v5091_v54  ;;  %v5045_v8 = vld [vmem:[%s6037_s18 + $0x2f8] sm:$0xf0]  ;;  %v4723_v54 = vld [vmem:[%s6037_s18 + $0x68] sm:$0xf] }
 0x373   : > { %v5048_v4 = vor.u32 %v5416_v41, %v5045_v8  ;;  %v5338_v14 = vld [vmem:[%s6037_s18 + $0x74] sm:$0xf0]  ;;  %v5388_v41 = vld [vmem:[%s6037_s18 + $0x20c] sm:$0xf]  ;;  %v4933_v8 = vld [vmem:[%s6037_s18 + $0x218] sm:$0xf0] }
 0x374   : > { %v3041_v29 = vadd.f32 %v3040_v58, %v3039_v52  ;;  %v5346_v52 = vld [vmem:[%s6037_s18 + $0xb4] sm:$0xf0]  ;;  %v4739_v58 = vld [vmem:[%s6037_s18 + $0x88] sm:$0xf]  ;;  %v4724_v33 = vor.u32 %v5338_v14, %v4723_v54 }
 0x375   : > { %4145 = vmatpush.bf16.msrb.mxu2 %v4992_v13  ;;  %v5029_v13 = vld [vmem:[%s6037_s18 + $0x2d8] sm:$0xf0]  ;;  %v4756_v6 = vor.u32 %v5346_v52, %v4755_v12  ;;  %v5251_v52 = vld [vmem:[%s6037_s18 + $0x488] sm:$0xf] }
 0x376   : > { %4299 = vmatpush.bf16.msra.mxu3 %v5288_v16  ;;  %4223 = vmatpush.bf16.msrb.mxu1 %v5124_v62  ;;  %v3042_v3 = vrot.slane %v3041_v29, 1  ;;  %v4787_v16 = vld [vmem:[%s6037_s18 + $0xe8] sm:$0xf]  ;;  %v5032_v47 = vor.u32 %v5412_v24, %v5029_v13  ;;  %v5284_v24 = vor.u32 %v5478_v9, %v5283_v20 }
 0x377   : > { %v4788_v25 = vor.u32 %v5354_v51, %v4787_v16  ;;  %v5392_v16 = vld [vmem:[%s6037_s18 + $0x22c] sm:$0xf]  ;;  %v4675_v51 = vld [vmem:[%s6037_s18 + $0x8] sm:$0xf] }
 0x378   : > { %v3043_v44 = vadd.f32 %v3042_v3, %v3041_v29  ;;  %v5400_v3 = vld [vmem:[%s6037_s18 + $0x26c] sm:$0xf]  ;;  %v5267_v13 = vld [vmem:[%s6037_s18 + $0x4a8] sm:$0xf] }
 0x379   : > { %4146 = vmatpush.bf16.msrb.mxu2 %v4976_v50  ;;  %v5342_v50 = vld [vmem:[%s6037_s18 + $0x94] sm:$0xf0]  ;;  %v5187_v14 = vld [vmem:[%s6037_s18 + $0x408] sm:$0xf] }
 0x37a   : > { %4300 = vmatpush.bf16.msra.mxu3 %v5272_v48  ;;  %4224 = vmatpush.bf16.msrb.mxu1 %v5108_v37  ;;  %v3054_v17 = vpack.c.bf16 %v3043_v44, %v3043_v44  ;;  %v5060_v48 = vor.u32 %v5422_v45, %v5059_v31  ;;  %v5404_v37 = vld [vmem:[%s6037_s18 + $0x28c] sm:$0xf]  ;;  %v4740_v7 = vor.u32 %v5342_v50, %v4739_v58  ;;  %v4707_v44 = vld [vmem:[%s6037_s18 + $0x48] sm:$0xf]  ;;  %v5326_v31 = vld [vmem:[%s6037_s18 + $0x14] sm:$0xf0] }
 0x37b   : > { %v5299_v45 = vld [vmem:[%s6037_s18 + $0x4e8] sm:$0xf]  ;;  %v5466_v58 = vld [vmem:[%s6037_s18 + $0x474] sm:$0xf0] }
 0x37c   : > { %v3234_v60 = vunpack.c.l.b16 %v3054_v17  ;;  %v5219_v50 = vld [vmem:[%s6037_s18 + $0x448] sm:$0xf] }
 0x37d   : > { %4147 = vmatpush.bf16.msrb.mxu2 %v4960_v26  ;;  %v4981_v26 = vld [vmem:[%s6037_s18 + $0x278] sm:$0xf0] }
 0x37e   : > { %4301 = vmatpush.bf16.msra.mxu3 %v5256_v61  ;;  %4225 = vmatpush.bf16.msrb.mxu1 %v5092_v36  ;;  %v3240_v15 = vsel %vm3235_vm7, %v3234_v60, %v3229_v42  ;;  %v5408_v61 = vld [vmem:[%s6037_s18 + $0x2ac] sm:$0xf]  ;;  %v4984_v1 = vor.u32 %v5400_v3, %v4981_v26  ;;  %v4949_v42 = vld [vmem:[%s6037_s18 + $0x238] sm:$0xf0]  ;;  %v4692_v60 = vor.u32 %v5330_v43, %v4691_v39  ;;  %vm4318_vm7 = vcmask 1041408  }
 0x37f   : > { %v9345_v35 = vpack.c.b16 %v3240_v15, %v3240_v15  ;;  %v5016_v38 = vor.u32 %v5408_v61, %v5013_v19  ;;  %v4676_v15 = vor.u32 %v5326_v31, %v4675_v51  ;;  %v5470_v61 = vld [vmem:[%s6037_s18 + $0x494] sm:$0xf0]  ;;  %v5173_v3 = vld [vmem:[%s6037_s18 + $0x3f8] sm:$0xf0]  ;;  %v5420_v31 = vld [vmem:[%s6037_s18 + $0x30c] sm:$0xf] }
 0x380   : > { %v5109_v39 = vld [vmem:[%s6037_s18 + $0x378] sm:$0xf0] }
 0x381   : > { %4148 = vmatpush.bf16.msrb.mxu2 %v4944_v53  ;;  %4176 = vmatmul.bf16.vlgmr.msra.gmra.mxu1 %v9345_v35  ;;  %v4060_v62 = vpop.f32.mrf.mxu1 }
 0x382   : > { %4302 = vmatpush.bf16.msra.mxu3 %v5240_v11  ;;  %4226 = vmatpush.bf16.msrb.mxu1 %v5076_v10  ;;  %v5000_v11 = vor.u32 %v5404_v37, %v4997_v57  ;;  %v4968_v10 = vor.u32 %v5396_v32, %v4965_v2  ;;  %v5462_v37 = vld [vmem:[%s6037_s18 + $0x454] sm:$0xf0]  ;;  %v5141_v32 = vld [vmem:[%s6037_s18 + $0x3b8] sm:$0xf0] }
 0x383   : > { %4111 = vmatmul.bf16.vlgmr.msra.gmra.mxu2 %v9345_v35 }
 0x385   : > { %4149 = vmatpush.bf16.msrb.mxu2 %v4928_v55  ;;  %v9358_v63 = vpop.f32.mrf.mxu0 }
 0x386   : > { %4303 = vmatpush.bf16.msra.mxu3 %v5224_v27  ;;  %4227 = vmatpush.bf16.msrb.mxu1 %v5060_v48  ;;  %v5334_v27 = vld [vmem:[%s6037_s18 + $0x54] sm:$0xf0]  ;;  %v4936_v48 = vor.u32 %v5388_v41, %v4933_v8 }
 0x387   : > { %v4708_v23 = vor.u32 %v5334_v27, %v4707_v44  ;;  %v5440_v27 = vld [vmem:[%s6037_s18 + $0x3ac] sm:$0xf] }
 0x388   : > { %v5144_v2 = vor.u32 %v5440_v27, %v5141_v32 }
 0x389   : > { %4181 = vmatpush.bf16.msra.mxu2 %v4788_v25  ;;  %v4062_v56 = vpop.f32.mrf.mxu1  ;;  %v5300_v25 = vor.u32 %v5482_v40, %v5299_v45  ;;  %v5061_v45 = vld [vmem:[%s6037_s18 + $0x318] sm:$0xf0] }
 0x38a   : > { %4304 = vmatpush.bf16.msra.mxu3 %v5208_v30  ;;  %4272 = vmatpush.bf16.msra.mxu1 %v5048_v4  ;;  %v4073_v29 = vpop.f32.mrf.mxu2  ;;  %v4952_v30 = vor.u32 %v5392_v16, %v4949_v42  ;;  %v5220_v56 = vor.u32 %v5462_v37, %v5219_v50  ;;  %v5093_v16 = vld [vmem:[%s6037_s18 + $0x358] sm:$0xf0]  ;;  %v5064_v40 = vor.u32 %v5420_v31, %v5061_v45 }
 0x38b   : > { %v4074_v18 = vadd.f32 %v4073_v29, %v4060_v62  ;;  %v4086_v49 = vpop.f32.mrf.mxu3  ;;  %v5474_v62 = vld [vmem:[%s6037_s18 + $0x4b4] sm:$0xf0] }
 0x38c   : > { %v5458_v29 = vld [vmem:[%s6037_s18 + $0x434] sm:$0xf0] }
 0x38d   : > { %4182 = vmatpush.bf16.msra.mxu2 %v4772_v28  ;;  %v4087_v36 = vadd.f32 %v4086_v49, %v4074_v18  ;;  %v4218_v34 = vpop.f32.mrf.mxu0  ;;  %v5268_v28 = vor.u32 %v5474_v62, %v5267_v13  ;;  %v5454_v18 = vld [vmem:[%s6037_s18 + $0x414] sm:$0xf0]  ;;  %v5448_v49 = vld [vmem:[%s6037_s18 + $0x3ec] sm:$0xf] }
 0x38e   : > { %4305 = vmatpush.bf16.msra.mxu3 %v5192_v59  ;;  %4273 = vmatpush.bf16.msra.mxu1 %v5032_v47  ;;  %v5188_v26 = vor.u32 %v5454_v18, %v5187_v14  ;;  %v5157_v34 = vld [vmem:[%s6037_s18 + $0x3d8] sm:$0xf0] }
 0x391   : > { %4306 = vmatmul.bf16.vlgmr.msra.gmra.mxu3 %v9345_v35  ;;  %4183 = vmatpush.bf16.msra.mxu2 %v4756_v6  ;;  %v4099_v22 = vpop.f32.mrf.mxu1 }
 0x392   : > { %4274 = vmatpush.bf16.msra.mxu1 %v5016_v38  ;;  %v4075_v17 = vpop.f32.mrf.mxu2  ;;  %v9374_v53 = vadd.f32 %v4099_v22, %v4087_v36  ;;  %v5252_v38 = vor.u32 %v5470_v61, %v5251_v52  ;;  %v5176_v36 = vor.u32 %v5448_v49, %v5173_v3  ;;  %v5436_v22 = vld [vmem:[%s6037_s18 + $0x38c] sm:$0xf] }
 0x393   : > { %4150 = vmatmul.bf16.vlgmr.msrb.gmra.mxu2 %v8817_v46  ;;  %4228 = vmatmul.bf16.vlgmr.msrb.gmra.mxu1 %v8886_v21  ;;  %v4088_v0 = vpop.f32.mrf.mxu3  ;;  %v3044_v3 = vld [vmem:[#allocation3] sm:$0xff] }
 0x394   : > { %v5428_v0 = vld [vmem:[%s6037_s18 + $0x34c] sm:$0xf] }
 0x395   : > { %4184 = vmatpush.bf16.msra.mxu2 %v4740_v7  ;;  %v5203_v7 = vld [vmem:[%s6037_s18 + $0x428] sm:$0xf]  ;;  %v5096_v42 = vor.u32 %v5428_v0, %v5093_v16 }
 0x396   : > { %4275 = vmatpush.bf16.msra.mxu1 %v5000_v11  ;;  %v5204_v54 = vor.u32 %v5458_v29, %v5203_v7 }
 0x399   : > { %4185 = vmatpush.bf16.msra.mxu2 %v4724_v33  ;;  %v4101_v55 = vpop.f32.mrf.mxu1  ;;  %v5444_v33 = vld [vmem:[%s6037_s18 + $0x3cc] sm:$0xf] }
 0x39a   : > { %4276 = vmatpush.bf16.msra.mxu1 %v4984_v1  ;;  %v5160_v44 = vor.u32 %v5444_v33, %v5157_v34 }
 0x39b   : > { %v4125_v4 = vpop.f32.mrf.mxu3 }
 0x39d   : > { %4186 = vmatpush.bf16.msra.mxu2 %v4708_v23  ;;  %v5125_v23 = vld [vmem:[%s6037_s18 + $0x398] sm:$0xf0] }
 0x39e   : > { %4277 = vmatpush.bf16.msra.mxu1 %v4968_v10  ;;  %v9386_v59 = vpop.f32.mrf.mxu0  ;;  %v5128_v17 = vor.u32 %v5436_v22, %v5125_v23  ;;  %v5432_v10 = vld [vmem:[%s6037_s18 + $0x36c] sm:$0xf] }
 0x39f   : > { %v5112_v43 = vor.u32 %v5432_v10, %v5109_v39 }
 0x3a1   : > { %4187 = vmatpush.bf16.msra.mxu2 %v4692_v60  ;;  %v5424_v60 = vld [vmem:[%s6037_s18 + $0x32c] sm:$0xf] }
 0x3a2   : > { %4278 = vmatpush.bf16.msra.mxu1 %v4952_v30  ;;  %v5077_v30 = vld [vmem:[%s6037_s18 + $0x338] sm:$0xf0] }
 0x3a3   : > { %v4127_v12 = vpop.f32.mrf.mxu3  ;;  %v5080_v51 = vor.u32 %v5424_v60, %v5077_v30 }
 0x3a5   : > { %4188 = vmatpush.bf16.msra.mxu2 %v4676_v15 }
 0x3a6   : > { %4279 = vmatpush.bf16.msra.mxu1 %v4936_v48  ;;  %v4270_v47 = vpop.f32.mrf.mxu0 }
 0x3a7   : > { %v4138_v19 = vpop.f32.mrf.mxu1 }
 0x3a8   : > { %4189 = vmatmul.bf16.vlgmr.msra.gmra.mxu2 %v8788_v5  ;;  %v9396_v6 = vadd.f32 %v4138_v19, %v4125_v4  ;;  %v5235_v5 = vld [vmem:[%s6037_s18 + $0x468] sm:$0xf] }
 0x3a9   : > { %4233 = vmatpush.bf16.msrb.mxu2 %v5300_v25  ;;  %4280 = vmatmul.bf16.vlgmr.msra.gmra.mxu1 %v8817_v46  ;;  %v5236_v46 = vor.u32 %v5466_v58, %v5235_v5 }
 0x3ad   : > { %4234 = vmatpush.bf16.msrb.mxu2 %v5284_v24 }
 0x3af   : > { %v4140_v57 = vpop.f32.mrf.mxu1 }
 0x3b1   : > { %4235 = vmatpush.bf16.msrb.mxu2 %v5268_v28 }
 0x3b4   : > { %v4164_v11 = vpop.f32.mrf.mxu3 }
 0x3b5   : > { %4236 = vmatpush.bf16.msrb.mxu2 %v5252_v38 }
 0x3b9   : > { %4237 = vmatpush.bf16.msrb.mxu2 %v5236_v46 }
 0x3bc   : > { %v4166_v1 = vpop.f32.mrf.mxu3 }
 0x3bd   : > { %4238 = vmatpush.bf16.msrb.mxu2 %v5220_v56 }
 0x3c1   : > { %4239 = vmatpush.bf16.msrb.mxu2 %v5204_v54 }
 0x3c5   : > { %4240 = vmatpush.bf16.msrb.mxu2 %v5188_v26 }
 0x3c8   : > { %4241 = vmatmul.bf16.vlgmr.msrb.gmra.mxu2 %v9345_v35 }
 0x3c9   : > { %4285 = vmatpush.bf16.msra.mxu2 %v5176_v36 }
 0x3cd   : > { %4286 = vmatpush.bf16.msra.mxu2 %v5160_v44 }
 0x3d1   : > { %4287 = vmatpush.bf16.msra.mxu2 %v5144_v2 }
 0x3d4   : > { %v4203_v35 = vpop.f32.mrf.mxu3 }
 0x3d5   : > { %4288 = vmatpush.bf16.msra.mxu2 %v5128_v17 }
 0x3d9   : > { %4289 = vmatpush.bf16.msra.mxu2 %v5112_v43 }
 0x3dc   : > { %v4205_v41 = vpop.f32.mrf.mxu3 }
 0x3dd   : > { %4290 = vmatpush.bf16.msra.mxu2 %v5096_v42 }
 0x3e1   : > { %4291 = vmatpush.bf16.msra.mxu2 %v5080_v51 }
 0x3e5   : > { %4292 = vmatpush.bf16.msra.mxu2 %v5064_v40 }
 0x3e8   : > { %4293 = vmatmul.bf16.vlgmr.msra.gmra.mxu2 %v8886_v21 }
 0x3f4   : > { %v4255_v8 = vpop.f32.mrf.mxu3 }
 0x3f5   : > { %v4269_v56 = vadd.f32 %v9386_v59, %v4255_v8 }
 0x3fc   : > { %v4257_v55 = vpop.f32.mrf.mxu3 }
 0x3fe   : > { %v4177_v15 = vpop.f32.mrf.mxu1 }
 0x406   : > { %v4112_v25 = vpop.f32.mrf.mxu2  ;;  %v4179_v4 = vpop.f32.mrf.mxu1 }
 0x407   : > { %v4113_v48 = vadd.f32 %v4112_v25, %v9374_v53 }
 0x40e   : > { %v4114_v9 = vpop.f32.mrf.mxu2 }
 0x410   : > { %v4229_v24 = vpop.f32.mrf.mxu1 }
 0x414   : > { %v4307_v20 = vpop.f32.mrf.mxu3 }
 0x416   : > { %v4151_v62 = vpop.f32.mrf.mxu2 }
 0x417   : > { %v4152_v28 = vadd.f32 %v4151_v62, %v9396_v6 }
 0x418   : > { %v4231_v47 = vpop.f32.mrf.mxu1 }
 0x419   : > { %v4165_v12 = vadd.f32 %v4164_v11, %v4152_v28 }
 0x41b   : > { %v4178_v52 = vadd.f32 %v4177_v15, %v4165_v12 }
 0x41c   : > { %v4309_v13 = vpop.f32.mrf.mxu3 }
 0x41d   : > { %v4315_v61 = vrot.slane %v4178_v52, 6 }
 0x41e   : > { %v4153_v21 = vpop.f32.mrf.mxu2 }
 0x41f   : > { %v4319_v19 = vsel %vm4318_vm7, %v4113_v48, %v4315_v61 }
 0x426   : > { %v4281_v38 = vpop.f32.mrf.mxu1 }
 0x427   : > { %v4282_v6 = vadd.f32 %v4281_v38, %v4269_v56 }
 0x42b   : > { %v4190_v5 = vpop.f32.mrf.mxu2 }
 0x42c   : > { %v4204_v37 = vadd.f32 %v4203_v35, %v4190_v5 }
 0x42e   : > { %v4283_v58 = vpop.f32.mrf.mxu1  ;;  %v4217_v57 = vadd.f32 %v9358_v63, %v4204_v37 }
 0x430   : > { %v4230_v7 = vadd.f32 %v4229_v24, %v4217_v57 }
 0x433   : > { %v4192_v53 = vpop.f32.mrf.mxu2 }
 0x44b   : > { %v4242_v46 = vpop.f32.mrf.mxu2 }
 0x44c   : > { %v4243_v11 = vadd.f32 %v4242_v46, %v4230_v7 }
 0x44e   : > { %v4316_v18 = vrot.slane %v4243_v11, 4 }
 0x453   : > { %v4244_v50 = vpop.f32.mrf.mxu2 }
 0x46b   : > { %v4294_v29 = vpop.f32.mrf.mxu2 }
 0x46c   : > { %v4295_v54 = vadd.f32 %v4294_v29, %v4282_v6 }
 0x46e   : > { %v4308_v14 = vadd.f32 %v4307_v20, %v4295_v54 }
 0x470   : > { %v4317_v49 = vrot.slane %v4308_v14, 2 }
 0x472   : > { %v4321_v26 = vsel %vm4320_vm5, %v4316_v18, %v4317_v49  ;;  %4329 = sbr.rel (%p5305_p11) target bundleno = 1293 (0x50d), region = 90 }
 0x473   : > { %v4322_v36 = vsel %vm1053_vm6, %v4319_v19, %v4321_v26  ;;  %v4296_v33 = vpop.f32.mrf.mxu2 }
 0x474   : > { %v4324_v34 = vadd.f32 %v4322_v36, %v3044_v3 }
 0x476   : > { %4325 = vst [vmem:[#allocation3] sm:$0xff] %v4324_v34 }
 0x477   : > { %v4332_v63 = vld [vmem:[%s9467_s6] sm:$0xf]  ;;  %v5909_v52 = vld [vmem:[#allocation4] ss:$0 sm:$0xff] }
 0x478   : > { %v4347_v59 = vld [vmem:[%s9468_s7] sm:$0xf]  ;;  %v4334_v44 = vperm.slane %v4332_v63, 0  ;;  %v4335_v27 = vperm.slane %v4332_v63, 1  ;;  %v4336_v32 = vperm.slane %v4332_v63, 2  ;;  %v4337_v2 = vperm.slane %v4332_v63, 3 }
 0x479   : > { %v4349_v22 = vperm.slane %v4347_v59, 0  ;;  %v4350_v23 = vperm.slane %v4347_v59, 1  ;;  %v4351_v17 = vperm.slane %v4347_v59, 2  ;;  %v4352_v43 = vperm.slane %v4347_v59, 3 }
 0x47a   : > { %v4338_v10 = vrot.slane %v4335_v27, 6  ;;  %v4339_v39 = vrot.slane %v4336_v32, 4  ;;  %v4340_v16 = vrot.slane %v4337_v2, 2 }
 0x47b   : > { %v4353_v42 = vrot.slane %v4350_v23, 6  ;;  %v4354_v60 = vrot.slane %v4351_v17, 4  ;;  %v4355_v35 = vrot.slane %v4352_v43, 2 }
 0x47c   : > { %v4341_v30 = vsel %vm4318_vm7, %v4334_v44, %v4338_v10  ;;  %v4342_v51 = vsel %vm4320_vm5, %v4339_v39, %v4340_v16 }
 0x47d   : > { %v4330_v1 = vld [vmem:[#allocation3] sm:$0xff]  ;;  %v4356_v31 = vsel %vm4318_vm7, %v4349_v22, %v4353_v42  ;;  %v4343_v45 = vsel %vm1053_vm6, %v4341_v30, %v4342_v51  ;;  %v4357_v40 = vsel %vm4320_vm5, %v4354_v60, %v4355_v35 }
 0x47e   : > { %v4331_v0 = vmul.f32 0.015625, %v4330_v1  ;;  %v4358_v8 = vsel %vm1053_vm6, %v4356_v31, %v4357_v40  ;;  %vm4385_vm6 = vcmask 1024  }
 0x480   : > { %v4345_v41 = vadd.f32 %v4343_v45, %v4331_v0 }
 0x482   : > { %v4346_v55 = vmax.f32 %v4345_v41, 0.0 }
 0x484   : > { %v4360_v15 = vmul.f32 %v4358_v8, %v4346_v55 }
 0x486   : > { %4362 = vst [vmem:[#allocation1] ss:$4 sm:$0xff] %v4360_v15 }
 0x48d   : > { %v4363_v25 = vld.sshfl [vmem:[#allocation1] sm:$0xff pattern:$0x73625140]  ;;  %v4364_v48 = vld.sshfl [vmem:[#allocation1 + $0x8] sm:$0xff pattern:$0x73625140] }
 0x48e   : > { %v4365_v4 = vld.sshfl [vmem:[#allocation1 + $0x10] sm:$0xff pattern:$0x73625140]  ;;  %v4366_v20 = vld.sshfl [vmem:[#allocation1 + $0x18] sm:$0xff pattern:$0x73625140] }
 0x48f   : > { %v4371_v9 = vsel %vm4318_vm7, %v4363_v25, 0.0  ;;  %v4372_v24 = vsel %vm4318_vm7, %v4364_v48, 0.0  ;;  %v4374_v13 = vsel %vm4318_vm7, %v4365_v4, 0.0  ;;  %v4376_v28 = vsel %vm4318_vm7, %v4366_v20, 0.0 }
 0x490   : > { %v4373_v62 = vadd.f32 %v4372_v24, %v4371_v9 }
 0x492   : > { %v4375_v47 = vadd.f32 %v4374_v13, %v4373_v62 }
 0x494   : > { %v4377_v12 = vadd.f32 %v4376_v28, %v4375_v47 }
 0x496   : > { %4378 = vadd.xlane.f32.xlu0 %v4377_v12 }
 0x509   : > { %v4379_v61 = vpop.xlane.xlu0 %4378 }
 0x50a   : > { %v4384_v21 = vadd.f32 %v5909_v52, %v4379_v61 }
 0x50c   : > { %4386 = vst.msk [vmem:[%s9470_s9] sm:$0x3] %vm4385_vm6, %v4384_v21 }
 0x50d PF: > { %p18_p12 = scmp.ge.s32.totalorder %s6007_s14, 4   ;;  %s9757_s11 = smov %s5928_s12 }
 0x50e   : > { %s9758_s12 = smov %s6016_s17  ;;  %s9759_s13 = smov %s6007_s14 }
 0x50f   :  { %20 = sbr.rel (!%p18_p12) target bundleno = 5 (0x5), region = 133 }

</bundles_post_ra>
